<compile_context>
chip_gen: v6e
topology: v6e:2x2x1
jax: 0.10.0
libtpu: 0.0.40
codegen_flags: <defaults>
</compile_context>

<pallas_src>
import functools
import math

import jax
import jax.numpy as jnp
from jax.experimental import pallas as pl
from jax.experimental.pallas import tpu as pltpu

NUM_GROUPS = 8
NUM_HEADS = 4
EPS = 1e-5


def _self_attn_kernel(x_ref, gpool_ref, gbcast_ref, gamma_ref, beta_ref,
                      wqkv_ref, bqkv_ref, wo_ref, bo_ref,
                      out_ref, o_scratch, *, mxu_dtype, approx_recip):
    """One batch-block per grid step, channels-first (C, L) layout throughout."""
    block_b, C, L = x_ref.shape
    D = C // NUM_HEADS

    gpool = gpool_ref[...]      # (G, C) f32, rows already scaled by 1/(cg*L)
    gbcast = gbcast_ref[...]    # (C, G) f32 0/1 group-broadcast matrix
    gamma = gamma_ref[...]      # (C, 1) f32
    beta = beta_ref[...]        # (C, 1) f32
    wqkv = wqkv_ref[...]        # (3C, C) mxu dtype (q rows pre-scaled by 1/sqrt(D))
    bqkv = bqkv_ref[...]        # (3C, 1) f32      (bq pre-scaled by 1/sqrt(D))
    wo = wo_ref[...]            # (C, C)  mxu dtype
    bo = bo_ref[...]            # (C, 1)  f32

    # Constant row of ones used to pull the softmax row-sums out of the MXU already in
    # (1, Lq) lane orientation (what the deferred normalization of (D, Lq) needs).
    ones_row = jnp.ones((1, L), jnp.float32)

    def process(bi, carry):
        x_cl = x_ref[bi]                                        # (C, L) f32

        # ---- GroupNorm, two-pass (centered) variance, all f32 VPU/EUP work ----
        rowsum = jnp.sum(x_cl, axis=1, keepdims=True)           # (C, 1)
        gmean = jnp.dot(gpool, rowsum, preferred_element_type=jnp.float32)   # (G, 1)
        mean_c = jnp.dot(gbcast, gmean, preferred_element_type=jnp.float32)  # (C, 1)
        xc = x_cl - mean_c
        sqsum = jnp.sum(xc * xc, axis=1, keepdims=True)         # (C, 1)
        gvar = jnp.dot(gpool, sqsum, preferred_element_type=jnp.float32)     # (G, 1)
        var_c = jnp.maximum(
            jnp.dot(gbcast, gvar, preferred_element_type=jnp.float32), 0.0)  # (C, 1)
        inv_c = jax.lax.rsqrt(var_c + EPS)
        y = (xc * (inv_c * gamma) + beta).astype(mxu_dtype)     # (C, L), full-tile cast

        # ---- fused QKV projection: (3C, C) @ (C, L) -> (3C, L), f32 accumulate ----
        qkv = jnp.dot(wqkv, y, preferred_element_type=jnp.float32) + bqkv

        # ---- per-head attention; each head is a full (D sublanes, L lanes) f32 tile ----
        for h in range(NUM_HEADS):
            r0 = h * D
            qh = qkv[r0:r0 + D, :]                              # (D, L) f32 (pre-scaled q)
            kh = qkv[C + r0:C + r0 + D, :]                      # (D, L) f32
            vh = qkv[2 * C + r0:2 * C + r0 + D, :]              # (D, L) f32

            # scores[lq, lk] = sum_d q[d, lq] * k[d, lk]   (TN-form MXU matmul, f32)
            s = jax.lax.dot_general(qh, kh, (((0,), (0,)), ((), ())),
                                    preferred_element_type=jnp.float32)      # (L, L)
            # Unnormalized softmax numerator; normalization is deferred past the PV matmul.
            p = jnp.exp(s - jnp.max(s, axis=-1, keepdims=True))              # (L, L)

            # o[d, lq] = sum_lk v[d, lk] * p[lq, lk]       (NT-form MXU matmul, f32)
            oh = jax.lax.dot_general(vh, p, (((1,), (1,)), ((), ())),
                                     preferred_element_type=jnp.float32)     # (D, L)
            # row-sums of p in (1, Lq) lane orientation via a skinny MXU dot
            rs = jax.lax.dot_general(ones_row, p, (((1,), (1,)), ((), ())),
                                     preferred_element_type=jnp.float32)     # (1, L)
            if approx_recip:
                recip = pl.reciprocal(rs, approx=True)          # EUP slot, VALU-free
            else:
                recip = 1.0 / rs                                # exact path for f32 checks
            o_scratch[r0:r0 + D, :] = (oh * recip).astype(o_scratch.dtype)

        # ---- output projection + residual, channels-first => lane-dense store ----
        o_cl = o_scratch[...].astype(mxu_dtype)                 # (C, L)
        out_cl = jnp.dot(wo, o_cl, preferred_element_type=jnp.float32) + bo
        out_ref[bi] = x_cl + out_cl
        return carry

    # Cap unrolling once more than 2 batch items are folded per grid step.
    unroll = True if block_b <= 2 else 2
    jax.lax.fori_loop(0, block_b, process, 0, unroll=unroll)


def _pick_block_b(B, C, L):
    """Small, VMEM-budgeted batch block: keep >= 4 grid steps when B allows (pipeline
    overlap + v7x megacore), and keep double-buffered in+out x blocks under ~8 MiB."""
    for bb in (4, 2):
        if B % bb == 0 and B // bb >= 4 and 4 * bb * C * L * 4 <= (8 << 20):
            return bb
    return 1


def self_attention_block(x_nchw, params, *, mxu_dtype=jnp.bfloat16, block_b=None):
    """x_nchw: (B, C, H, W) float32. Returns (B, C, H, W)."""
    B, C, H, W = x_nchw.shape
    L = H * W
    assert C % NUM_GROUPS == 0 and C % NUM_HEADS == 0 and C % 8 == 0 and L % 128 == 0
    gpool, gbcast, gamma, beta, wqkv, bqkv, wo, bo = params

    if block_b is None:
        block_b = _pick_block_b(B, C, L)
    assert B % block_b == 0
    grid = (B // block_b,)

    D = C // NUM_HEADS
    G = NUM_GROUPS
    itemsize = jnp.dtype(mxu_dtype).itemsize
    # Head-output scratch in the MXU operand dtype only when the (D, L) head slabs are
    # packed-sublane-tile aligned (8 rows f32, 16 rows bf16); otherwise keep f32 to avoid
    # per-head sublane relayouts on the stores.
    rows_per_tile = 8 * 4 // itemsize
    scratch_dtype = mxu_dtype if D % rows_per_tile == 0 else jnp.float32

    # Free reshape only -- no HBM-round-trip transposes in the wrapper.
    x_bcl = x_nchw.reshape(B, C, L).astype(jnp.float32)
    wqkv_m = wqkv.astype(mxu_dtype)   # ship MXU weights in the MXU operand dtype
    wo_m = wo.astype(mxu_dtype)

    flops = B * (2 * L * C * (3 * C)        # fused QKV
                 + 4 * L * L * C            # scores + PV over all heads
                 + 2 * L * L * NUM_HEADS    # deferred row-sum dots
                 + 2 * L * C * C            # output projection
                 + 12 * C * L)              # GroupNorm / residual elementwise
    transcendentals = B * (NUM_HEADS * L * L + NUM_HEADS * L + 2 * C)
    bytes_accessed = (2 * B * C * L * 4
                      + 4 * C * C * itemsize
                      + (2 * G * C + 7 * C) * 4)
    cost = pl.CostEstimate(flops=int(flops), transcendentals=int(transcendentals),
                           bytes_accessed=int(bytes_accessed))

    # Explicit VMEM budget (double-buffered x in/out blocks + params + scratch + live
    # intermediates), clamped for v7x's 64 MiB physical VMEM.
    param_bytes = ((G * C + C * G + 2 * C + 4 * C) * 4
                   + (3 * C * C + C * C) * itemsize)
    x_block_bytes = block_b * C * L * 4
    live_bytes = (3 * C * L + 2 * C * L + 2 * L * L + 2 * D * L) * 4
    scratch_bytes = C * L * jnp.dtype(scratch_dtype).itemsize
    vmem_est = 2 * (2 * x_block_bytes) + 2 * param_bytes + scratch_bytes + live_bytes
    vmem_limit = int(min(max(2 * vmem_est, 16 << 20), 48 << 20))

    def const_spec(shape):
        return pl.BlockSpec(shape, lambda i, _n=len(shape): (0,) * _n)

    kernel = functools.partial(
        _self_attn_kernel, mxu_dtype=mxu_dtype,
        approx_recip=(jnp.dtype(mxu_dtype) != jnp.dtype(jnp.float32)))

    out_bcl = pl.pallas_call(
        kernel,
        out_shape=jax.ShapeDtypeStruct((B, C, L), jnp.float32),
        grid=grid,
        in_specs=[
            pl.BlockSpec((block_b, C, L), lambda i: (i, 0, 0)),   # x (channels-first)
            const_spec((G, C)),                                   # group pooling (1/(cg*L))
            const_spec((C, G)),                                   # group broadcast
            const_spec((C, 1)), const_spec((C, 1)),               # GN gamma, beta
            const_spec((3 * C, C)), const_spec((3 * C, 1)),       # fused Wqkv, bqkv
            const_spec((C, C)), const_spec((C, 1)),               # Wo, bo
        ],
        out_specs=pl.BlockSpec((block_b, C, L), lambda i: (i, 0, 0)),
        scratch_shapes=[pltpu.VMEM((C, L), scratch_dtype)],        # merged head outputs
        compiler_params=pltpu.CompilerParams(
            dimension_semantics=("parallel",),
            vmem_limit_bytes=vmem_limit),
        cost_estimate=cost,
    )(x_bcl, gpool, gbcast, gamma, beta, wqkv_m, bqkv, wo_m, bo)

    return out_bcl.reshape(B, C, H, W)


def make_params(key, C, L):
    """Builds kernel-layout params and a PyTorch-like param dict for the reference."""
    ks = jax.random.split(key, 6)
    cg = C // NUM_GROUPS
    D = C // NUM_HEADS
    # PyTorch MultiheadAttention: in_proj_weight (3C, C), in_proj_bias (3C,),
    # out_proj.weight (C, C), out_proj.bias (C,).  GroupNorm: weight/bias (C,).
    in_proj_w = jax.random.normal(ks[0], (3 * C, C), jnp.float32) / math.sqrt(C)
    in_proj_b = jax.random.normal(ks[1], (3 * C,), jnp.float32) * 0.02
    out_proj_w = jax.random.normal(ks[2], (C, C), jnp.float32) / math.sqrt(C)
    out_proj_b = jax.random.normal(ks[3], (C,), jnp.float32) * 0.02
    gn_w = 1.0 + 0.1 * jax.random.normal(ks[4], (C,), jnp.float32)
    gn_b = 0.1 * jax.random.normal(ks[5], (C,), jnp.float32)

    wq, wk, wv = in_proj_w[:C], in_proj_w[C:2 * C], in_proj_w[2 * C:]
    bq, bk, bv = in_proj_b[:C], in_proj_b[C:2 * C], in_proj_b[2 * C:]

    # Fold the 1/sqrt(D) attention scale into the q rows of the fused projection.
    scale = 1.0 / math.sqrt(D)
    wqkv = jnp.concatenate([wq * scale, wk, wv], axis=0)                  # (3C, C)
    bqkv = jnp.concatenate([bq * scale, bk, bv], axis=0).reshape(3 * C, 1)

    groups = jnp.arange(C) // cg
    onehot = (groups[None, :] == jnp.arange(NUM_GROUPS)[:, None]).astype(jnp.float32)  # (G, C)
    gpool = onehot / float(cg * L)          # (G, C): channel/position group-mean pooling
    gbcast = onehot.T                       # (C, G): broadcast group stats back to channels

    kernel_params = (gpool, gbcast, gn_w.reshape(C, 1), gn_b.reshape(C, 1),
                     wqkv, bqkv, out_proj_w, out_proj_b.reshape(C, 1))
    torch_like = dict(wq=wq, wk=wk, wv=wv, bq=bq, bk=bk, bv=bv,
                      wo=out_proj_w, bo=out_proj_b, gn_w=gn_w, gn_b=gn_b)
    return kernel_params, torch_like


def reference_forward(x, p):
    """Pure-jnp re-implementation of the PyTorch forward for verification."""
    B, C, H, W = x.shape
    L = H * W
    cg = C // NUM_GROUPS
    xi = x.reshape(B, C, L)
    xg = xi.reshape(B, NUM_GROUPS, cg, L)
    mean = xg.mean(axis=(2, 3), keepdims=True)
    var = xg.var(axis=(2, 3), keepdims=True)
    xn = (xg - mean) / jnp.sqrt(var + EPS)
    xn = xn.reshape(B, C, L) * p["gn_w"][None, :, None] + p["gn_b"][None, :, None]
    t = jnp.transpose(xn, (0, 2, 1))                        # (B, L, C)
    q = t @ p["wq"].T + p["bq"]
    k = t @ p["wk"].T + p["bk"]
    v = t @ p["wv"].T + p["bv"]
    D = C // NUM_HEADS
    qh = q.reshape(B, L, NUM_HEADS, D).transpose(0, 2, 1, 3)
    kh = k.reshape(B, L, NUM_HEADS, D).transpose(0, 2, 1, 3)
    vh = v.reshape(B, L, NUM_HEADS, D).transpose(0, 2, 1, 3)
    s = jnp.einsum("bhqd,bhkd->bhqk", qh, kh) / math.sqrt(D)
    a = jax.nn.softmax(s, axis=-1)
    o = jnp.einsum("bhqk,bhkd->bhqd", a, vh)
    o = o.transpose(0, 2, 1, 3).reshape(B, L, C)
    o = o @ p["wo"].T + p["bo"]
    return x + jnp.transpose(o, (0, 2, 1)).reshape(B, C, H, W)


if __name__ == "__main__":
    B, C, H, W = 2, 32, 16, 16          # channels divisible by num_groups=8, num_heads=4
    L = H * W
    key = jax.random.PRNGKey(0)
    kx, kp = jax.random.split(key)
    x = jax.random.normal(kx, (B, C, H, W), jnp.float32)

    kernel_params, torch_like = make_params(kp, C, L)
    ref = reference_forward(x, torch_like)

    # f32-MXU-operand path: exact reciprocal, tight numerical check of the kernel math.
    out_f32 = jax.block_until_ready(
        self_attention_block(x, kernel_params, mxu_dtype=jnp.float32))
    # bf16-MXU-operand path: the default perf path (v5e/v6e/v7x), looser tolerance.
    out_bf16 = jax.block_until_ready(self_attention_block(x, kernel_params))

    assert out_f32.shape == (B, C, H, W) and out_bf16.shape == (B, C, H, W)
    err_f32 = float(jnp.max(jnp.abs(out_f32 - ref)))
    err_bf16 = float(jnp.max(jnp.abs(out_bf16 - ref)))
    assert err_f32 < 2e-3, f"f32 path mismatch vs reference: max abs err = {err_f32}"
    assert err_bf16 < 1e-1, f"bf16 path mismatch vs reference: max abs err = {err_bf16}"
    print("KERNEL_OK")
</pallas_src>

<mosaic_0001>
module attributes {stable_mosaic.version = 11 : i64} {
  func.func @_self_attn_kernel(%arg0: i32, %arg1: memref<1x32x256xf32, #tpu.memory_space<vmem>>, %arg2: memref<8x32xf32, #tpu.memory_space<vmem>>, %arg3: memref<32x8xf32, #tpu.memory_space<vmem>>, %arg4: memref<32x1xf32, #tpu.memory_space<vmem>>, %arg5: memref<32x1xf32, #tpu.memory_space<vmem>>, %arg6: memref<96x32xf32, #tpu.memory_space<vmem>>, %arg7: memref<96x1xf32, #tpu.memory_space<vmem>>, %arg8: memref<32x32xf32, #tpu.memory_space<vmem>>, %arg9: memref<32x1xf32, #tpu.memory_space<vmem>>, %arg10: memref<1x32x256xf32, #tpu.memory_space<vmem>>, %arg11: memref<32x256xf32, #tpu.memory_space<vmem>>) attributes {dimension_semantics = [#tpu.dimension_semantics<parallel>], iteration_bounds = array<i64: 2>, scalar_prefetch = 0 : i64, scratch_operands = 1 : i64, tpu.core_type = #tpu.core_type<tc>, window_params = [{transform_indices = @transform_0, window_bounds = array<i64: 1, 32, 256>}, {pipeline_mode = #tpu.pipeline_mode<synchronous>, transform_indices = @transform_1, window_bounds = array<i64: 8, 32>}, {pipeline_mode = #tpu.pipeline_mode<synchronous>, transform_indices = @transform_2, window_bounds = array<i64: 32, 8>}, {pipeline_mode = #tpu.pipeline_mode<synchronous>, transform_indices = @transform_3, window_bounds = array<i64: 32, 1>}, {pipeline_mode = #tpu.pipeline_mode<synchronous>, transform_indices = @transform_4, window_bounds = array<i64: 32, 1>}, {pipeline_mode = #tpu.pipeline_mode<synchronous>, transform_indices = @transform_5, window_bounds = array<i64: 96, 32>}, {pipeline_mode = #tpu.pipeline_mode<synchronous>, transform_indices = @transform_6, window_bounds = array<i64: 96, 1>}, {pipeline_mode = #tpu.pipeline_mode<synchronous>, transform_indices = @transform_7, window_bounds = array<i64: 32, 32>}, {pipeline_mode = #tpu.pipeline_mode<synchronous>, transform_indices = @transform_8, window_bounds = array<i64: 32, 1>}, {transform_indices = @transform_9, window_bounds = array<i64: 1, 32, 256>}]} {
    %c0 = arith.constant 0 : index
    %c0_0 = arith.constant 0 : index
    %0 = vector.load %arg2[%c0, %c0_0] : memref<8x32xf32, #tpu.memory_space<vmem>>, vector<8x32xf32>
    %c0_1 = arith.constant 0 : index
    %c0_2 = arith.constant 0 : index
    %1 = vector.load %arg3[%c0_1, %c0_2] : memref<32x8xf32, #tpu.memory_space<vmem>>, vector<32x8xf32>
    %c0_3 = arith.constant 0 : index
    %c0_4 = arith.constant 0 : index
    %2 = vector.load %arg4[%c0_3, %c0_4] : memref<32x1xf32, #tpu.memory_space<vmem>>, vector<32x1xf32>
    %c0_5 = arith.constant 0 : index
    %c0_6 = arith.constant 0 : index
    %3 = vector.load %arg5[%c0_5, %c0_6] : memref<32x1xf32, #tpu.memory_space<vmem>>, vector<32x1xf32>
    %c0_7 = arith.constant 0 : index
    %c0_8 = arith.constant 0 : index
    %4 = vector.load %arg6[%c0_7, %c0_8] : memref<96x32xf32, #tpu.memory_space<vmem>>, vector<96x32xf32>
    %c0_9 = arith.constant 0 : index
    %c0_10 = arith.constant 0 : index
    %5 = vector.load %arg7[%c0_9, %c0_10] : memref<96x1xf32, #tpu.memory_space<vmem>>, vector<96x1xf32>
    %c0_11 = arith.constant 0 : index
    %c0_12 = arith.constant 0 : index
    %6 = vector.load %arg8[%c0_11, %c0_12] : memref<32x32xf32, #tpu.memory_space<vmem>>, vector<32x32xf32>
    %c0_13 = arith.constant 0 : index
    %c0_14 = arith.constant 0 : index
    %7 = vector.load %arg9[%c0_13, %c0_14] : memref<32x1xf32, #tpu.memory_space<vmem>>, vector<32x1xf32>
    %cst = arith.constant 1.000000e+00 : f32
    %8 = vector.broadcast %cst : f32 to vector<1x256xf32>
    %c0_i32 = arith.constant 0 : i32
    %9 = arith.index_cast %c0_i32 : i32 to index
    %c0_15 = arith.constant 0 : index
    %c0_16 = arith.constant 0 : index
    %10 = vector.load %arg1[%9, %c0_15, %c0_16] : memref<1x32x256xf32, #tpu.memory_space<vmem>>, vector<1x32x256xf32>
    %11 = vector.shape_cast %10 : vector<1x32x256xf32> to vector<32x256xf32>
    %cst_17 = arith.constant dense<0.000000e+00> : vector<32xf32>
    %12 = vector.multi_reduction <add>, %11, %cst_17 [1] : vector<32x256xf32> to vector<32xf32>
    %13 = vector.shape_cast %12 : vector<32xf32> to vector<32x1xf32>
    %cst_18 = arith.constant dense<0.000000e+00> : vector<8x1xf32>
    %14 = tpu.matmul %0, %13, %cst_18 {dimension_numbers = #tpu.dot_dimension_numbers<[1], [0], [0], [1], [0, 0, 1, 1], [], []>} : vector<8x32xf32>, vector<32x1xf32>, vector<8x1xf32> -> vector<8x1xf32>
    %cst_19 = arith.constant dense<0.000000e+00> : vector<32x1xf32>
    %15 = tpu.matmul %1, %14, %cst_19 {dimension_numbers = #tpu.dot_dimension_numbers<[1], [0], [0], [1], [0, 0, 1, 1], [], []>} : vector<32x8xf32>, vector<8x1xf32>, vector<32x1xf32> -> vector<32x1xf32>
    %16 = vector.broadcast %15 : vector<32x1xf32> to vector<32x256xf32>
    %17 = arith.subf %11, %16 : vector<32x256xf32>
    %18 = arith.mulf %17, %17 : vector<32x256xf32>
    %cst_20 = arith.constant dense<0.000000e+00> : vector<32xf32>
    %19 = vector.multi_reduction <add>, %18, %cst_20 [1] : vector<32x256xf32> to vector<32xf32>
    %20 = vector.shape_cast %19 : vector<32xf32> to vector<32x1xf32>
    %cst_21 = arith.constant dense<0.000000e+00> : vector<8x1xf32>
    %21 = tpu.matmul %0, %20, %cst_21 {dimension_numbers = #tpu.dot_dimension_numbers<[1], [0], [0], [1], [0, 0, 1, 1], [], []>} : vector<8x32xf32>, vector<32x1xf32>, vector<8x1xf32> -> vector<8x1xf32>
    %cst_22 = arith.constant dense<0.000000e+00> : vector<32x1xf32>
    %22 = tpu.matmul %1, %21, %cst_22 {dimension_numbers = #tpu.dot_dimension_numbers<[1], [0], [0], [1], [0, 0, 1, 1], [], []>} : vector<32x8xf32>, vector<8x1xf32>, vector<32x1xf32> -> vector<32x1xf32>
    %cst_23 = arith.constant 0.000000e+00 : f32
    %23 = vector.broadcast %cst_23 : f32 to vector<32x1xf32>
    %24 = arith.maximumf %22, %23 : vector<32x1xf32>
    %cst_24 = arith.constant 9.99999974E-6 : f32
    %25 = vector.broadcast %cst_24 : f32 to vector<32x1xf32>
    %26 = arith.addf %24, %25 : vector<32x1xf32>
    %27 = math.rsqrt %26 : vector<32x1xf32>
    %28 = arith.mulf %27, %2 : vector<32x1xf32>
    %29 = vector.broadcast %28 : vector<32x1xf32> to vector<32x256xf32>
    %30 = arith.mulf %17, %29 : vector<32x256xf32>
    %31 = vector.broadcast %3 : vector<32x1xf32> to vector<32x256xf32>
    %32 = arith.addf %30, %31 : vector<32x256xf32>
    %cst_25 = arith.constant dense<0.000000e+00> : vector<96x256xf32>
    %33 = tpu.matmul %4, %32, %cst_25 {dimension_numbers = #tpu.dot_dimension_numbers<[1], [0], [0], [1], [0, 0, 1, 1], [], []>} : vector<96x32xf32>, vector<32x256xf32>, vector<96x256xf32> -> vector<96x256xf32>
    %34 = vector.broadcast %5 : vector<96x1xf32> to vector<96x256xf32>
    %35 = arith.addf %33, %34 : vector<96x256xf32>
    %36 = vector.extract_strided_slice %35 {offsets = [0, 0], sizes = [8, 256], strides = [1, 1]} : vector<96x256xf32> to vector<8x256xf32>
    %37 = vector.extract_strided_slice %35 {offsets = [32, 0], sizes = [8, 256], strides = [1, 1]} : vector<96x256xf32> to vector<8x256xf32>
    %38 = vector.extract_strided_slice %35 {offsets = [64, 0], sizes = [8, 256], strides = [1, 1]} : vector<96x256xf32> to vector<8x256xf32>
    %cst_26 = arith.constant dense<0.000000e+00> : vector<256x256xf32>
    %39 = tpu.matmul %36, %37, %cst_26 {dimension_numbers = #tpu.dot_dimension_numbers<[0], [0], [1], [1], [0, 1, 1, 1], [], []>} : vector<8x256xf32>, vector<8x256xf32>, vector<256x256xf32> -> vector<256x256xf32>
    %cst_27 = arith.constant dense<0xFF800000> : vector<256xf32>
    %40 = vector.multi_reduction <maximumf>, %39, %cst_27 [1] : vector<256x256xf32> to vector<256xf32>
    %41 = vector.shape_cast %40 : vector<256xf32> to vector<256x1xf32>
    %42 = vector.broadcast %41 : vector<256x1xf32> to vector<256x256xf32>
    %43 = arith.subf %39, %42 : vector<256x256xf32>
    %44 = math.exp %43 : vector<256x256xf32>
    %cst_28 = arith.constant dense<0.000000e+00> : vector<8x256xf32>
    %45 = tpu.matmul %38, %44, %cst_28 {dimension_numbers = #tpu.dot_dimension_numbers<[1], [1], [0], [0], [0, 0, 1, 0], [], []>} : vector<8x256xf32>, vector<256x256xf32>, vector<8x256xf32> -> vector<8x256xf32>
    %cst_29 = arith.constant dense<0.000000e+00> : vector<1x256xf32>
    %46 = tpu.matmul %8, %44, %cst_29 {dimension_numbers = #tpu.dot_dimension_numbers<[1], [1], [0], [0], [0, 0, 1, 0], [], []>} : vector<1x256xf32>, vector<256x256xf32>, vector<1x256xf32> -> vector<1x256xf32>
    %cst_30 = arith.constant 1.000000e+00 : f32
    %47 = vector.broadcast %cst_30 : f32 to vector<1x256xf32>
    %48 = arith.divf %47, %46 : vector<1x256xf32>
    %49 = vector.broadcast %48 : vector<1x256xf32> to vector<8x256xf32>
    %50 = arith.mulf %45, %49 : vector<8x256xf32>
    %c0_31 = arith.constant 0 : index
    %c0_32 = arith.constant 0 : index
    %51 = vector.load %arg11[%c0_31, %c0_32] : memref<32x256xf32, #tpu.memory_space<vmem>>, vector<8x256xf32>
    tpu.vector_store %arg11[%c0_31, %c0_32], %50 {strides = array<i32>} : memref<32x256xf32, #tpu.memory_space<vmem>>, vector<8x256xf32>,
    %52 = vector.extract_strided_slice %35 {offsets = [8, 0], sizes = [8, 256], strides = [1, 1]} : vector<96x256xf32> to vector<8x256xf32>
    %53 = vector.extract_strided_slice %35 {offsets = [40, 0], sizes = [8, 256], strides = [1, 1]} : vector<96x256xf32> to vector<8x256xf32>
    %54 = vector.extract_strided_slice %35 {offsets = [72, 0], sizes = [8, 256], strides = [1, 1]} : vector<96x256xf32> to vector<8x256xf32>
    %cst_33 = arith.constant dense<0.000000e+00> : vector<256x256xf32>
    %55 = tpu.matmul %52, %53, %cst_33 {dimension_numbers = #tpu.dot_dimension_numbers<[0], [0], [1], [1], [0, 1, 1, 1], [], []>} : vector<8x256xf32>, vector<8x256xf32>, vector<256x256xf32> -> vector<256x256xf32>
    %cst_34 = arith.constant dense<0xFF800000> : vector<256xf32>
    %56 = vector.multi_reduction <maximumf>, %55, %cst_34 [1] : vector<256x256xf32> to vector<256xf32>
    %57 = vector.shape_cast %56 : vector<256xf32> to vector<256x1xf32>
    %58 = vector.broadcast %57 : vector<256x1xf32> to vector<256x256xf32>
    %59 = arith.subf %55, %58 : vector<256x256xf32>
    %60 = math.exp %59 : vector<256x256xf32>
    %cst_35 = arith.constant dense<0.000000e+00> : vector<8x256xf32>
    %61 = tpu.matmul %54, %60, %cst_35 {dimension_numbers = #tpu.dot_dimension_numbers<[1], [1], [0], [0], [0, 0, 1, 0], [], []>} : vector<8x256xf32>, vector<256x256xf32>, vector<8x256xf32> -> vector<8x256xf32>
    %cst_36 = arith.constant dense<0.000000e+00> : vector<1x256xf32>
    %62 = tpu.matmul %8, %60, %cst_36 {dimension_numbers = #tpu.dot_dimension_numbers<[1], [1], [0], [0], [0, 0, 1, 0], [], []>} : vector<1x256xf32>, vector<256x256xf32>, vector<1x256xf32> -> vector<1x256xf32>
    %cst_37 = arith.constant 1.000000e+00 : f32
    %63 = vector.broadcast %cst_37 : f32 to vector<1x256xf32>
    %64 = arith.divf %63, %62 : vector<1x256xf32>
    %65 = vector.broadcast %64 : vector<1x256xf32> to vector<8x256xf32>
    %66 = arith.mulf %61, %65 : vector<8x256xf32>
    %c8 = arith.constant 8 : index
    %c0_38 = arith.constant 0 : index
    %67 = vector.load %arg11[%c8, %c0_38] : memref<32x256xf32, #tpu.memory_space<vmem>>, vector<8x256xf32>
    tpu.vector_store %arg11[%c8, %c0_38], %66 {strides = array<i32>} : memref<32x256xf32, #tpu.memory_space<vmem>>, vector<8x256xf32>,
    %68 = vector.extract_strided_slice %35 {offsets = [16, 0], sizes = [8, 256], strides = [1, 1]} : vector<96x256xf32> to vector<8x256xf32>
    %69 = vector.extract_strided_slice %35 {offsets = [48, 0], sizes = [8, 256], strides = [1, 1]} : vector<96x256xf32> to vector<8x256xf32>
    %70 = vector.extract_strided_slice %35 {offsets = [80, 0], sizes = [8, 256], strides = [1, 1]} : vector<96x256xf32> to vector<8x256xf32>
    %cst_39 = arith.constant dense<0.000000e+00> : vector<256x256xf32>
    %71 = tpu.matmul %68, %69, %cst_39 {dimension_numbers = #tpu.dot_dimension_numbers<[0], [0], [1], [1], [0, 1, 1, 1], [], []>} : vector<8x256xf32>, vector<8x256xf32>, vector<256x256xf32> -> vector<256x256xf32>
    %cst_40 = arith.constant dense<0xFF800000> : vector<256xf32>
    %72 = vector.multi_reduction <maximumf>, %71, %cst_40 [1] : vector<256x256xf32> to vector<256xf32>
    %73 = vector.shape_cast %72 : vector<256xf32> to vector<256x1xf32>
    %74 = vector.broadcast %73 : vector<256x1xf32> to vector<256x256xf32>
    %75 = arith.subf %71, %74 : vector<256x256xf32>
    %76 = math.exp %75 : vector<256x256xf32>
    %cst_41 = arith.constant dense<0.000000e+00> : vector<8x256xf32>
    %77 = tpu.matmul %70, %76, %cst_41 {dimension_numbers = #tpu.dot_dimension_numbers<[1], [1], [0], [0], [0, 0, 1, 0], [], []>} : vector<8x256xf32>, vector<256x256xf32>, vector<8x256xf32> -> vector<8x256xf32>
    %cst_42 = arith.constant dense<0.000000e+00> : vector<1x256xf32>
    %78 = tpu.matmul %8, %76, %cst_42 {dimension_numbers = #tpu.dot_dimension_numbers<[1], [1], [0], [0], [0, 0, 1, 0], [], []>} : vector<1x256xf32>, vector<256x256xf32>, vector<1x256xf32> -> vector<1x256xf32>
    %cst_43 = arith.constant 1.000000e+00 : f32
    %79 = vector.broadcast %cst_43 : f32 to vector<1x256xf32>
    %80 = arith.divf %79, %78 : vector<1x256xf32>
    %81 = vector.broadcast %80 : vector<1x256xf32> to vector<8x256xf32>
    %82 = arith.mulf %77, %81 : vector<8x256xf32>
    %c16 = arith.constant 16 : index
    %c0_44 = arith.constant 0 : index
    %83 = vector.load %arg11[%c16, %c0_44] : memref<32x256xf32, #tpu.memory_space<vmem>>, vector<8x256xf32>
    tpu.vector_store %arg11[%c16, %c0_44], %82 {strides = array<i32>} : memref<32x256xf32, #tpu.memory_space<vmem>>, vector<8x256xf32>,
    %84 = vector.extract_strided_slice %35 {offsets = [24, 0], sizes = [8, 256], strides = [1, 1]} : vector<96x256xf32> to vector<8x256xf32>
    %85 = vector.extract_strided_slice %35 {offsets = [56, 0], sizes = [8, 256], strides = [1, 1]} : vector<96x256xf32> to vector<8x256xf32>
    %86 = vector.extract_strided_slice %35 {offsets = [88, 0], sizes = [8, 256], strides = [1, 1]} : vector<96x256xf32> to vector<8x256xf32>
    %cst_45 = arith.constant dense<0.000000e+00> : vector<256x256xf32>
    %87 = tpu.matmul %84, %85, %cst_45 {dimension_numbers = #tpu.dot_dimension_numbers<[0], [0], [1], [1], [0, 1, 1, 1], [], []>} : vector<8x256xf32>, vector<8x256xf32>, vector<256x256xf32> -> vector<256x256xf32>
    %cst_46 = arith.constant dense<0xFF800000> : vector<256xf32>
    %88 = vector.multi_reduction <maximumf>, %87, %cst_46 [1] : vector<256x256xf32> to vector<256xf32>
    %89 = vector.shape_cast %88 : vector<256xf32> to vector<256x1xf32>
    %90 = vector.broadcast %89 : vector<256x1xf32> to vector<256x256xf32>
    %91 = arith.subf %87, %90 : vector<256x256xf32>
    %92 = math.exp %91 : vector<256x256xf32>
    %cst_47 = arith.constant dense<0.000000e+00> : vector<8x256xf32>
    %93 = tpu.matmul %86, %92, %cst_47 {dimension_numbers = #tpu.dot_dimension_numbers<[1], [1], [0], [0], [0, 0, 1, 0], [], []>} : vector<8x256xf32>, vector<256x256xf32>, vector<8x256xf32> -> vector<8x256xf32>
    %cst_48 = arith.constant dense<0.000000e+00> : vector<1x256xf32>
    %94 = tpu.matmul %8, %92, %cst_48 {dimension_numbers = #tpu.dot_dimension_numbers<[1], [1], [0], [0], [0, 0, 1, 0], [], []>} : vector<1x256xf32>, vector<256x256xf32>, vector<1x256xf32> -> vector<1x256xf32>
    %cst_49 = arith.constant 1.000000e+00 : f32
    %95 = vector.broadcast %cst_49 : f32 to vector<1x256xf32>
    %96 = arith.divf %95, %94 : vector<1x256xf32>
    %97 = vector.broadcast %96 : vector<1x256xf32> to vector<8x256xf32>
    %98 = arith.mulf %93, %97 : vector<8x256xf32>
    %c24 = arith.constant 24 : index
    %c0_50 = arith.constant 0 : index
    %99 = vector.load %arg11[%c24, %c0_50] : memref<32x256xf32, #tpu.memory_space<vmem>>, vector<8x256xf32>
    tpu.vector_store %arg11[%c24, %c0_50], %98 {strides = array<i32>} : memref<32x256xf32, #tpu.memory_space<vmem>>, vector<8x256xf32>,
    %c0_51 = arith.constant 0 : index
    %c0_52 = arith.constant 0 : index
    %100 = vector.load %arg11[%c0_51, %c0_52] : memref<32x256xf32, #tpu.memory_space<vmem>>, vector<32x256xf32>
    %cst_53 = arith.constant dense<0.000000e+00> : vector<32x256xf32>
    %101 = tpu.matmul %6, %100, %cst_53 {dimension_numbers = #tpu.dot_dimension_numbers<[1], [0], [0], [1], [0, 0, 1, 1], [], []>} : vector<32x32xf32>, vector<32x256xf32>, vector<32x256xf32> -> vector<32x256xf32>
    %102 = vector.broadcast %7 : vector<32x1xf32> to vector<32x256xf32>
    %103 = arith.addf %101, %102 : vector<32x256xf32>
    %104 = arith.addf %11, %103 : vector<32x256xf32>
    %105 = arith.index_cast %c0_i32 : i32 to index
    %c0_54 = arith.constant 0 : index
    %c0_55 = arith.constant 0 : index
    %106 = vector.load %arg10[%105, %c0_54, %c0_55] : memref<1x32x256xf32, #tpu.memory_space<vmem>>, vector<1x32x256xf32>
    %107 = vector.shape_cast %106 : vector<1x32x256xf32> to vector<32x256xf32>
    %108 = vector.shape_cast %104 : vector<32x256xf32> to vector<1x32x256xf32>
    tpu.vector_store %arg10[%105, %c0_54, %c0_55], %108 {strides = array<i32>} : memref<1x32x256xf32, #tpu.memory_space<vmem>>, vector<1x32x256xf32>,
    %c1_i32 = arith.constant 1 : i32
    return
  }
  func.func @transform_0(%arg0: i32) -> (i32, i32, i32) {
    %c0_i32 = arith.constant 0 : i32
    %c0_i32_0 = arith.constant 0 : i32
    %c0_i32_1 = arith.constant 0 : i32
    return %arg0, %c0_i32, %c0_i32_0 : i32, i32, i32
  }
  func.func @transform_1(%arg0: i32) -> (i32, i32) {
    %c0_i32 = arith.constant 0 : i32
    %c0_i32_0 = arith.constant 0 : i32
    %c0_i32_1 = arith.constant 0 : i32
    return %c0_i32, %c0_i32_0 : i32, i32
  }
  func.func @transform_2(%arg0: i32) -> (i32, i32) {
    %c0_i32 = arith.constant 0 : i32
    %c0_i32_0 = arith.constant 0 : i32
    %c0_i32_1 = arith.constant 0 : i32
    return %c0_i32, %c0_i32_0 : i32, i32
  }
  func.func @transform_3(%arg0: i32) -> (i32, i32) {
    %c0_i32 = arith.constant 0 : i32
    %c0_i32_0 = arith.constant 0 : i32
    %c0_i32_1 = arith.constant 0 : i32
    return %c0_i32, %c0_i32_0 : i32, i32
  }
  func.func @transform_4(%arg0: i32) -> (i32, i32) {
    %c0_i32 = arith.constant 0 : i32
    %c0_i32_0 = arith.constant 0 : i32
    %c0_i32_1 = arith.constant 0 : i32
    return %c0_i32, %c0_i32_0 : i32, i32
  }
  func.func @transform_5(%arg0: i32) -> (i32, i32) {
    %c0_i32 = arith.constant 0 : i32
    %c0_i32_0 = arith.constant 0 : i32
    %c0_i32_1 = arith.constant 0 : i32
    return %c0_i32, %c0_i32_0 : i32, i32
  }
  func.func @transform_6(%arg0: i32) -> (i32, i32) {
    %c0_i32 = arith.constant 0 : i32
    %c0_i32_0 = arith.constant 0 : i32
    %c0_i32_1 = arith.constant 0 : i32
    return %c0_i32, %c0_i32_0 : i32, i32
  }
  func.func @transform_7(%arg0: i32) -> (i32, i32) {
    %c0_i32 = arith.constant 0 : i32
    %c0_i32_0 = arith.constant 0 : i32
    %c0_i32_1 = arith.constant 0 : i32
    return %c0_i32, %c0_i32_0 : i32, i32
  }
  func.func @transform_8(%arg0: i32) -> (i32, i32) {
    %c0_i32 = arith.constant 0 : i32
    %c0_i32_0 = arith.constant 0 : i32
    %c0_i32_1 = arith.constant 0 : i32
    return %c0_i32, %c0_i32_0 : i32, i32
  }
  func.func @transform_9(%arg0: i32) -> (i32, i32, i32) {
    %c0_i32 = arith.constant 0 : i32
    %c0_i32_0 = arith.constant 0 : i32
    %c0_i32_1 = arith.constant 0 : i32
    return %arg0, %c0_i32, %c0_i32_0 : i32, i32, i32
  }
}

</mosaic_0001>

<bundles_post_ra>
// kernel: tpu_custom_call.1
= control target key start
LH: loop header
LB: loop body
LE: loop exit
PB: predicated region body
PF: predicated region fallthrough
CT: control target
= control target key end

     0   :  { %14 = vsyncpa [#allocation4], 0  ;;  %s7620_s0 = inlined_call_operand.vmem [shape: f32[2,32,256], index: 0, kind: input, shape index: {}]   ;;  %s7621_s1 = inlined_call_operand.vmem [shape: f32[8,32], index: 1, kind: input, shape index: {}]   ;;  %s7622_s2 = inlined_call_operand.vmem [shape: f32[32,8], index: 2, kind: input, shape index: {}]   ;;  %s7623_s3 = inlined_call_operand.vmem [shape: f32[32,1], index: 3, kind: input, shape index: {}]   ;;  %s7624_s4 = inlined_call_operand.vmem [shape: f32[32,1], index: 4, kind: input, shape index: {}]   ;;  %s7625_s5 = inlined_call_operand.vmem [shape: f32[96,32], index: 5, kind: input, shape index: {}]   ;;  %s7626_s6 = inlined_call_operand.vmem [shape: f32[96,1], index: 6, kind: input, shape index: {}]   ;;  %s7627_s7 = inlined_call_operand.vmem [shape: f32[32,32], index: 7, kind: input, shape index: {}]   ;;  %s7628_s8 = inlined_call_operand.vmem [shape: f32[32,1], index: 8, kind: input, shape index: {}]   ;;  %s7629_s9 = inlined_call_operand.hbm [shape: f32[2,32,256], index: 9, kind: output, shape index: {}]  }
   0x1   :  { %16 = vsyncpa [#allocation4 + $0x1], 0  ;;  %s5685_s30 = smov 0   ;;  %s5687_s10 = smov 0  }
   0x2   :  { %s5689_s11 = smov 0   ;;  %s5691_s12 = smov 0  }
   0x3 LB: > { %s5706_s13 = sadd.s32 4294967295, %s5626_s12   ;;  %s4749_s14 = sadd.s32 4294967294, %s5626_s12   ;;  %s5626_s12 = sphi %s5691_s12, %s7886_s12   ;;  %s5622_s11 = sphi %s5689_s11, %s7885_s11   ;;  %s5618_s10 = sphi %s5687_s10, %s7884_s10   ;;  %s5614_s30 = sphi %s5685_s30, %s7883_s30  }
   0x4   : > { %s5710_s15 = sadd.s32 1, %s5626_s12   ;;  %s223_s16 = sadd.s32 1, %s5622_s11 }
   0x5   : > { %s220_s17 = ssub.s32 %s5626_s12, %s5710_s15  ;;  %p233_p0 = scmp.ne.s32.totalorder %s5622_s11, %s5618_s10 }
   0x6   : > { %p221_p1 = scmp.eq.s32.totalorder %s220_s17, 0  ;;  %p234_p2 = scmp.eq.s32.totalorder %s5706_s13, 1 }
   0x7   : > { %p239_p3 = scmp.ne.s32.totalorder %s5618_s10, %s5614_s30  ;;  %p240_p4 = scmp.eq.s32.totalorder %s4749_s14, 1 }
   0x8   : > { %s5721_s18 = scalar_select %p221_p1, %s5622_s11, %s223_s16  }
   0x9   : > { %p5723_p5 = por %p234_p2, %p233_p0  ;;  %p5727_p6 = por %p240_p4, %p239_p3 }
   0xa   : > { %p4752_p7 = scmp.ge.s32.totalorder %s5626_s12, 1  ;;  %p290_p8 = scmp.lt.s32.totalorder %s5626_s12, 3 }
   0xc   : > { %p291_p9 = pnand %p4752_p7, %p290_p8 }
   0xe   : > { %294 = sbr.rel (%p291_p9) target bundleno = 4536 (0x11b8), region = 56 }
  0x13   : > { %p326_p10 = scmp.lt.s32.totalorder %s5706_s13, 1  ;;  %v7630_v0 = vmov 0.0   ;;  %vm5629_vm0 = vmmov 0   ;;  %v5774_v17 = vld [vmem:[%s7621_s1] sm:$0xff]  ;;  %vm396_vm1 = vcmask 261120   ;;  %vm470_vm2 = vcmask 64512  }
  0x14   : > { %4937 = vmatprep.subr.mxu1 %v7630_v0  ;;  %4945 = vmatprep.mubr.msk.f32.mxu1 %vm5629_vm0, %v7630_v0  ;;  %v332_v18 = vld [vmem:[%s7622_s2] sm:$0xff]  ;;  %v5787_v20 = vld [vmem:[%s7622_s2 + $0x8] sm:$0xff]  ;;  %v5792_v21 = vld [vmem:[%s7622_s2 + $0x10] sm:$0xff]  ;;  %v5630_v24 = vmov 0   ;;  %s323_s28 = sand.u32 1, %s5618_s10   ;;  %s4916_s16 = sshll.u32 %s5706_s13, 10 }
  0x15   : > { %s327_s21 = scalar_select %p326_p10, %s5706_s13, 1  ;;  %4969 = vmatprep.mubr.msk.f32.mxu0 %vm470_vm2, %v332_v18  ;;  %v5802_v23 = vld [vmem:[%s7622_s2 + $0x18] sm:$0xff]  ;;  %5021 = vset.pattern.permute.xlu1 %v5630_v24 }
  0x16   : > { %5020 = vset.pattern.permute.xlu0 %v5630_v24  ;;  %v343_v53 = vld [vmem:[%s7624_s4 + $0x18] sm:$0xff]  ;;  %v356_v24 = vld [vmem:[%s7626_s6] sm:$0xff]  ;;  %s4753_s29 = sshll.u32 %s323_s28, 6  ;;  %s7571_s23 = scalar_lea.hbm %s7629_s9, %s4916_s16 }
  0x17   : > { %s4915_s22 = sshll.u32 %s327_s21, 6  ;;  %s7552_s14 = scalar_lea.vmem [#allocation3], %s4753_s29 }
  0x18   : > { %s5739_s25 = scalar_lea.vmem %s7620_s0, %s4915_s22  ;;  %s4687_s17 = sshll.u32 %s7552_s14, 4  ;;  %s7573_s17 = int_to_ptr.vmem [resolvable:$true] %s4687_s17 }
  0x19   : > { %v5742_v1 = vld [vmem:[%s5739_s25 + $0x30] sm:$0xff]  ;;  %v5745_v2 = vld [vmem:[%s5739_s25 + $0x38] sm:$0xff]  ;;  %v5748_v3 = vld [vmem:[%s5739_s25 + $0x20] sm:$0xff]  ;;  %s7580_s13 = scalar_lea.sflag [#allocation4], %s323_s28  ;;  %s5566_s24 = scalar_lea.vmem %s7573_s17, 1024 }
  0x1a   : > { %v393_v4 = vadd.f32 %v5745_v2, %v5742_v1  ;;  %v5753_v5 = vld [vmem:[%s5739_s25 + $0x28] sm:$0xff]  ;;  %v378_v6 = vld [vmem:[%s5739_s25 + $0x10] sm:$0xff]  ;;  %v379_v7 = vld [vmem:[%s5739_s25 + $0x18] sm:$0xff]  ;;  %p5567_p11 = scmp.ne.s32.totalorder %s7573_s17, %s5566_s24  ;;  %s5632_s26 = smov [#allocation3]  }
  0x1b   : > { %v387_v8 = vadd.f32 %v379_v7, %v378_v6  ;;  %v5758_v9 = vld [vmem:[%s5739_s25] sm:$0xff]  ;;  %v5761_v10 = vld [vmem:[%s5739_s25 + $0x8] sm:$0xff]  ;;  %v390_v11 = vadd.f32 %v5753_v5, %v5748_v3  ;;  %s5570_s27 = sshll.u32 %s5632_s26, 4  ;;  %s5571_s27 = int_to_ptr.vmem [resolvable:$false] %s5570_s27 }
  0x1c   : > { %394 = vadd.xlane.f32.xlu0 %v393_v4  ;;  %v384_v12 = vadd.f32 %v5761_v10, %v5758_v9  ;;  %p5568_p12 = pnand %p5567_p11, %p5723_p5  ;;  %s5572_s29 = scalar_lea.vmem %s5571_s27, 2048 }
  0x1d   : > { %388 = vadd.xlane.f32.xlu1 %v387_v8  ;;  %p5573_p0 = scmp.lt.s32.totalorder %s7573_s17, %s5571_s27  ;;  %p5574_p1 = scmp.lt.s32.totalorder %s5572_s29, %s5566_s24 }
  0x1e   : > { %p5569_p13 = pneg %p5568_p12 }
  0x1f   : > { %p5575_p2 = por %p5574_p1, %p5573_p0 }
  0x20   : > { %391 = vadd.xlane.f32.xlu0 %v390_v11 }
  0x21   : > { %385 = vadd.xlane.f32.xlu1 %v384_v12  ;;  %v339_v12 = vld [vmem:[%s7623_s3 + $0x18] sm:$0xff]  ;;  %p5576_p3 = pnand %p5575_p2, %p5569_p13 }
  0xa5   : > { %v395_v13 = vpop.xlane.xlu0 %394 }
  0xa6   : > { %4938 = vmatpush3.msra.mxu1 %v395_v13  ;;  %v389_v14 = vpop.xlane.xlu1 %388 }
  0xa7   : > { %4939 = vmatprep.subr.mxu1 %v7630_v0 }
  0xa9   : > { %v392_v15 = vpop.xlane.xlu0 %391 }
  0xaa   : > { %4940 = vmatpush3.msra.mxu1 %v392_v15  ;;  %v386_v16 = vpop.xlane.xlu1 %385 }
  0xab   : > { %4941 = vmatprep.subr.mxu1 %v7630_v0 }
  0xac   : > { %4942 = vmatpush3.msra.mxu1 %v389_v14  ;;  %v338_v14 = vld [vmem:[%s7623_s3 + $0x10] sm:$0xff] }
  0xad   : > { %4943 = vmatprep.subr.mxu1 %v7630_v0 }
  0xae   : > { %4944 = vmatpush3.msra.mxu1 %v386_v16 }
  0xaf   : > { %4946 = vmatmul.mubr.msk.f32.vlgmr.msra.gmra.mxu1 %vm396_vm1, %v5774_v17 }
  0xb0   : > { %4950 = vmatprep.mubr.msk.f32.mxu1 %vm470_vm2, %v332_v18 }
 0x16f   : > { %v466_v19 = vpop.f32.mrf.mxu1 }
 0x170   : > { %4948 = vmatprep.subr.mxu1 %v466_v19 }
 0x171   : > { %v4947_v22 = vpop.f32.mrf.mxu1  ;;  %4949 = vmatpush3.msra.mxu1 %v466_v19  ;;  %v342_v19 = vld [vmem:[%s7624_s4 + $0x10] sm:$0xff] }
 0x172   : > { %4951 = vmatmul.mubr.msk.f32.vlgmr.msra.gmra.mxu1 %vm470_vm2, %v5787_v20  ;;  %4956 = vmatprep.subr.mxu1 %v7630_v0  ;;  %v341_v22 = vld [vmem:[%s7624_s4 + $0x8] sm:$0xff] }
 0x173   : > { %4953 = vmatprep.mubr.msk.f32.mxu1 %vm470_vm2, %v5792_v21 }
 0x176   : > { %4954 = vmatmul.mubr.msk.f32.gmra.mxu1 %vm470_vm2, %v5802_v23 }
 0x177   : > { %4964 = vmatprep.mubr.msk.f32.mxu1 %vm5629_vm0, %v7630_v0 }
 0x232   : > { %v4952_v25 = vpop.f32.mrf.mxu1 }
 0x233   : > { %575 = vperm.xlu1 %5021, %v4952_v25   ;;  %v360_v25 = vld [vmem:[%s7626_s6 + $0x20] sm:$0xff] }
 0x234   : > { %v549_v26 = vpop.f32.mrf.mxu1 }
 0x236   : > { %v4955_v27 = vpop.f32.mrf.mxu1 }
 0x237   : > { %585 = vperm.xlu0 %5020, %v4955_v27  }
 0x238   : > { %v559_v28 = vpop.f32.mrf.mxu1 }
 0x239   : > { %580 = vperm.xlu1 %5021, %v559_v28  }
 0x23d   : > { %570 = vperm.xlu1 %5021, %v549_v26  }
 0x2ae   : > { %v576_v29 = vpop.permute.xlu1 %575 }
 0x2af   : > { %v5808_v30 = vsub.f32 %v378_v6, %v576_v29  ;;  %v5810_v32 = vsub.f32 %v379_v7, %v576_v29 }
 0x2b1   : > { %v598_v40 = vmul.f32 %v5808_v30, %v5808_v30  ;;  %v599_v44 = vmul.f32 %v5810_v32, %v5810_v32 }
 0x2b2   : > { %v586_v31 = vpop.permute.xlu0 %585 }
 0x2b3   : > { %v5813_v33 = vsub.f32 %v5742_v1, %v586_v31  ;;  %v5816_v34 = vsub.f32 %v5745_v2, %v586_v31  ;;  %v607_v49 = vadd.f32 %v599_v44, %v598_v40 }
 0x2b4   : > { %v581_v35 = vpop.permute.xlu1 %580 }
 0x2b5   : > { %v5819_v36 = vsub.f32 %v5748_v3, %v581_v35  ;;  %v5822_v37 = vsub.f32 %v5753_v5, %v581_v35  ;;  %v602_v38 = vmul.f32 %v5813_v33, %v5813_v33  ;;  %v603_v39 = vmul.f32 %v5816_v34, %v5816_v34 }
 0x2b7   : > { %v613_v41 = vadd.f32 %v603_v39, %v602_v38  ;;  %v600_v42 = vmul.f32 %v5819_v36, %v5819_v36  ;;  %v601_v43 = vmul.f32 %v5822_v37, %v5822_v37 }
 0x2b8   : > { %v571_v45 = vpop.permute.xlu1 %570 }
 0x2b9   : > { %v5837_v46 = vsub.f32 %v5758_v9, %v571_v45  ;;  %v5840_v47 = vsub.f32 %v5761_v10, %v571_v45  ;;  %614 = vadd.xlane.f32.xlu1 %v613_v41  ;;  %v610_v48 = vadd.f32 %v601_v43, %v600_v42  ;;  %v337_v9 = vld [vmem:[%s7623_s3 + $0x8] sm:$0xff] }
 0x2bb   : > { %611 = vadd.xlane.f32.xlu0 %v610_v48  ;;  %v596_v50 = vmul.f32 %v5837_v46, %v5837_v46  ;;  %v597_v51 = vmul.f32 %v5840_v47, %v5840_v47 }
 0x2bd   : > { %608 = vadd.xlane.f32.xlu1 %v607_v49  ;;  %v604_v52 = vadd.f32 %v597_v51, %v596_v50 }
 0x2c1   : > { %605 = vadd.xlane.f32.xlu1 %v604_v52 }
 0x2d2   : > { %832 = vperm.xlu1 %5021, %v343_v53  }
 0x342   : > { %v615_v54 = vpop.xlane.xlu1 %614 }
 0x343   : > { %4957 = vmatpush3.msra.mxu1 %v615_v54  ;;  %v348_v54 = vld [vmem:[%s7625_s5 + $0x20] sm:$0xff] }
 0x344   : > { %v612_v55 = vpop.xlane.xlu0 %611  ;;  %4958 = vmatprep.subr.mxu1 %v7630_v0 }
 0x345   : > { %4959 = vmatpush3.msra.mxu1 %v612_v55 }
 0x346   : > { %4960 = vmatprep.subr.mxu1 %v7630_v0  ;;  %v609_v56 = vpop.xlane.xlu1 %608 }
 0x347   : > { %4961 = vmatpush3.msra.mxu1 %v609_v56 }
 0x348   : > { %4962 = vmatprep.subr.mxu1 %v7630_v0 }
 0x34a   : > { %v606_v57 = vpop.xlane.xlu1 %605 }
 0x34b   : > { %4963 = vmatpush3.msra.mxu1 %v606_v57 }
 0x34c   : > { %4965 = vmatmul.mubr.msk.f32.vlgmr.msra.gmra.mxu1 %vm396_vm1, %v5774_v17 }
 0x34d   : > { %1003 = vmatprep.mubr.f32.mxu1 %v7630_v0 }
 0x34e   : > { %v833_v26 = vpop.permute.xlu1 %832 }
 0x40c   : > { %v682_v58 = vpop.f32.mrf.mxu1 }
 0x40d   : > { %4967 = vmatprep.subr.mxu0 %v682_v58 }
 0x40e   : > { %v4966_v59 = vpop.f32.mrf.mxu1  ;;  %4968 = vmatpush3.msra.mxu0 %v682_v58 }
 0x40f   : > { %4970 = vmatmul.mubr.msk.f32.vlgmr.msra.gmra.mxu0 %vm470_vm2, %v5787_v20  ;;  %v336_v20 = vld [vmem:[%s7623_s3] sm:$0xff] }
 0x410   : > { %4972 = vmatprep.mubr.msk.f32.mxu0 %vm470_vm2, %v5792_v21 }
 0x413   : > { %4973 = vmatmul.mubr.msk.f32.gmra.mxu0 %vm470_vm2, %v5802_v23  ;;  %v340_v23 = vld [vmem:[%s7624_s4] sm:$0xff] }
 0x414   : > { %1300 = vmatprep.mubr.f32.mxu0 %v7630_v0 }
 0x4cf   : > { %v4971_v60 = vpop.f32.mrf.mxu0 }
 0x4d0   : > { %v772_v61 = vmax.f32 %v4971_v60, 0.0 }
 0x4d1   : > { %v752_v62 = vpop.f32.mrf.mxu0 }
 0x4d2   : > { %v776_v63 = vadd.f32 1e-05, %v772_v61  ;;  %v771_v2 = vmax.f32 %v752_v62, 0.0 }
 0x4d3   : > { %v4974_v1 = vpop.f32.mrf.mxu0 }
 0x4d4   : > { %5022 = vrsqrt.f32 %v776_v63  ;;  %v774_v3 = vmax.f32 %v4974_v1, 0.0  ;;  %v775_v7 = vadd.f32 1e-05, %v771_v2 }
 0x4d5   : > { %v762_v4 = vpop.f32.mrf.mxu0 }
 0x4d6   : > { %v778_v5 = vadd.f32 1e-05, %v774_v3  ;;  %v773_v6 = vmax.f32 %v762_v4, 0.0 }
 0x4d8   : > { %5024 = vrsqrt.f32 %v778_v5  ;;  %v777_v8 = vadd.f32 1e-05, %v773_v6 }
 0x4da   : > { %5026 = vrsqrt.f32 %v777_v8 }
 0x4db   : > { %5028 = vrsqrt.f32 %v775_v7 }
 0x4e1   : > { %v5023_v10 = vpop.eup %5022 }
 0x4e2   : > { %v784_v11 = vmul.f32 %v5023_v10, %v337_v9 }
 0x4e4   : > { %794 = vperm.xlu1 %5021, %v784_v11  }
 0x4e5   : > { %v5025_v13 = vpop.eup %5024 }
 0x4e6   : > { %v786_v15 = vmul.f32 %v5025_v13, %v339_v12 }
 0x4e7   : > { %v5027_v16 = vpop.eup %5026 }
 0x4e8   : > { %804 = vperm.xlu1 %5021, %v786_v15   ;;  %v785_v17 = vmul.f32 %v5027_v16, %v338_v14  ;;  %v5029_v18 = vpop.eup %5028 }
 0x4e9   : > { %v783_v21 = vmul.f32 %v5029_v18, %v336_v20 }
 0x4ea   : > { %799 = vperm.xlu0 %5020, %v785_v17  }
 0x4ec   : > { %827 = vperm.xlu1 %5021, %v342_v19  }
 0x4ee   : > { %789 = vperm.xlu0 %5020, %v783_v21  }
 0x4f0   : > { %822 = vperm.xlu1 %5021, %v341_v22  }
 0x4f2   : > { %817 = vperm.xlu0 %5020, %v340_v23  }
 0x4f4   : > { %845 = vperm.xlu1 %5021, %v356_v24  }
 0x4f6   : > { %865 = vperm.xlu0 %5020, %v360_v25  }
 0x55f   : > { %v795_v27 = vpop.permute.xlu1 %794 }
 0x560   : > { %v809_v48 = vmul.f32 %v795_v27, %v5808_v30  ;;  %v810_v49 = vmul.f32 %v795_v27, %v5810_v32  ;;  %v344_v30 = vld [vmem:[%s7625_s5] sm:$0xff]  ;;  %v345_v32 = vld [vmem:[%s7625_s5 + $0x8] sm:$0xff] }
 0x563   : > { %v805_v28 = vpop.permute.xlu1 %804 }
 0x564   : > { %v813_v29 = vmul.f32 %v805_v28, %v5813_v33  ;;  %v814_v31 = vmul.f32 %v805_v28, %v5816_v34 }
 0x565   : > { %v800_v35 = vpop.permute.xlu0 %799 }
 0x566   : > { %v841_v38 = vadd.f32 %v833_v26, %v813_v29  ;;  %v842_v39 = vadd.f32 %v833_v26, %v814_v31  ;;  %v811_v40 = vmul.f32 %v800_v35, %v5819_v36  ;;  %v812_v41 = vmul.f32 %v800_v35, %v5822_v37 }
 0x567   : > { %v828_v42 = vpop.permute.xlu1 %827 }
 0x568   : > { %v839_v43 = vadd.f32 %v828_v42, %v811_v40  ;;  %v840_v44 = vadd.f32 %v828_v42, %v812_v41  ;;  %963 = vmatprep.subr.mxu1 %v842_v39 }
 0x569   : > { %v790_v45 = vpop.permute.xlu0 %789  ;;  %964 = vmatpush1.msra.mxu1 %v841_v38 }
 0x56a   : > { %965 = vmatprep.subr.mxu1 %v840_v44  ;;  %v807_v34 = vmul.f32 %v790_v45, %v5837_v46  ;;  %v808_v50 = vmul.f32 %v790_v45, %v5840_v47  ;;  %v346_v46 = vld [vmem:[%s7625_s5 + $0x10] sm:$0xff]  ;;  %v347_v47 = vld [vmem:[%s7625_s5 + $0x18] sm:$0xff] }
 0x56b   : > { %966 = vmatpush1.msra.mxu1 %v839_v43  ;;  %v823_v33 = vpop.permute.xlu1 %822 }
 0x56c   : > { %v837_v36 = vadd.f32 %v823_v33, %v809_v48  ;;  %v838_v51 = vadd.f32 %v823_v33, %v810_v49  ;;  %v349_v48 = vld [vmem:[%s7625_s5 + $0x28] sm:$0xff]  ;;  %v350_v49 = vld [vmem:[%s7625_s5 + $0x30] sm:$0xff]  ;;  %v351_v33 = vld [vmem:[%s7625_s5 + $0x38] sm:$0xff] }
 0x56d   : > { %v818_v37 = vpop.permute.xlu0 %817 }
 0x56e   : > { %v835_v52 = vadd.f32 %v818_v37, %v807_v34  ;;  %v836_v53 = vadd.f32 %v818_v37, %v808_v50  ;;  %967 = vmatprep.subr.mxu1 %v838_v51  ;;  %v352_v34 = vld [vmem:[%s7625_s5 + $0x40] sm:$0xff] }
 0x56f   : > { %968 = vmatpush1.msra.mxu1 %v837_v36  ;;  %v846_v55 = vpop.permute.xlu1 %845 }
 0x570   : > { %969 = vmatprep.subr.mxu1 %v836_v53 }
 0x571   : > { %970 = vmatpush1.msra.mxu1 %v835_v52  ;;  %v866_v4 = vpop.permute.xlu0 %865 }
 0x572   : > { %4766 = vmatmul.mubr.msk.f32.vlgmr.msra.gmra.mxu1 %vm396_vm1, %v344_v30 }
 0x573   : > { %1009 = vmatprep.mubr.f32.mxu1 %v7630_v0 }
 0x576   : > { %4767 = vmatmul.mubr.msk.f32.gmra.mxu1 %vm396_vm1, %v345_v32 }
 0x577   : > { %1015 = vmatprep.mubr.f32.mxu1 %v7630_v0 }
 0x57a   : > { %4768 = vmatmul.mubr.msk.f32.gmra.mxu1 %vm396_vm1, %v346_v46 }
 0x57b   : > { %1021 = vmatprep.mubr.f32.mxu1 %v7630_v0 }
 0x57e   : > { %4769 = vmatmul.mubr.msk.f32.gmra.mxu1 %vm396_vm1, %v347_v47 }
 0x57f   : > { %1027 = vmatprep.mubr.f32.mxu1 %v7630_v0 }
 0x582   : > { %4770 = vmatmul.mubr.msk.f32.gmra.mxu1 %vm396_vm1, %v348_v54 }
 0x583   : > { %1033 = vmatprep.mubr.f32.mxu1 %v7630_v0 }
 0x586   : > { %4771 = vmatmul.mubr.msk.f32.gmra.mxu1 %vm396_vm1, %v349_v48 }
 0x587   : > { %1039 = vmatprep.mubr.f32.mxu1 %v7630_v0 }
 0x58a   : > { %4772 = vmatmul.mubr.msk.f32.gmra.mxu1 %vm396_vm1, %v350_v49 }
 0x58b   : > { %1045 = vmatprep.mubr.f32.mxu1 %v7630_v0 }
 0x58e   : > { %4773 = vmatmul.mubr.msk.f32.gmra.mxu1 %vm396_vm1, %v351_v33 }
 0x58f   : > { %1051 = vmatprep.mubr.f32.mxu1 %v7630_v0 }
 0x592   : > { %4774 = vmatmul.mubr.msk.f32.gmra.mxu1 %vm396_vm1, %v352_v34 }
 0x593   : > { %1057 = vmatprep.mubr.f32.mxu1 %v7630_v0 }
 0x632   : > { %v1005_v56 = vpop.f32.mrf.mxu1 }
 0x633   : > { %v1006_v57 = vadd.f32 %v1005_v56, %v846_v55 }
 0x634   : > { %v1007_v58 = vpop.f32.mrf.mxu1 }
 0x635   : > { %v1008_v59 = vadd.f32 %v1007_v58, %v846_v55  ;;  %1076 = vxpose.xlu1.b32.start.end [1/1] (short) %v1006_v57, 128 }
 0x636   : > { %v5922_v60 = vpop.f32.mrf.mxu1 }
 0x637   : > { %7704 = vst [vmem:[#allocation6_spill] sm:$0xff] %v5922_v60  ;;  %1108 = vxpose.xlu0.b32.start.end [1/1] (short) %v1008_v59, 128 }
 0x638   : > { %v5924_v61 = vpop.f32.mrf.mxu1 }
 0x639   : > { %7705 = vst [vmem:[#allocation7_spill] sm:$0xff] %v5924_v61 }
 0x63a   : > { %v5926_v62 = vpop.f32.mrf.mxu1 }
 0x63b   : > { %7706 = vst [vmem:[#allocation8_spill] sm:$0xff] %v5926_v62 }
 0x63c   : > { %v5928_v63 = vpop.f32.mrf.mxu1 }
 0x63d   : > { %7707 = vst [vmem:[#allocation9_spill] sm:$0xff] %v5928_v63 }
 0x63e   : > { %v5930_v1 = vpop.f32.mrf.mxu1 }
 0x63f   : > { %7708 = vst [vmem:[#allocation10_spill] sm:$0xff] %v5930_v1 }
 0x640   : > { %v5932_v2 = vpop.f32.mrf.mxu1 }
 0x641   : > { %7709 = vst [vmem:[#allocation11_spill] sm:$0xff] %v5932_v2 }
 0x642   : > { %v1029_v3 = vpop.f32.mrf.mxu1 }
 0x643   : > { %v1030_v7 = vadd.f32 %v1029_v3, %v866_v4 }
 0x644   : > { %v1031_v5 = vpop.f32.mrf.mxu1 }
 0x645   : > { %v1032_v6 = vadd.f32 %v1031_v5, %v866_v4 }
 0x647   : > { %1266 = vmatprep.subr.mxu0 %v1032_v6 }
 0x648   : > { %1267 = vmatpush1.msra.mxu0 %v1030_v7 }
 0x6b1   : > { %v1092_v8 = vpop.trf.xlu1 }
 0x6b2   : > { %4778 = vmatmul.mubr.msk.f32.vlgmr.msra.gmra.mxu0 %vm470_vm2, %v1092_v8 }
 0x6b3   : > { %1306 = vmatprep.mubr.f32.mxu0 %v7630_v0  ;;  %v1124_v17 = vpop.trf.xlu0 }
 0x6b5   : > { %v1093_v9 = vpop.trf.xlu1 }
 0x6b6   : > { %4779 = vmatmul.mubr.msk.f32.gmra.mxu0 %vm470_vm2, %v1093_v9 }
 0x6b7   : > { %1312 = vmatprep.mubr.f32.mxu0 %v7630_v0  ;;  %v1125_v19 = vpop.trf.xlu0 }
 0x6b9   : > { %v1094_v10 = vpop.trf.xlu1 }
 0x6ba   : > { %4780 = vmatmul.mubr.msk.f32.gmra.mxu0 %vm470_vm2, %v1094_v10 }
 0x6bb   : > { %1318 = vmatprep.mubr.f32.mxu0 %v7630_v0  ;;  %v1126_v22 = vpop.trf.xlu0 }
 0x6bd   : > { %v1095_v11 = vpop.trf.xlu1 }
 0x6be   : > { %4781 = vmatmul.mubr.msk.f32.gmra.mxu0 %vm470_vm2, %v1095_v11 }
 0x6bf   : > { %1324 = vmatprep.mubr.f32.mxu0 %v7630_v0  ;;  %v1127_v24 = vpop.trf.xlu0 }
 0x6c1   : > { %v1096_v12 = vpop.trf.xlu1 }
 0x6c2   : > { %4782 = vmatmul.mubr.msk.f32.gmra.mxu0 %vm470_vm2, %v1096_v12 }
 0x6c3   : > { %1330 = vmatprep.mubr.f32.mxu0 %v7630_v0  ;;  %v1128_v27 = vpop.trf.xlu0 }
 0x6c5   : > { %v1097_v13 = vpop.trf.xlu1 }
 0x6c6   : > { %4783 = vmatmul.mubr.msk.f32.gmra.mxu0 %vm470_vm2, %v1097_v13 }
 0x6c7   : > { %1336 = vmatprep.mubr.f32.mxu0 %v7630_v0  ;;  %v1129_v29 = vpop.trf.xlu0 }
 0x6c9   : > { %v1098_v14 = vpop.trf.xlu1 }
 0x6ca   : > { %4784 = vmatmul.mubr.msk.f32.gmra.mxu0 %vm470_vm2, %v1098_v14 }
 0x6cb   : > { %1342 = vmatprep.mubr.f32.mxu0 %v7630_v0  ;;  %v1130_v31 = vpop.trf.xlu0 }
 0x6cd   : > { %v1099_v15 = vpop.trf.xlu1 }
 0x6ce   : > { %4785 = vmatmul.mubr.msk.f32.gmra.mxu0 %vm470_vm2, %v1099_v15 }
 0x6cf   : > { %1348 = vmatprep.mubr.f32.mxu0 %v7630_v0  ;;  %v1131_v35 = vpop.trf.xlu0 }
 0x6d1   : > { %v1100_v16 = vpop.trf.xlu1 }
 0x6d2   : > { %4786 = vmatmul.mubr.msk.f32.gmra.mxu0 %vm470_vm2, %v1100_v16 }
 0x6d3   : > { %1354 = vmatprep.mubr.f32.mxu0 %v7630_v0  ;;  %v1132_v38 = vpop.trf.xlu0 }
 0x6d5   : > { %v1101_v18 = vpop.trf.xlu1 }
 0x6d6   : > { %4787 = vmatmul.mubr.msk.f32.gmra.mxu0 %vm470_vm2, %v1101_v18 }
 0x6d7   : > { %1360 = vmatprep.mubr.f32.mxu0 %v7630_v0  ;;  %v1133_v39 = vpop.trf.xlu0 }
 0x6d9   : > { %v1102_v20 = vpop.trf.xlu1 }
 0x6da   : > { %4788 = vmatmul.mubr.msk.f32.gmra.mxu0 %vm470_vm2, %v1102_v20 }
 0x6db   : > { %1366 = vmatprep.mubr.f32.mxu0 %v7630_v0  ;;  %v1134_v40 = vpop.trf.xlu0 }
 0x6dd   : > { %v1103_v21 = vpop.trf.xlu1 }
 0x6de   : > { %4789 = vmatmul.mubr.msk.f32.gmra.mxu0 %vm470_vm2, %v1103_v21 }
 0x6df   : > { %1372 = vmatprep.mubr.f32.mxu0 %v7630_v0  ;;  %v1135_v41 = vpop.trf.xlu0 }
 0x6e1   : > { %v1104_v23 = vpop.trf.xlu1 }
 0x6e2   : > { %4790 = vmatmul.mubr.msk.f32.gmra.mxu0 %vm470_vm2, %v1104_v23 }
 0x6e3   : > { %1378 = vmatprep.mubr.f32.mxu0 %v7630_v0  ;;  %v1136_v42 = vpop.trf.xlu0 }
 0x6e5   : > { %v1105_v25 = vpop.trf.xlu1 }
 0x6e6   : > { %4791 = vmatmul.mubr.msk.f32.gmra.mxu0 %vm470_vm2, %v1105_v25 }
 0x6e7   : > { %1384 = vmatprep.mubr.f32.mxu0 %v7630_v0  ;;  %v1137_v43 = vpop.trf.xlu0 }
 0x6e9   : > { %v1106_v26 = vpop.trf.xlu1 }
 0x6ea   : > { %4792 = vmatmul.mubr.msk.f32.gmra.mxu0 %vm470_vm2, %v1106_v26 }
 0x6eb   : > { %1390 = vmatprep.mubr.f32.mxu0 %v7630_v0  ;;  %v1138_v44 = vpop.trf.xlu0 }
 0x6ed   : > { %v1107_v28 = vpop.trf.xlu1 }
 0x6ee   : > { %4793 = vmatmul.mubr.msk.f32.gmra.mxu0 %vm470_vm2, %v1107_v28 }
 0x6ef   : > { %1396 = vmatprep.mubr.f32.mxu0 %v7630_v0  ;;  %v1139_v45 = vpop.trf.xlu0 }
 0x6f2   : > { %4794 = vmatmul.mubr.msk.f32.gmra.mxu0 %vm470_vm2, %v1124_v17 }
 0x6f3   : > { %1402 = vmatprep.mubr.f32.mxu0 %v7630_v0 }
 0x6f6   : > { %4795 = vmatmul.mubr.msk.f32.gmra.mxu0 %vm470_vm2, %v1125_v19 }
 0x6f7   : > { %1408 = vmatprep.mubr.f32.mxu0 %v7630_v0 }
 0x6fa   : > { %4796 = vmatmul.mubr.msk.f32.gmra.mxu0 %vm470_vm2, %v1126_v22 }
 0x6fb   : > { %1414 = vmatprep.mubr.f32.mxu0 %v7630_v0 }
 0x6fe   : > { %4797 = vmatmul.mubr.msk.f32.gmra.mxu0 %vm470_vm2, %v1127_v24 }
 0x6ff   : > { %1420 = vmatprep.mubr.f32.mxu0 %v7630_v0 }
 0x702   : > { %4798 = vmatmul.mubr.msk.f32.gmra.mxu0 %vm470_vm2, %v1128_v27 }
 0x703   : > { %1426 = vmatprep.mubr.f32.mxu0 %v7630_v0 }
 0x706   : > { %4799 = vmatmul.mubr.msk.f32.gmra.mxu0 %vm470_vm2, %v1129_v29 }
 0x707   : > { %1432 = vmatprep.mubr.f32.mxu0 %v7630_v0 }
 0x70a   : > { %4800 = vmatmul.mubr.msk.f32.gmra.mxu0 %vm470_vm2, %v1130_v31 }
 0x70b   : > { %1438 = vmatprep.mubr.f32.mxu0 %v7630_v0 }
 0x70e   : > { %4801 = vmatmul.mubr.msk.f32.gmra.mxu0 %vm470_vm2, %v1131_v35 }
 0x70f   : > { %1444 = vmatprep.mubr.f32.mxu0 %v7630_v0 }
 0x712   : > { %4802 = vmatmul.mubr.msk.f32.gmra.mxu0 %vm470_vm2, %v1132_v38 }
 0x713   : > { %1450 = vmatprep.mubr.f32.mxu0 %v7630_v0 }
 0x716   : > { %4803 = vmatmul.mubr.msk.f32.gmra.mxu0 %vm470_vm2, %v1133_v39 }
 0x717   : > { %1456 = vmatprep.mubr.f32.mxu0 %v7630_v0 }
 0x71a   : > { %4804 = vmatmul.mubr.msk.f32.gmra.mxu0 %vm470_vm2, %v1134_v40 }
 0x71b   : > { %1462 = vmatprep.mubr.f32.mxu0 %v7630_v0 }
 0x71e   : > { %4805 = vmatmul.mubr.msk.f32.gmra.mxu0 %vm470_vm2, %v1135_v41 }
 0x71f   : > { %1468 = vmatprep.mubr.f32.mxu0 %v7630_v0 }
 0x722   : > { %4806 = vmatmul.mubr.msk.f32.gmra.mxu0 %vm470_vm2, %v1136_v42 }
 0x723   : > { %1474 = vmatprep.mubr.f32.mxu0 %v7630_v0 }
 0x726   : > { %4807 = vmatmul.mubr.msk.f32.gmra.mxu0 %vm470_vm2, %v1137_v43 }
 0x727   : > { %1480 = vmatprep.mubr.f32.mxu0 %v7630_v0 }
 0x72a   : > { %4808 = vmatmul.mubr.msk.f32.gmra.mxu0 %vm470_vm2, %v1138_v44 }
 0x72b   : > { %1486 = vmatprep.mubr.f32.mxu0 %v7630_v0 }
 0x72e   : > { %4809 = vmatmul.mubr.msk.f32.gmra.mxu0 %vm470_vm2, %v1139_v45 }
 0x772   : > { %v6017_v50 = vpop.f32.mrf.mxu0 }
 0x773   : > { %7710 = vst [vmem:[#allocation12_spill] sm:$0xff] %v6017_v50 }
 0x774   : > { %v6019_v36 = vpop.f32.mrf.mxu0 }
 0x775   : > { %7711 = vst [vmem:[#allocation13_spill] sm:$0xff] %v6019_v36 }
 0x776   : > { %v6021_v51 = vpop.f32.mrf.mxu0 }
 0x777   : > { %7712 = vst [vmem:[#allocation14_spill] sm:$0xff] %v6021_v51 }
 0x778   : > { %v6023_v37 = vpop.f32.mrf.mxu0 }
 0x779   : > { %7713 = vst [vmem:[#allocation15_spill] sm:$0xff] %v6023_v37 }
 0x77a   : > { %v6025_v52 = vpop.f32.mrf.mxu0 }
 0x77b   : > { %7714 = vst [vmem:[#allocation16_spill] sm:$0xff] %v6025_v52 }
 0x77c   : > { %v6027_v53 = vpop.f32.mrf.mxu0 }
 0x77d   : > { %v1499_v48 = vmax.f32 %v6025_v52, %v6027_v53 }
 0x77e   : > { %v6029_v30 = vpop.f32.mrf.mxu0 }
 0x780   : > { %v6031_v32 = vpop.f32.mrf.mxu0 }
 0x782   : > { %v6033_v46 = vpop.f32.mrf.mxu0 }
 0x784   : > { %v6035_v47 = vpop.f32.mrf.mxu0 }
 0x785   : > { %v1505_v42 = vmax.f32 %v6033_v46, %v6035_v47 }
 0x786   : > { %v6037_v54 = vpop.f32.mrf.mxu0 }
 0x788   : > { %v6039_v55 = vpop.f32.mrf.mxu0 }
 0x789   : > { %v1508_v49 = vmax.f32 %v6037_v54, %v6039_v55 }
 0x78a   : > { %v6041_v56 = vpop.f32.mrf.mxu0 }
 0x78c   : > { %v6043_v57 = vpop.f32.mrf.mxu0 }
 0x78d   : > { %v1511_v38 = vmax.f32 %v6041_v56, %v6043_v57 }
 0x78e   : > { %v6045_v58 = vpop.f32.mrf.mxu0 }
 0x790   : > { %v6047_v59 = vpop.f32.mrf.mxu0 }
 0x791   : > { %v1514_v43 = vmax.f32 %v6045_v58, %v6047_v59 }
 0x792   : > { %v6049_v3 = vpop.f32.mrf.mxu0 }
 0x794   : > { %v6051_v4 = vpop.f32.mrf.mxu0 }
 0x795   : > { %v1517_v28 = vmax.f32 %v6049_v3, %v6051_v4 }
 0x796   : > { %v6053_v5 = vpop.f32.mrf.mxu0 }
 0x798   : > { %v6055_v6 = vpop.f32.mrf.mxu0 }
 0x799   : > { %v1520_v39 = vmax.f32 %v6053_v5, %v6055_v6 }
 0x79a   : > { %v6057_v7 = vpop.f32.mrf.mxu0 }
 0x79c   : > { %v6059_v8 = vpop.f32.mrf.mxu0 }
 0x79d   : > { %v1523_v24 = vmax.f32 %v6057_v7, %v6059_v8 }
 0x79e   : > { %v6061_v9 = vpop.f32.mrf.mxu0 }
 0x7a0   : > { %v6063_v10 = vpop.f32.mrf.mxu0 }
 0x7a1   : > { %v1526_v29 = vmax.f32 %v6061_v9, %v6063_v10 }
 0x7a2   : > { %v6065_v11 = vpop.f32.mrf.mxu0 }
 0x7a4   : > { %v6067_v12 = vpop.f32.mrf.mxu0 }
 0x7a5   : > { %v1529_v20 = vmax.f32 %v6065_v11, %v6067_v12 }
 0x7a6   : > { %v6069_v13 = vpop.f32.mrf.mxu0 }
 0x7a8   : > { %v6071_v14 = vpop.f32.mrf.mxu0 }
 0x7a9   : > { %v1532_v25 = vmax.f32 %v6069_v13, %v6071_v14 }
 0x7aa   : > { %v6073_v15 = vpop.f32.mrf.mxu0 }
 0x7ac   : > { %v6075_v16 = vpop.f32.mrf.mxu0 }
 0x7ad   : > { %v1535_v17 = vmax.f32 %v6073_v15, %v6075_v16 }
 0x7ae   : > { %v6079_v18 = vpop.f32.mrf.mxu0 }
 0x7af   : > { %1536 = vmax.xlane.f32.xlu1 %v1535_v17  ;;  %v1493_v17 = vmax.f32 %v6017_v50, %v6019_v36 }
 0x7b0   : > { %v6081_v19 = vpop.f32.mrf.mxu0 }
 0x7b1   : > { %v1538_v21 = vmax.f32 %v6079_v18, %v6081_v19 }
 0x7b2   : > { %v6087_v22 = vpop.f32.mrf.mxu0 }
 0x7b3   : > { %7715 = vst [vmem:[#allocation17_spill] sm:$0xff] %v6087_v22  ;;  %1530 = vmax.xlane.f32.xlu1 %v1529_v20  ;;  %1539 = vmax.xlane.f32.xlu0 %v1538_v21  ;;  %v1502_v20 = vmax.f32 %v6029_v30, %v6031_v32 }
 0x7b4   : > { %v6089_v23 = vpop.f32.mrf.mxu0 }
 0x7b5   : > { %7716 = vst [vmem:[#allocation18_spill] sm:$0xff] %v6089_v23 }
 0x7b6   : > { %v6095_v26 = vpop.f32.mrf.mxu0 }
 0x7b7   : > { %7717 = vst [vmem:[#allocation19_spill] sm:$0xff] %v6095_v26  ;;  %1524 = vmax.xlane.f32.xlu1 %v1523_v24  ;;  %1533 = vmax.xlane.f32.xlu0 %v1532_v25  ;;  %v1496_v25 = vmax.f32 %v6021_v51, %v6023_v37 }
 0x7b8   : > { %v6097_v27 = vpop.f32.mrf.mxu0 }
 0x7b9   : > { %7718 = vst [vmem:[#allocation20_spill] sm:$0xff] %v6097_v27 }
 0x7ba   : > { %v6103_v31 = vpop.f32.mrf.mxu0 }
 0x7bb   : > { %7719 = vst [vmem:[#allocation21_spill] sm:$0xff] %v6103_v31  ;;  %1518 = vmax.xlane.f32.xlu1 %v1517_v28  ;;  %1527 = vmax.xlane.f32.xlu0 %v1526_v29 }
 0x7bc   : > { %v6105_v35 = vpop.f32.mrf.mxu0 }
 0x7bd   : > { %7720 = vst [vmem:[#allocation22_spill] sm:$0xff] %v6105_v35 }
 0x7be   : > { %v6111_v40 = vpop.f32.mrf.mxu0 }
 0x7bf   : > { %7721 = vst [vmem:[#allocation23_spill] sm:$0xff] %v6111_v40  ;;  %1512 = vmax.xlane.f32.xlu1 %v1511_v38  ;;  %1521 = vmax.xlane.f32.xlu0 %v1520_v39 }
 0x7c0   : > { %v6113_v41 = vpop.f32.mrf.mxu0 }
 0x7c1   : > { %7722 = vst [vmem:[#allocation24_spill] sm:$0xff] %v6113_v41 }
 0x7c2   : > { %v6119_v44 = vpop.f32.mrf.mxu0 }
 0x7c3   : > { %7723 = vst [vmem:[#allocation25_spill] sm:$0xff] %v6119_v44  ;;  %1506 = vmax.xlane.f32.xlu1 %v1505_v42  ;;  %1515 = vmax.xlane.f32.xlu0 %v1514_v43 }
 0x7c4   : > { %v6121_v45 = vpop.f32.mrf.mxu0 }
 0x7c6   : > { %v6127_v33 = vpop.f32.mrf.mxu0 }
 0x7c7   : > { %1500 = vmax.xlane.f32.xlu1 %v1499_v48  ;;  %1509 = vmax.xlane.f32.xlu0 %v1508_v49 }
 0x7c8   : > { %v6129_v34 = vpop.f32.mrf.mxu0 }
 0x7ca   : > { %v6135_v21 = vpop.f32.mrf.mxu0 }
 0x7cb   : > { %1494 = vmax.xlane.f32.xlu1 %v1493_v17  ;;  %1503 = vmax.xlane.f32.xlu0 %v1502_v20 }
 0x7cc   : > { %v6137_v24 = vpop.f32.mrf.mxu0 }
 0x7ce   : > { %v6141_v28 = vpop.f32.mrf.mxu0 }
 0x7cf   : > { %1497 = vmax.xlane.f32.xlu0 %v1496_v25 }
 0x7d0   : > { %v6143_v29 = vpop.f32.mrf.mxu0 }
 0x7d2   : > { %v6145_v38 = vpop.f32.mrf.mxu0 }
 0x7d4   : > { %v6147_v39 = vpop.f32.mrf.mxu0 }
 0x7d6   : > { %v6149_v42 = vpop.f32.mrf.mxu0 }
 0x7d8   : > { %v6151_v43 = vpop.f32.mrf.mxu0 }
 0x7da   : > { %v6153_v48 = vpop.f32.mrf.mxu0 }
 0x7dc   : > { %v6155_v49 = vpop.f32.mrf.mxu0 }
 0x7dd   : > { %v1571_v37 = vmax.f32 %v6153_v48, %v6155_v49 }
 0x7de   : > { %v6157_v17 = vpop.f32.mrf.mxu0 }
 0x7e0   : > { %v6159_v20 = vpop.f32.mrf.mxu0 }
 0x7e2   : > { %v6161_v0 = vpop.f32.mrf.mxu0 }
 0x7e4   : > { %v6163_v25 = vpop.f32.mrf.mxu0 }
 0x7e5   : > { %v1577_v36 = vmax.f32 %v6161_v0, %v6163_v25 }
 0x7e6   : > { %v6165_v2 = vpop.f32.mrf.mxu0 }
 0x7e8   : > { %v6167_v1 = vpop.f32.mrf.mxu0 }
 0x7e9   : > { %v1580_v52 = vmax.f32 %v6165_v2, %v6167_v1 }
 0x7ea   : > { %v6169_v63 = vpop.f32.mrf.mxu0 }
 0x7eb   : > { %7724 = vst [vmem:[#allocation26_spill] sm:$0xff] %v6169_v63 }
 0x7ec   : > { %v6171_v62 = vpop.f32.mrf.mxu0 }
 0x7ed   : > { %v1583_v61 = vmax.f32 %v6169_v63, %v6171_v62  ;;  %v1574_v63 = vmax.f32 %v6157_v17, %v6159_v20 }
 0x7ee   : > { %v6175_v60 = vpop.f32.mrf.mxu0 }
 0x7ef   : > { %1584 = vmax.xlane.f32.xlu1 %v1583_v61  ;;  %v1565_v61 = vmax.f32 %v6145_v38, %v6147_v39 }
 0x7f0   : > { %v6177_v50 = vpop.f32.mrf.mxu0 }
 0x7f1   : > { %v1586_v51 = vmax.f32 %v6175_v60, %v6177_v50 }
 0x7f3   : > { %1578 = vmax.xlane.f32.xlu1 %v1577_v36  ;;  %1587 = vmax.xlane.f32.xlu0 %v1586_v51  ;;  %v1559_v36 = vmax.f32 %v6135_v21, %v6137_v24  ;;  %v1568_v51 = vmax.f32 %v6149_v42, %v6151_v43 }
 0x7f7   : > { %1572 = vmax.xlane.f32.xlu1 %v1571_v37  ;;  %1581 = vmax.xlane.f32.xlu0 %v1580_v52  ;;  %v1553_v37 = vmax.f32 %v6119_v44, %v6121_v45  ;;  %v1562_v52 = vmax.f32 %v6141_v28, %v6143_v29 }
 0x7fb   : > { %1566 = vmax.xlane.f32.xlu1 %v1565_v61  ;;  %1575 = vmax.xlane.f32.xlu0 %v1574_v63  ;;  %v1547_v61 = vmax.f32 %v6103_v31, %v6105_v35  ;;  %v1556_v63 = vmax.f32 %v6127_v33, %v6129_v34 }
 0x7ff   : > { %1560 = vmax.xlane.f32.xlu1 %v1559_v36  ;;  %1569 = vmax.xlane.f32.xlu0 %v1568_v51  ;;  %v1550_v36 = vmax.f32 %v6111_v40, %v6113_v41  ;;  %v1544_v51 = vmax.f32 %v6095_v26, %v6097_v27 }
 0x803   : > { %1554 = vmax.xlane.f32.xlu1 %v1553_v37  ;;  %1563 = vmax.xlane.f32.xlu0 %v1562_v52  ;;  %v1541_v37 = vmax.f32 %v6087_v22, %v6089_v23  ;;  %v357_v52 = vld [vmem:[%s7626_s6 + $0x8] sm:$0xff] }
 0x807   : > { %1548 = vmax.xlane.f32.xlu1 %v1547_v61  ;;  %1557 = vmax.xlane.f32.xlu0 %v1556_v63  ;;  %v361_v61 = vld [vmem:[%s7626_s6 + $0x28] sm:$0xff] }
 0x808   : > { %v353_v63 = vld [vmem:[%s7625_s5 + $0x48] sm:$0xff] }
 0x809   : > { %4775 = vmatmul.mubr.msk.f32.gmra.mxu1 %vm396_vm1, %v353_v63 }
 0x80b   : > { %1551 = vmax.xlane.f32.xlu0 %v1550_v36  ;;  %v7725_v36 = vmov 0.0  }
 0x80c   : > { %1063 = vmatprep.mubr.f32.mxu1 %v7725_v36 }
 0x80f   : > { %1545 = vmax.xlane.f32.xlu0 %v1544_v51  ;;  %v354_v51 = vld [vmem:[%s7625_s5 + $0x50] sm:$0xff] }
 0x810   : > { %4776 = vmatmul.mubr.msk.f32.gmra.mxu1 %vm396_vm1, %v354_v51 }
 0x811   : > { %1069 = vmatprep.mubr.f32.mxu1 %v7725_v36 }
 0x813   : > { %1542 = vmax.xlane.f32.xlu0 %v1541_v37  ;;  %v364_v37 = vld [vmem:[%s7626_s6 + $0x40] sm:$0xff] }
 0x818   : > { %850 = vperm.xlu1 %5021, %v357_v52   ;;  %v355_v52 = vld [vmem:[%s7625_s5 + $0x58] sm:$0xff] }
 0x819   : > { %4777 = vmatmul.mubr.msk.f32.gmra.mxu1 %vm396_vm1, %v355_v52 }
 0x81c   : > { %870 = vperm.xlu1 %5021, %v361_v61  }
 0x829   : > { %885 = vperm.xlu0 %5020, %v364_v37  }
 0x838   : > { %v1537_v61 = vpop.xlane.xlu1 %1536 }
 0x839   : > { %v1618_v63 = vsub.f32 %v6075_v16, %v1537_v61  ;;  %v1617_v26 = vsub.f32 %v6073_v15, %v1537_v61 }
 0x83b   : > { %v1711_v36 = vmul.f32 1.442695, %v1618_v63  ;;  %v1709_v52 = vmul.f32 1.442695, %v1617_v26 }
 0x83c   : > { %v1540_v22 = vpop.xlane.xlu0 %1539  ;;  %v1531_v40 = vpop.xlane.xlu1 %1530 }
 0x83d   : > { %v1619_v23 = vsub.f32 %v6079_v18, %v1540_v22  ;;  %v1620_v51 = vsub.f32 %v6081_v19, %v1540_v22  ;;  %v1614_v16 = vsub.f32 %v6067_v12, %v1531_v40  ;;  %v1613_v15 = vsub.f32 %v6065_v11, %v1531_v40 }
 0x83f   : > { %v1713_v27 = vmul.f32 1.442695, %v1619_v23  ;;  %v1715_v31 = vmul.f32 1.442695, %v1620_v51  ;;  %v1703_v22 = vmul.f32 1.442695, %v1614_v16 }
 0x840   : > { %v1534_v35 = vpop.xlane.xlu0 %1533  ;;  %v1701_v61 = vmul.f32 1.442695, %v1613_v15 }
 0x841   : > { %5030 = vpow2.f32 %v1713_v27  ;;  %v1616_v37 = vsub.f32 %v6071_v14, %v1534_v35  ;;  %v1615_v41 = vsub.f32 %v6069_v13, %v1534_v35  ;;  %v1525_v27 = vpop.xlane.xlu1 %1524 }
 0x842   : > { %5032 = vpow2.f32 %v1715_v31  ;;  %v1610_v13 = vsub.f32 %v6059_v8, %v1525_v27  ;;  %v1609_v11 = vsub.f32 %v6057_v7, %v1525_v27 }
 0x843   : > { %5034 = vpow2.f32 %v1711_v36  ;;  %v1707_v18 = vmul.f32 1.442695, %v1616_v37  ;;  %v1705_v19 = vmul.f32 1.442695, %v1615_v41  ;;  %v7648_v41 = vmov 1.0  }
 0x844   : > { %v1528_v44 = vpop.xlane.xlu0 %1527  ;;  %5036 = vpow2.f32 %v1709_v52  ;;  %1916 = vmatprep.mubr.f32.mxu0 %v7648_v41  ;;  %v1693_v8 = vmul.f32 1.442695, %v1609_v11 }
 0x845   : > { %5038 = vpow2.f32 %v1707_v18  ;;  %v1612_v23 = vsub.f32 %v6063_v10, %v1528_v44  ;;  %v1611_v14 = vsub.f32 %v6061_v9, %v1528_v44  ;;  %v1695_v10 = vmul.f32 1.442695, %v1610_v13  ;;  %v1519_v44 = vpop.xlane.xlu1 %1518 }
 0x846   : > { %5040 = vpow2.f32 %v1705_v19  ;;  %v1606_v51 = vsub.f32 %v6051_v4, %v1519_v44 }
 0x847   : > { %5042 = vpow2.f32 %v1703_v22  ;;  %v1699_v26 = vmul.f32 1.442695, %v1612_v23  ;;  %v1697_v40 = vmul.f32 1.442695, %v1611_v14 }
 0x848   : > { %v1522_v12 = vpop.xlane.xlu0 %1521  ;;  %5044 = vpow2.f32 %v1701_v61  ;;  %v1687_v19 = vmul.f32 1.442695, %v1606_v51 }
 0x849   : > { %5046 = vpow2.f32 %v1699_v26  ;;  %v1608_v36 = vsub.f32 %v6055_v6, %v1522_v12  ;;  %v1607_v7 = vsub.f32 %v6053_v5, %v1522_v12  ;;  %v1605_v6 = vsub.f32 %v6049_v3, %v1519_v44  ;;  %v1513_v23 = vpop.xlane.xlu1 %1512 }
 0x84a   : > { %5048 = vpow2.f32 %v1697_v40  ;;  %v1602_v3 = vsub.f32 %v6043_v57, %v1513_v23 }
 0x84b   : > { %5050 = vpow2.f32 %v1695_v10  ;;  %v1691_v37 = vmul.f32 1.442695, %v1608_v36  ;;  %v1689_v18 = vmul.f32 1.442695, %v1607_v7  ;;  %v1685_v4 = vmul.f32 1.442695, %v1605_v6 }
 0x84c   : > { %v1516_v16 = vpop.xlane.xlu0 %1515  ;;  %5052 = vpow2.f32 %v1693_v8 }
 0x84d   : > { %5054 = vpow2.f32 %v1691_v37  ;;  %v1604_v5 = vsub.f32 %v6047_v59, %v1516_v16  ;;  %v1603_v27 = vsub.f32 %v6045_v58, %v1516_v16  ;;  %v1601_v59 = vsub.f32 %v6041_v56, %v1513_v23  ;;  %v1507_v40 = vpop.xlane.xlu1 %1506 }
 0x84e   : > { %v5031_v31 = vpop.eup %5030  ;;  %5056 = vpow2.f32 %v1689_v18  ;;  %v1598_v56 = vsub.f32 %v6035_v47, %v1507_v40 }
 0x84f   : > { %v5033_v35 = vpop.eup %5032  ;;  %5058 = vpow2.f32 %v1687_v19  ;;  %v1683_v14 = vmul.f32 1.442695, %v1604_v5  ;;  %v1681_v12 = vmul.f32 1.442695, %v1603_v27  ;;  %v1677_v57 = vmul.f32 1.442695, %v1601_v59 }
 0x850   : > { %1781 = vmatprep.subr.mxu1 %v5033_v35  ;;  %1852 = vmatprep.subr.mxu0 %v5033_v35  ;;  %v5035_v9 = vpop.eup %5034  ;;  %v1510_v26 = vpop.xlane.xlu0 %1509  ;;  %5060 = vpow2.f32 %v1685_v4  ;;  %v1679_v35 = vmul.f32 1.442695, %v1602_v3  ;;  %v1671_v51 = vmul.f32 1.442695, %v1598_v56  ;;  %v7727_v27 = vld [vmem:[#allocation15_spill] sm:$0xff]  ;;  %v7729_v59 = vld [vmem:[#allocation13_spill] sm:$0xff] }
 0x851   : > { %1782 = vmatpush1.xpose.msra.mxu1 %v5031_v31  ;;  %1853 = vmatpush1.xpose.msra.mxu0 %v5031_v31  ;;  %v5037_v63 = vpop.eup %5036  ;;  %5062 = vpow2.f32 %v1683_v14  ;;  %v1600_v58 = vsub.f32 %v6039_v55, %v1510_v26  ;;  %v1599_v10 = vsub.f32 %v6037_v54, %v1510_v26  ;;  %v1597_v55 = vsub.f32 %v6033_v46, %v1507_v40  ;;  %v7728_v14 = vld [vmem:[#allocation14_spill] sm:$0xff] }
 0x852   : > { %1783 = vmatprep.subr.mxu1 %v5035_v9  ;;  %1854 = vmatprep.subr.mxu0 %v5035_v9  ;;  %v5039_v52 = vpop.eup %5038  ;;  %5064 = vpow2.f32 %v1681_v12 }
 0x853   : > { %v5041_v15 = vpop.eup %5040  ;;  %5066 = vpow2.f32 %v1679_v35  ;;  %v1675_v9 = vmul.f32 1.442695, %v1600_v58  ;;  %v1673_v7 = vmul.f32 1.442695, %v1599_v10  ;;  %v1669_v47 = vmul.f32 1.442695, %v1597_v55 }
 0x854   : > { %v5043_v22 = vpop.eup %5042  ;;  %v1504_v8 = vpop.xlane.xlu0 %1503  ;;  %5068 = vpow2.f32 %v1677_v57  ;;  %v7730_v58 = vld [vmem:[#allocation12_spill] sm:$0xff] }
 0x855   : > { %1784 = vmatpush1.xpose.msra.mxu1 %v5037_v63  ;;  %1855 = vmatpush1.xpose.msra.mxu0 %v5037_v63  ;;  %v5045_v61 = vpop.eup %5044  ;;  %5070 = vpow2.f32 %v1675_v9  ;;  %v1596_v54 = vsub.f32 %v6031_v32, %v1504_v8  ;;  %v1595_v16 = vsub.f32 %v6029_v30, %v1504_v8  ;;  %v7726_v32 = vld [vmem:[#allocation16_spill] sm:$0xff] }
 0x856   : > { %1785 = vmatprep.subr.mxu1 %v5039_v52  ;;  %1856 = vmatprep.subr.mxu0 %v5039_v52  ;;  %v5047_v13 = vpop.eup %5046  ;;  %v1501_v52 = vpop.xlane.xlu1 %1500  ;;  %5072 = vpow2.f32 %v1673_v7 }
 0x857   : > { %v5049_v31 = vpop.eup %5048  ;;  %5074 = vpow2.f32 %v1671_v51  ;;  %v1594_v46 = vsub.f32 %v6027_v53, %v1501_v52  ;;  %v1667_v18 = vmul.f32 1.442695, %v1596_v54  ;;  %v1593_v5 = vsub.f32 %v7726_v32, %v1501_v52 }
 0x858   : > { %v5051_v11 = vpop.eup %5050  ;;  %v1498_v19 = vpop.xlane.xlu0 %1497  ;;  %5076 = vpow2.f32 %v1669_v47 }
 0x859   : > { %1786 = vmatpush1.xpose.msra.mxu1 %v5041_v15  ;;  %1857 = vmatpush1.xpose.msra.mxu0 %v5041_v15  ;;  %v5053_v36 = vpop.eup %5052  ;;  %v1663_v4 = vmul.f32 1.442695, %v1594_v46  ;;  %5078 = vpow2.f32 %v1667_v18  ;;  %v1592_v30 = vsub.f32 %v7727_v27, %v1498_v19  ;;  %v1661_v53 = vmul.f32 1.442695, %v1593_v5 }
 0x85a   : > { %1787 = vmatprep.subr.mxu1 %v5043_v22  ;;  %1858 = vmatprep.subr.mxu0 %v5043_v22  ;;  %v5055_v44 = vpop.eup %5054  ;;  %v1665_v22 = vmul.f32 1.442695, %v1595_v16  ;;  %v1495_v3 = vpop.xlane.xlu1 %1494 }
 0x85b   : > { %v5057_v63 = vpop.eup %5056  ;;  %v1590_v12 = vsub.f32 %v7729_v59, %v1495_v3 }
 0x85c   : > { %v5059_v37 = vpop.eup %5058  ;;  %5080 = vpow2.f32 %v1665_v22 }
 0x85d   : > { %1788 = vmatpush1.xpose.msra.mxu1 %v5045_v61  ;;  %1859 = vmatpush1.xpose.msra.mxu0 %v5045_v61  ;;  %v5061_v6 = vpop.eup %5060  ;;  %5082 = vpow2.f32 %v1663_v4  ;;  %v1655_v10 = vmul.f32 1.442695, %v1590_v12 }
 0x85e   : > { %1789 = vmatprep.subr.mxu1 %v5047_v13  ;;  %1860 = vmatprep.subr.mxu0 %v5047_v13  ;;  %v5063_v15 = vpop.eup %5062  ;;  %v1591_v13 = vsub.f32 %v7728_v14, %v1498_v19  ;;  %5084 = vpow2.f32 %v1661_v53 }
 0x85f   : > { %v5065_v23 = vpop.eup %5064 }
 0x860   : > { %v5067_v61 = vpop.eup %5066  ;;  %v1657_v40 = vmul.f32 1.442695, %v1591_v13 }
 0x861   : > { %1790 = vmatpush1.xpose.msra.mxu1 %v5049_v31  ;;  %1861 = vmatpush1.xpose.msra.mxu0 %v5049_v31  ;;  %v5069_v26 = vpop.eup %5068  ;;  %v1659_v31 = vmul.f32 1.442695, %v1592_v30 }
 0x862   : > { %1791 = vmatprep.subr.mxu1 %v5051_v11  ;;  %1862 = vmatprep.subr.mxu0 %v5051_v11  ;;  %v5071_v35 = vpop.eup %5070  ;;  %v1589_v11 = vsub.f32 %v7730_v58, %v1495_v3 }
 0x863   : > { %v5073_v57 = vpop.eup %5072  ;;  %5086 = vpow2.f32 %v1659_v31 }
 0x864   : > { %v5075_v56 = vpop.eup %5074  ;;  %v1653_v9 = vmul.f32 1.442695, %v1589_v11  ;;  %5088 = vpow2.f32 %v1657_v40 }
 0x865   : > { %1792 = vmatpush1.xpose.msra.mxu1 %v5053_v36  ;;  %1863 = vmatpush1.xpose.msra.mxu0 %v5053_v36  ;;  %5090 = vpow2.f32 %v1655_v10 }
 0x866   : > { %1793 = vmatprep.subr.mxu1 %v5055_v44  ;;  %1864 = vmatprep.subr.mxu0 %v5055_v44  ;;  %v5077_v44 = vpop.eup %5076  ;;  %5092 = vpow2.f32 %v1653_v9 }
 0x869   : > { %1794 = vmatpush1.xpose.msra.mxu1 %v5057_v63  ;;  %1865 = vmatpush1.xpose.msra.mxu0 %v5057_v63  ;;  %v5079_v63 = vpop.eup %5078 }
 0x86a   : > { %1795 = vmatprep.subr.mxu1 %v5059_v37  ;;  %1866 = vmatprep.subr.mxu0 %v5059_v37  ;;  %v7731_v37 = vld [vmem:[#allocation26_spill] sm:$0xff] }
 0x86d   : > { %1796 = vmatpush1.xpose.msra.mxu1 %v5061_v6  ;;  %1867 = vmatpush1.xpose.msra.mxu0 %v5061_v6  ;;  %v5081_v6 = vpop.eup %5080 }
 0x86e   : > { %1797 = vmatprep.subr.mxu1 %v5063_v15  ;;  %1868 = vmatprep.subr.mxu0 %v5063_v15  ;;  %v5083_v15 = vpop.eup %5082 }
 0x86f   : > { %v5085_v32 = vpop.eup %5084 }
 0x870   : > { %v5087_v27 = vpop.eup %5086 }
 0x871   : > { %1798 = vmatpush1.xpose.msra.mxu1 %v5065_v23  ;;  %1869 = vmatpush1.xpose.msra.mxu0 %v5065_v23 }
 0x872   : > { %1799 = vmatprep.subr.mxu1 %v5067_v61  ;;  %1870 = vmatprep.subr.mxu0 %v5067_v61 }
 0x875   : > { %1800 = vmatpush1.xpose.msra.mxu1 %v5069_v26  ;;  %1871 = vmatpush1.xpose.msra.mxu0 %v5069_v26 }
 0x876   : > { %1801 = vmatprep.subr.mxu1 %v5071_v35  ;;  %1872 = vmatprep.subr.mxu0 %v5071_v35 }
 0x878   : > { %v1585_v36 = vpop.xlane.xlu1 %1584 }
 0x879   : > { %1802 = vmatpush1.xpose.msra.mxu1 %v5073_v57  ;;  %1873 = vmatpush1.xpose.msra.mxu0 %v5073_v57  ;;  %v1650_v8 = vsub.f32 %v6171_v62, %v1585_v36  ;;  %v1649_v52 = vsub.f32 %v7731_v37, %v1585_v36 }
 0x87a   : > { %1803 = vmatprep.subr.mxu1 %v5075_v56  ;;  %1874 = vmatprep.subr.mxu0 %v5075_v56 }
 0x87b   : > { %v1775_v46 = vmul.f32 1.442695, %v1650_v8 }
 0x87c   : > { %v1588_v55 = vpop.xlane.xlu0 %1587  ;;  %v1579_v7 = vpop.xlane.xlu1 %1578 }
 0x87d   : > { %v1651_v51 = vsub.f32 %v6175_v60, %v1588_v55  ;;  %v1652_v54 = vsub.f32 %v6177_v50, %v1588_v55  ;;  %1804 = vmatpush1.xpose.msra.mxu1 %v5077_v44  ;;  %1875 = vmatpush1.xpose.msra.mxu0 %v5077_v44  ;;  %v1773_v50 = vmul.f32 1.442695, %v1649_v52  ;;  %v1646_v5 = vsub.f32 %v6163_v25, %v1579_v7  ;;  %v7734_v52 = vld [vmem:[#allocation6_spill] sm:$0xff] }
 0x87e   : > { %1805 = vmatprep.subr.mxu1 %v5079_v63  ;;  %1876 = vmatprep.subr.mxu0 %v5079_v63  ;;  %v1645_v30 = vsub.f32 %v6161_v0, %v1579_v7 }
 0x87f   : > { %v1777_v47 = vmul.f32 1.442695, %v1651_v51  ;;  %v1779_v16 = vmul.f32 1.442695, %v1652_v54  ;;  %v1767_v3 = vmul.f32 1.442695, %v1646_v5 }
 0x880   : > { %v1582_v18 = vpop.xlane.xlu0 %1581  ;;  %v6269_v62 = vpop.xlane.xlu1 %1572  ;;  %v1765_v59 = vmul.f32 1.442695, %v1645_v30 }
 0x881   : > { %5094 = vpow2.f32 %v1777_v47  ;;  %v1648_v60 = vsub.f32 %v6167_v1, %v1582_v18  ;;  %1806 = vmatpush1.xpose.msra.mxu1 %v5081_v6  ;;  %1877 = vmatpush1.xpose.msra.mxu0 %v5081_v6  ;;  %v1647_v19 = vsub.f32 %v6165_v2, %v1582_v18  ;;  %v6276_v1 = vpop.f32.mrf.mxu1  ;;  %v5089_v2 = vpop.eup %5088  ;;  %v1642_v31 = vsub.f32 %v6155_v49, %v6269_v62 }
 0x882   : > { %5096 = vpow2.f32 %v1779_v16  ;;  %1807 = vmatprep.subr.mxu1 %v5083_v15  ;;  %1878 = vmatprep.subr.mxu0 %v5083_v15  ;;  %v5091_v13 = vpop.eup %5090  ;;  %v7735_v16 = vld [vmem:[#allocation7_spill] sm:$0xff] }
 0x883   : > { %5098 = vpow2.f32 %v1775_v46  ;;  %v1771_v22 = vmul.f32 1.442695, %v1648_v60  ;;  %v1769_v61 = vmul.f32 1.442695, %v1647_v19  ;;  %v6282_v26 = vpop.f32.mrf.mxu1  ;;  %v5093_v12 = vpop.eup %5092  ;;  %v1759_v36 = vmul.f32 1.442695, %v1642_v31 }
 0x884   : > { %v1576_v23 = vpop.xlane.xlu0 %1575  ;;  %v6274_v4 = vpop.xlane.xlu1 %1566  ;;  %5100 = vpow2.f32 %v1773_v50  ;;  %v7738_v31 = vld [vmem:[#allocation25_spill] sm:$0xff] }
 0x885   : > { %1808 = vmatpush1.xpose.msra.mxu1 %v5085_v32  ;;  %1879 = vmatpush1.xpose.msra.mxu0 %v5085_v32  ;;  %5102 = vpow2.f32 %v1771_v22  ;;  %v1644_v25 = vsub.f32 %v6159_v20, %v1576_v23  ;;  %v1643_v0 = vsub.f32 %v6157_v17, %v1576_v23  ;;  %v6291_v40 = vpop.f32.mrf.mxu1  ;;  %v1641_v17 = vsub.f32 %v6153_v48, %v6269_v62 }
 0x886   : > { %1809 = vmatprep.subr.mxu1 %v5087_v27  ;;  %1880 = vmatprep.subr.mxu0 %v5087_v27  ;;  %5104 = vpow2.f32 %v1769_v61  ;;  %7732 = vst [vmem:[#allocation16_spill] sm:$0xff] %v6291_v40 }
 0x887   : > { %5106 = vpow2.f32 %v1767_v3  ;;  %v1763_v20 = vmul.f32 1.442695, %v1644_v25  ;;  %v1761_v10 = vmul.f32 1.442695, %v1643_v0  ;;  %v6300_v8 = vpop.f32.mrf.mxu1  ;;  %v1757_v55 = vmul.f32 1.442695, %v1641_v17 }
 0x888   : > { %v1570_v53 = vpop.xlane.xlu0 %1569  ;;  %v6280_v14 = vpop.xlane.xlu1 %1560  ;;  %5108 = vpow2.f32 %v1765_v59  ;;  %7733 = vst [vmem:[#allocation15_spill] sm:$0xff] %v6300_v8 }
 0x889   : > { %1810 = vmatpush1.xpose.msra.mxu1 %v5089_v2  ;;  %1881 = vmatpush1.xpose.msra.mxu0 %v5089_v2  ;;  %5110 = vpow2.f32 %v1763_v20  ;;  %v1640_v49 = vsub.f32 %v6151_v43, %v1570_v53  ;;  %v1639_v48 = vsub.f32 %v6149_v42, %v1570_v53  ;;  %v1638_v43 = vsub.f32 %v6147_v39, %v6274_v4  ;;  %v6309_v46 = vpop.f32.mrf.mxu1 }
 0x88a   : > { %1811 = vmatprep.subr.mxu1 %v5091_v13  ;;  %1882 = vmatprep.subr.mxu0 %v5091_v13  ;;  %5112 = vpow2.f32 %v1761_v10  ;;  %7736 = vst [vmem:[#allocation14_spill] sm:$0xff] %v6309_v46  ;;  %v1637_v42 = vsub.f32 %v6145_v38, %v6274_v4  ;;  %v1633_v27 = vsub.f32 %v6135_v21, %v6280_v14 }
 0x88b   : > { %5114 = vpow2.f32 %v1759_v36  ;;  %v1755_v63 = vmul.f32 1.442695, %v1640_v49  ;;  %v1753_v39 = vmul.f32 1.442695, %v1639_v48  ;;  %v1751_v62 = vmul.f32 1.442695, %v1638_v43  ;;  %v6317_v19 = vpop.f32.mrf.mxu1 }
 0x88c   : > { %v6287_v35 = vpop.xlane.xlu0 %1563  ;;  %v6289_v58 = vpop.xlane.xlu1 %1554  ;;  %5116 = vpow2.f32 %v1757_v55  ;;  %7737 = vst [vmem:[#allocation13_spill] sm:$0xff] %v6317_v19  ;;  %v1749_v32 = vmul.f32 1.442695, %v1637_v42  ;;  %v1741_v53 = vmul.f32 1.442695, %v1633_v27  ;;  %v7740_v36 = vld [vmem:[#allocation23_spill] sm:$0xff] }
 0x88d   : > { %1812 = vmatpush1.xpose.msra.mxu1 %v5093_v12  ;;  %1883 = vmatpush1.xpose.msra.mxu0 %v5093_v12  ;;  %5118 = vpow2.f32 %v1755_v63  ;;  %v1636_v15 = vsub.f32 %v6143_v29, %v6287_v35  ;;  %v1635_v38 = vsub.f32 %v6141_v28, %v6287_v35  ;;  %v1634_v29 = vsub.f32 %v6137_v24, %v6280_v14  ;;  %v6323_v4 = vpop.f32.mrf.mxu1 }
 0x88e   : > { %v5095_v11 = vpop.eup %5094  ;;  %5120 = vpow2.f32 %v1753_v39  ;;  %v1630_v13 = vsub.f32 %v6121_v45, %v6289_v58  ;;  %v1629_v20 = vsub.f32 %v7738_v31, %v6289_v58  ;;  %v7739_v45 = vld [vmem:[#allocation24_spill] sm:$0xff]  ;;  %v7741_v58 = vld [vmem:[#allocation22_spill] sm:$0xff] }
 0x88f   : > { %v5097_v57 = vpop.eup %5096  ;;  %5122 = vpow2.f32 %v1751_v62  ;;  %v1747_v22 = vmul.f32 1.442695, %v1636_v15  ;;  %v1745_v30 = vmul.f32 1.442695, %v1635_v38  ;;  %v1743_v28 = vmul.f32 1.442695, %v1634_v29  ;;  %v1055_v25 = vpop.f32.mrf.mxu1 }
 0x890   : > { %1813 = vmatprep.subr.mxu1 %v5097_v57  ;;  %1884 = vmatprep.subr.mxu0 %v5097_v57  ;;  %v6296_v56 = vpop.xlane.xlu0 %1557  ;;  %v6298_v9 = vpop.xlane.xlu1 %1548  ;;  %5124 = vpow2.f32 %v1749_v32  ;;  %v1733_v10 = vmul.f32 1.442695, %v1629_v20  ;;  %v7746_v32 = vld [vmem:[#allocation17_spill] sm:$0xff] }
 0x891   : > { %v5099_v44 = vpop.eup %5098  ;;  %1814 = vmatpush2.xpose.msra.mxu1 %v5095_v11  ;;  %1885 = vmatpush2.xpose.msra.mxu0 %v5095_v11  ;;  %5126 = vpow2.f32 %v1747_v22  ;;  %v1632_v2 = vsub.f32 %v6129_v34, %v6296_v56  ;;  %v1631_v21 = vsub.f32 %v6127_v33, %v6296_v56  ;;  %v1735_v11 = vmul.f32 1.442695, %v1630_v13 }
 0x892   : > { %1815 = vmatprep.subr.mxu1 %v5099_v44  ;;  %1886 = vmatprep.subr.mxu0 %v5099_v44  ;;  %v5101_v7 = vpop.eup %5100  ;;  %5128 = vpow2.f32 %v1745_v30  ;;  %v1626_v44 = vsub.f32 %v7741_v58, %v6298_v9 }
 0x893   : > { %v5103_v37 = vpop.eup %5102  ;;  %5130 = vpow2.f32 %v1743_v28  ;;  %v1739_v59 = vmul.f32 1.442695, %v1632_v2  ;;  %v1737_v33 = vmul.f32 1.442695, %v1631_v21 }
 0x894   : > { %v6305_v51 = vpop.xlane.xlu0 %1551  ;;  %v851_v54 = vpop.permute.xlu1 %850  ;;  %5132 = vpow2.f32 %v1741_v53 }
 0x895   : > { %1816 = vmatpush2.xpose.msra.mxu1 %v5101_v7  ;;  %1887 = vmatpush2.xpose.msra.mxu0 %v5101_v7  ;;  %v1012_v47 = vadd.f32 %v7734_v52, %v851_v54  ;;  %v1014_v6 = vadd.f32 %v7735_v16, %v851_v54  ;;  %v5105_v18 = vpop.eup %5104  ;;  %5134 = vpow2.f32 %v1739_v59  ;;  %v1628_v57 = vsub.f32 %v7739_v45, %v6305_v51  ;;  %v7742_v7 = vld [vmem:[#allocation21_spill] sm:$0xff] }
 0x896   : > { %1817 = vmatprep.subr.mxu1 %v5103_v37  ;;  %1888 = vmatprep.subr.mxu0 %v5103_v37  ;;  %v5107_v60 = vpop.eup %5106  ;;  %5136 = vpow2.f32 %v1737_v33  ;;  %v1627_v49 = vsub.f32 %v7740_v36, %v6305_v51  ;;  %v1625_v43 = vsub.f32 %v7742_v7, %v6298_v9  ;;  %v1727_v37 = vmul.f32 1.442695, %v1626_v44  ;;  %v7743_v51 = vld [vmem:[#allocation20_spill] sm:$0xff] }
 0x897   : > { %1939 = vxpose.xlu1.b32.start.end [1/1] (short) %v1012_v47, 128  ;;  %1971 = vxpose.xlu0.b32.start.end [1/1] (short) %v1014_v6, 128  ;;  %v5109_v5 = vpop.eup %5108  ;;  %5138 = vpow2.f32 %v1735_v11  ;;  %v1731_v55 = vmul.f32 1.442695, %v1628_v57  ;;  %v7744_v6 = vld [vmem:[#allocation19_spill] sm:$0xff]  ;;  %v7747_v59 = vmov 0.0  }
 0x898   : > { %v6315_v50 = vpop.xlane.xlu0 %1545  ;;  %v5111_v23 = vpop.eup %5110  ;;  %5140 = vpow2.f32 %v1733_v10  ;;  %v1729_v63 = vmul.f32 1.442695, %v1627_v49  ;;  %v1725_v16 = vmul.f32 1.442695, %v1625_v43 }
 0x899   : > { %1818 = vmatpush2.xpose.msra.mxu1 %v5105_v18  ;;  %1889 = vmatpush2.xpose.msra.mxu0 %v5105_v18  ;;  %v5113_v61 = vpop.eup %5112  ;;  %5142 = vpow2.f32 %v1731_v55  ;;  %v1624_v52 = vsub.f32 %v7743_v51, %v6315_v50  ;;  %v1623_v42 = vsub.f32 %v7744_v6, %v6315_v50  ;;  %v7745_v18 = vld [vmem:[#allocation18_spill] sm:$0xff] }
 0x89a   : > { %1819 = vmatprep.subr.mxu1 %v5107_v60  ;;  %1890 = vmatprep.subr.mxu0 %v5107_v60  ;;  %v5115_v3 = vpop.eup %5114  ;;  %5144 = vpow2.f32 %v1729_v63 }
 0x89b   : > { %v5117_v14 = vpop.eup %5116  ;;  %5146 = vpow2.f32 %v1727_v37  ;;  %v1723_v9 = vmul.f32 1.442695, %v1624_v52  ;;  %v1721_v60 = vmul.f32 1.442695, %v1623_v42 }
 0x89c   : > { %v6329_v24 = vpop.xlane.xlu0 %1542  ;;  %v5119_v0 = vpop.eup %5118  ;;  %5148 = vpow2.f32 %v1725_v16 }
 0x89d   : > { %1820 = vmatpush2.xpose.msra.mxu1 %v5109_v5  ;;  %1891 = vmatpush2.xpose.msra.mxu0 %v5109_v5  ;;  %v5121_v35 = vpop.eup %5120  ;;  %v1622_v62 = vsub.f32 %v7745_v18, %v6329_v24  ;;  %v1621_v38 = vsub.f32 %v7746_v32, %v6329_v24  ;;  %5150 = vpow2.f32 %v1723_v9 }
 0x89e   : > { %1821 = vmatprep.subr.mxu1 %v5111_v23  ;;  %1892 = vmatprep.subr.mxu0 %v5111_v23  ;;  %v5123_v17 = vpop.eup %5122  ;;  %5152 = vpow2.f32 %v1721_v60 }
 0x89f   : > { %v5125_v56 = vpop.eup %5124  ;;  %v1719_v29 = vmul.f32 1.442695, %v1622_v62  ;;  %v1717_v22 = vmul.f32 1.442695, %v1621_v38  ;;  %v1927_v62 = vlaneseq }
 0x8a0   : > { %v5127_v48 = vpop.eup %5126 }
 0x8a1   : > { %1822 = vmatpush2.xpose.msra.mxu1 %v5113_v61  ;;  %1893 = vmatpush2.xpose.msra.mxu0 %v5113_v61  ;;  %v5129_v54 = vpop.eup %5128  ;;  %5154 = vpow2.f32 %v1719_v29  ;;  %v1928_v60 = vshrl.u32 %v1927_v62, 7 }
 0x8a2   : > { %1823 = vmatprep.subr.mxu1 %v5115_v3  ;;  %1894 = vmatprep.subr.mxu0 %v5115_v3  ;;  %v5131_v47 = vpop.eup %5130  ;;  %5156 = vpow2.f32 %v1717_v22 }
 0x8a3   : > { %v5133_v39 = vpop.eup %5132  ;;  %v6436_v38 = vsub.s32 0, %v1928_v60 }
 0x8a4   : > { %v6335_v34 = vpop.permute.xlu0 %885  ;;  %v5135_v15 = vpop.eup %5134 }
 0x8a5   : > { %v1056_v12 = vadd.f32 %v1055_v25, %v6335_v34  ;;  %1824 = vmatpush2.xpose.msra.mxu1 %v5117_v14  ;;  %1895 = vmatpush2.xpose.msra.mxu0 %v5117_v14  ;;  %v5137_v5 = vpop.eup %5136  ;;  %v871_v25 = vpop.permute.xlu1 %870  ;;  %v1054_v14 = vadd.f32 %v6323_v4, %v6335_v34  ;;  %7753 = vst [vmem:[#allocation24_spill] sm:$0xff] %v6436_v38 }
 0x8a6   : > { %1825 = vmatprep.subr.mxu1 %v5119_v0  ;;  %1896 = vmatprep.subr.mxu0 %v5119_v0  ;;  %v5139_v50 = vpop.eup %5138  ;;  %v1038_v21 = vadd.f32 %v6282_v26, %v871_v25  ;;  %v1036_v13 = vadd.f32 %v6276_v1, %v871_v25 }
 0x8a7   : > { %1845 = vmatprep.mubr.f32.mxu1 %v1056_v12  ;;  %v5141_v23 = vpop.eup %5140 }
 0x8a8   : > { %v5143_v27 = vpop.eup %5142 }
 0x8a9   : > { %1826 = vmatpush2.xpose.msra.mxu1 %v5121_v35  ;;  %1897 = vmatpush2.xpose.msra.mxu0 %v5121_v35  ;;  %v5145_v30 = vpop.eup %5144 }
 0x8aa   : > { %1827 = vmatprep.subr.mxu1 %v5123_v17  ;;  %1898 = vmatprep.subr.mxu0 %v5123_v17  ;;  %v5147_v61 = vpop.eup %5146 }
 0x8ab   : > { %v5149_v28 = vpop.eup %5148 }
 0x8ac   : > { %v5151_v2 = vpop.eup %5150 }
 0x8ad   : > { %1828 = vmatpush2.xpose.msra.mxu1 %v5125_v56  ;;  %1899 = vmatpush2.xpose.msra.mxu0 %v5125_v56  ;;  %v5153_v24 = vpop.eup %5152 }
 0x8ae   : > { %1829 = vmatprep.subr.mxu1 %v5127_v48  ;;  %1900 = vmatprep.subr.mxu0 %v5127_v48  ;;  %v5155_v3 = vpop.eup %5154 }
 0x8af   : > { %v5157_v53 = vpop.eup %5156 }
 0x8b1   : > { %1830 = vmatpush2.xpose.msra.mxu1 %v5129_v54  ;;  %1901 = vmatpush2.xpose.msra.mxu0 %v5129_v54 }
 0x8b2   : > { %1831 = vmatprep.subr.mxu1 %v5131_v47  ;;  %1902 = vmatprep.subr.mxu0 %v5131_v47 }
 0x8b5   : > { %1832 = vmatpush2.xpose.msra.mxu1 %v5133_v39  ;;  %1903 = vmatpush2.xpose.msra.mxu0 %v5133_v39 }
 0x8b6   : > { %1833 = vmatprep.subr.mxu1 %v5135_v15  ;;  %1904 = vmatprep.subr.mxu0 %v5135_v15 }
 0x8b9   : > { %1834 = vmatpush2.xpose.msra.mxu1 %v5137_v5  ;;  %1905 = vmatpush2.xpose.msra.mxu0 %v5137_v5 }
 0x8ba   : > { %1835 = vmatprep.subr.mxu1 %v5139_v50  ;;  %1906 = vmatprep.subr.mxu0 %v5139_v50 }
 0x8bd   : > { %1836 = vmatpush2.xpose.msra.mxu1 %v5141_v23  ;;  %1907 = vmatpush2.xpose.msra.mxu0 %v5141_v23 }
 0x8be   : > { %1837 = vmatprep.subr.mxu1 %v5143_v27  ;;  %1908 = vmatprep.subr.mxu0 %v5143_v27 }
 0x8c1   : > { %1838 = vmatpush2.xpose.msra.mxu1 %v5145_v30  ;;  %1909 = vmatpush2.xpose.msra.mxu0 %v5145_v30 }
 0x8c2   : > { %1839 = vmatprep.subr.mxu1 %v5147_v61  ;;  %1910 = vmatprep.subr.mxu0 %v5147_v61 }
 0x8c5   : > { %1840 = vmatpush2.xpose.msra.mxu1 %v5149_v28  ;;  %1911 = vmatpush2.xpose.msra.mxu0 %v5149_v28 }
 0x8c6   : > { %1841 = vmatprep.subr.mxu1 %v5151_v2  ;;  %1912 = vmatprep.subr.mxu0 %v5151_v2 }
 0x8c9   : > { %1842 = vmatpush2.xpose.msra.mxu1 %v5153_v24  ;;  %1913 = vmatpush2.xpose.msra.mxu0 %v5153_v24  ;;  %v6420_v6 = vpop.f32.mrf.mxu1 }
 0x8ca   : > { %1843 = vmatprep.subr.mxu1 %v5155_v3  ;;  %1914 = vmatprep.subr.mxu0 %v5155_v3  ;;  %7748 = vst [vmem:[#allocation12_spill] sm:$0xff] %v6420_v6 }
 0x8cb   : > { %v6424_v42 = vpop.f32.mrf.mxu1 }
 0x8cc   : > { %7749 = vst [vmem:[#allocation26_spill] sm:$0xff] %v6424_v42 }
 0x8cd   : > { %1844 = vmatpush2.xpose.msra.mxu1 %v5157_v53  ;;  %1915 = vmatpush2.xpose.msra.mxu0 %v5157_v53 }
 0x8ce   : > { %2129 = vmatprep.subr.mxu1 %v1038_v21 }
 0x8d0   : > { %1846 = vmatmul.mubr.f32.vlgmr.msra.gmra.mxu1 %v1054_v14  ;;  %1917 = vmatmul.mubr.f32.vlgmr.msra.gmra.mxu0 %v7648_v41  ;;  %v6428_v9 = vpop.f32.mrf.mxu1 }
 0x8d1   : > { %2130 = vmatpush1.msra.mxu1 %v1036_v13  ;;  %2163 = vmatprep.mubr.f32.mxu1 %v7747_v59  ;;  %7750 = vst [vmem:[#allocation6_spill] sm:$0xff] %v6428_v9 }
 0x8d2   : > { %v6432_v15 = vpop.f32.mrf.mxu1 }
 0x8d3   : > { %7751 = vst [vmem:[#allocation7_spill] sm:$0xff] %v6432_v15 }
 0x8d9   : > { %v6434_v32 = vpop.f32.mrf.mxu1 }
 0x8da   : > { %7752 = vst [vmem:[#allocation25_spill] sm:$0xff] %v6434_v32 }
 0x8db   : > { %v6438_v5 = vpop.f32.mrf.mxu1 }
 0x8dc   : > { %7754 = vst [vmem:[#allocation23_spill] sm:$0xff] %v6438_v5 }
 0x913   : > { %v1955_v0 = vpop.trf.xlu1  ;;  %v1987_v35 = vpop.trf.xlu0 }
 0x914   : > { %4810 = vmatmul.mubr.msk.f32.vlgmr.msra.gmra.mxu1 %vm470_vm2, %v1955_v0 }
 0x915   : > { %2169 = vmatprep.mubr.f32.mxu1 %v7747_v59 }
 0x917   : > { %v1956_v26 = vpop.trf.xlu1  ;;  %v1988_v45 = vpop.trf.xlu0 }
 0x918   : > { %4811 = vmatmul.mubr.msk.f32.gmra.mxu1 %vm470_vm2, %v1956_v26 }
 0x919   : > { %2175 = vmatprep.mubr.f32.mxu1 %v7747_v59 }
 0x91b   : > { %v1957_v4 = vpop.trf.xlu1  ;;  %v1989_v10 = vpop.trf.xlu0 }
 0x91c   : > { %4812 = vmatmul.mubr.msk.f32.gmra.mxu1 %vm470_vm2, %v1957_v4 }
 0x91d   : > { %2181 = vmatprep.mubr.f32.mxu1 %v7747_v59 }
 0x91f   : > { %v1958_v1 = vpop.trf.xlu1  ;;  %v1990_v49 = vpop.trf.xlu0 }
 0x920   : > { %4813 = vmatmul.mubr.msk.f32.gmra.mxu1 %vm470_vm2, %v1958_v1 }
 0x921   : > { %2187 = vmatprep.mubr.f32.mxu1 %v7747_v59 }
 0x923   : > { %v1959_v34 = vpop.trf.xlu1  ;;  %v1991_v44 = vpop.trf.xlu0 }
 0x924   : > { %4814 = vmatmul.mubr.msk.f32.gmra.mxu1 %vm470_vm2, %v1959_v34 }
 0x925   : > { %2193 = vmatprep.mubr.f32.mxu1 %v7747_v59 }
 0x927   : > { %v1960_v12 = vpop.trf.xlu1  ;;  %v1992_v48 = vpop.trf.xlu0 }
 0x928   : > { %4815 = vmatmul.mubr.msk.f32.gmra.mxu1 %vm470_vm2, %v1960_v12 }
 0x929   : > { %2199 = vmatprep.mubr.f32.mxu1 %v7747_v59 }
 0x92b   : > { %v1961_v31 = vpop.trf.xlu1  ;;  %v1993_v7 = vpop.trf.xlu0 }
 0x92c   : > { %4816 = vmatmul.mubr.msk.f32.gmra.mxu1 %vm470_vm2, %v1961_v31 }
 0x92d   : > { %2205 = vmatprep.mubr.f32.mxu1 %v7747_v59 }
 0x92f   : > { %v1962_v20 = vpop.trf.xlu1  ;;  %v1994_v43 = vpop.trf.xlu0 }
 0x930   : > { %4817 = vmatmul.mubr.msk.f32.gmra.mxu1 %vm470_vm2, %v1962_v20 }
 0x931   : > { %2211 = vmatprep.mubr.f32.mxu1 %v7747_v59 }
 0x933   : > { %v1963_v33 = vpop.trf.xlu1  ;;  %v1995_v63 = vpop.trf.xlu0 }
 0x934   : > { %4818 = vmatmul.mubr.msk.f32.gmra.mxu1 %vm470_vm2, %v1963_v33 }
 0x935   : > { %2217 = vmatprep.mubr.f32.mxu1 %v7747_v59 }
 0x937   : > { %v1964_v11 = vpop.trf.xlu1  ;;  %v1996_v54 = vpop.trf.xlu0 }
 0x938   : > { %4819 = vmatmul.mubr.msk.f32.gmra.mxu1 %vm470_vm2, %v1964_v11 }
 0x939   : > { %2223 = vmatprep.mubr.f32.mxu1 %v7747_v59 }
 0x93b   : > { %v1965_v57 = vpop.trf.xlu1  ;;  %v1997_v37 = vpop.trf.xlu0 }
 0x93c   : > { %4820 = vmatmul.mubr.msk.f32.gmra.mxu1 %vm470_vm2, %v1965_v57 }
 0x93d   : > { %2229 = vmatprep.mubr.f32.mxu1 %v7747_v59 }
 0x93f   : > { %v1966_v17 = vpop.trf.xlu1  ;;  %v1998_v51 = vpop.trf.xlu0 }
 0x940   : > { %4821 = vmatmul.mubr.msk.f32.gmra.mxu1 %vm470_vm2, %v1966_v17 }
 0x941   : > { %2235 = vmatprep.mubr.f32.mxu1 %v7747_v59 }
 0x943   : > { %v1967_v36 = vpop.trf.xlu1  ;;  %v1999_v52 = vpop.trf.xlu0 }
 0x944   : > { %4822 = vmatmul.mubr.msk.f32.gmra.mxu1 %vm470_vm2, %v1967_v36 }
 0x945   : > { %2241 = vmatprep.mubr.f32.mxu1 %v7747_v59 }
 0x947   : > { %v1968_v56 = vpop.trf.xlu1  ;;  %v2000_v47 = vpop.trf.xlu0 }
 0x948   : > { %4823 = vmatmul.mubr.msk.f32.gmra.mxu1 %vm470_vm2, %v1968_v56 }
 0x949   : > { %2247 = vmatprep.mubr.f32.mxu1 %v7747_v59 }
 0x94b   : > { %v1969_v58 = vpop.trf.xlu1  ;;  %v2001_v16 = vpop.trf.xlu0 }
 0x94c   : > { %4824 = vmatmul.mubr.msk.f32.gmra.mxu1 %vm470_vm2, %v1969_v58 }
 0x94d   : > { %2253 = vmatprep.mubr.f32.mxu1 %v7747_v59 }
 0x94f   : > { %v1970_v55 = vpop.trf.xlu1  ;;  %v2002_v39 = vpop.trf.xlu0 }
 0x950   : > { %4825 = vmatmul.mubr.msk.f32.gmra.mxu1 %vm470_vm2, %v1970_v55 }
 0x951   : > { %2259 = vmatprep.mubr.f32.mxu1 %v7747_v59 }
 0x954   : > { %4826 = vmatmul.mubr.msk.f32.gmra.mxu1 %vm470_vm2, %v1987_v35 }
 0x955   : > { %2265 = vmatprep.mubr.f32.mxu1 %v7747_v59 }
 0x958   : > { %4827 = vmatmul.mubr.msk.f32.gmra.mxu1 %vm470_vm2, %v1988_v45 }
 0x959   : > { %2271 = vmatprep.mubr.f32.mxu1 %v7747_v59 }
 0x95c   : > { %4828 = vmatmul.mubr.msk.f32.gmra.mxu1 %vm470_vm2, %v1989_v10 }
 0x95d   : > { %2277 = vmatprep.mubr.f32.mxu1 %v7747_v59 }
 0x960   : > { %4829 = vmatmul.mubr.msk.f32.gmra.mxu1 %vm470_vm2, %v1990_v49 }
 0x961   : > { %2283 = vmatprep.mubr.f32.mxu1 %v7747_v59 }
 0x964   : > { %4830 = vmatmul.mubr.msk.f32.gmra.mxu1 %vm470_vm2, %v1991_v44 }
 0x965   : > { %2289 = vmatprep.mubr.f32.mxu1 %v7747_v59 }
 0x968   : > { %4831 = vmatmul.mubr.msk.f32.gmra.mxu1 %vm470_vm2, %v1992_v48 }
 0x969   : > { %2295 = vmatprep.mubr.f32.mxu1 %v7747_v59 }
 0x96c   : > { %4832 = vmatmul.mubr.msk.f32.gmra.mxu1 %vm470_vm2, %v1993_v7 }
 0x96d   : > { %2301 = vmatprep.mubr.f32.mxu1 %v7747_v59 }
 0x970   : > { %4833 = vmatmul.mubr.msk.f32.gmra.mxu1 %vm470_vm2, %v1994_v43 }
 0x971   : > { %2307 = vmatprep.mubr.f32.mxu1 %v7747_v59 }
 0x974   : > { %4834 = vmatmul.mubr.msk.f32.gmra.mxu1 %vm470_vm2, %v1995_v63 }
 0x975   : > { %2313 = vmatprep.mubr.f32.mxu1 %v7747_v59 }
 0x978   : > { %4835 = vmatmul.mubr.msk.f32.gmra.mxu1 %vm470_vm2, %v1996_v54 }
 0x979   : > { %2319 = vmatprep.mubr.f32.mxu1 %v7747_v59 }
 0x97c   : > { %4836 = vmatmul.mubr.msk.f32.gmra.mxu1 %vm470_vm2, %v1997_v37 }
 0x97d   : > { %2325 = vmatprep.mubr.f32.mxu1 %v7747_v59 }
 0x980   : > { %4837 = vmatmul.mubr.msk.f32.gmra.mxu1 %vm470_vm2, %v1998_v51 }
 0x981   : > { %2331 = vmatprep.mubr.f32.mxu1 %v7747_v59 }
 0x984   : > { %4838 = vmatmul.mubr.msk.f32.gmra.mxu1 %vm470_vm2, %v1999_v52 }
 0x985   : > { %2337 = vmatprep.mubr.f32.mxu1 %v7747_v59 }
 0x988   : > { %4839 = vmatmul.mubr.msk.f32.gmra.mxu1 %vm470_vm2, %v2000_v47 }
 0x989   : > { %2343 = vmatprep.mubr.f32.mxu1 %v7747_v59 }
 0x98c   : > { %4840 = vmatmul.mubr.msk.f32.gmra.mxu1 %vm470_vm2, %v2001_v16 }
 0x98d   : > { %2349 = vmatprep.mubr.f32.mxu1 %v7747_v59 }
 0x990   : > { %v1918_v18 = vpop.f32.mrf.mxu0  ;;  %4841 = vmatmul.mubr.msk.f32.gmra.mxu1 %vm470_vm2, %v2002_v39  ;;  %v1847_v22 = vpop.f32.mrf.mxu1 }
 0x991   : > { %5158 = vrcp.f32 %v1918_v18  ;;  %2779 = vmatprep.mubr.f32.mxu1 %v7648_v41 }
 0x992   : > { %v6443_v27 = vpop.f32.mrf.mxu1 }
 0x993   : > { %7756 = vst [vmem:[#allocation21_spill] sm:$0xff] %v6443_v27 }
 0x99e   : > { %v5159_v29 = vpop.eup %5158 }
 0x99f   : > { %v1930_v50 = vrot.slane %v5159_v29, %v6436_v38 }
 0x9a1   : > { %v6441_v23 = vmul.f32 %v1930_v50, %v1847_v22 }
 0x9a3   : > { %7755 = vst [vmem:[#allocation22_spill] sm:$0xff] %v6441_v23 }
 0x9d4   : > { %v6445_v30 = vpop.f32.mrf.mxu1 }
 0x9d5   : > { %7757 = vst [vmem:[#allocation20_spill] sm:$0xff] %v6445_v30 }
 0x9d6   : > { %v6447_v61 = vpop.f32.mrf.mxu1 }
 0x9d7   : > { %7758 = vst [vmem:[#allocation19_spill] sm:$0xff] %v6447_v61  ;;  %v2356_v23 = vmax.f32 %v6445_v30, %v6447_v61 }
 0x9d8   : > { %v6449_v28 = vpop.f32.mrf.mxu1 }
 0x9d9   : > { %7759 = vst [vmem:[#allocation18_spill] sm:$0xff] %v6449_v28 }
 0x9da   : > { %v6451_v2 = vpop.f32.mrf.mxu1 }
 0x9db   : > { %7760 = vst [vmem:[#allocation17_spill] sm:$0xff] %v6451_v2 }
 0x9dc   : > { %v6453_v24 = vpop.f32.mrf.mxu1 }
 0x9dd   : > { %7761 = vst [vmem:[#allocation27_spill] sm:$0xff] %v6453_v24 }
 0x9de   : > { %v6455_v3 = vpop.f32.mrf.mxu1 }
 0x9e0   : > { %v6457_v25 = vpop.f32.mrf.mxu1 }
 0x9e2   : > { %v6459_v53 = vpop.f32.mrf.mxu1 }
 0x9e4   : > { %v6461_v21 = vpop.f32.mrf.mxu1 }
 0x9e6   : > { %v6463_v14 = vpop.f32.mrf.mxu1 }
 0x9e8   : > { %v6465_v13 = vpop.f32.mrf.mxu1 }
 0x9ea   : > { %v6467_v0 = vpop.f32.mrf.mxu1 }
 0x9ec   : > { %v6469_v26 = vpop.f32.mrf.mxu1 }
 0x9ee   : > { %v6471_v4 = vpop.f32.mrf.mxu1 }
 0x9f0   : > { %v6473_v1 = vpop.f32.mrf.mxu1 }
 0x9f2   : > { %v6475_v34 = vpop.f32.mrf.mxu1 }
 0x9f3   : > { %v2377_v60 = vmax.f32 %v6473_v1, %v6475_v34 }
 0x9f4   : > { %v6477_v12 = vpop.f32.mrf.mxu1 }
 0x9f6   : > { %v6479_v31 = vpop.f32.mrf.mxu1 }
 0x9f7   : > { %v2380_v29 = vmax.f32 %v6477_v12, %v6479_v31 }
 0x9f8   : > { %v6481_v20 = vpop.f32.mrf.mxu1 }
 0x9fa   : > { %v6483_v33 = vpop.f32.mrf.mxu1 }
 0x9fb   : > { %v2383_v16 = vmax.f32 %v6481_v20, %v6483_v33 }
 0x9fc   : > { %v6485_v35 = vpop.f32.mrf.mxu1 }
 0x9fe   : > { %v6487_v11 = vpop.f32.mrf.mxu1 }
 0x9ff   : > { %v2386_v39 = vmax.f32 %v6485_v35, %v6487_v11 }
 0xa00   : > { %v6489_v45 = vpop.f32.mrf.mxu1 }
 0xa02   : > { %v6491_v57 = vpop.f32.mrf.mxu1 }
 0xa03   : > { %v2389_v37 = vmax.f32 %v6489_v45, %v6491_v57 }
 0xa04   : > { %v6493_v17 = vpop.f32.mrf.mxu1 }
 0xa06   : > { %v6495_v10 = vpop.f32.mrf.mxu1 }
 0xa07   : > { %v2392_v51 = vmax.f32 %v6493_v17, %v6495_v10 }
 0xa08   : > { %v6497_v36 = vpop.f32.mrf.mxu1 }
 0xa0a   : > { %v6499_v49 = vpop.f32.mrf.mxu1 }
 0xa0b   : > { %v2395_v7 = vmax.f32 %v6497_v36, %v6499_v49 }
 0xa0c   : > { %v6501_v56 = vpop.f32.mrf.mxu1 }
 0xa0e   : > { %v6503_v58 = vpop.f32.mrf.mxu1 }
 0xa0f   : > { %v2398_v44 = vmax.f32 %v6501_v56, %v6503_v58 }
 0xa10   : > { %v6507_v55 = vpop.f32.mrf.mxu1 }
 0xa11   : > { %2399 = vmax.xlane.f32.xlu1 %v2398_v44  ;;  %v2371_v44 = vmax.f32 %v6465_v13, %v6467_v0 }
 0xa12   : > { %v6509_v48 = vpop.f32.mrf.mxu1 }
 0xa13   : > { %v2401_v43 = vmax.f32 %v6507_v55, %v6509_v48 }
 0xa14   : > { %v6515_v63 = vpop.f32.mrf.mxu1 }
 0xa15   : > { %7762 = vst [vmem:[#allocation28_spill] sm:$0xff] %v6515_v63  ;;  %2396 = vmax.xlane.f32.xlu1 %v2395_v7  ;;  %2402 = vmax.xlane.f32.xlu0 %v2401_v43  ;;  %v2374_v7 = vmax.f32 %v6469_v26, %v6471_v4 }
 0xa16   : > { %v6517_v54 = vpop.f32.mrf.mxu1 }
 0xa17   : > { %7763 = vst [vmem:[#allocation29_spill] sm:$0xff] %v6517_v54 }
 0xa18   : > { %v6523_v52 = vpop.f32.mrf.mxu1 }
 0xa19   : > { %7764 = vst [vmem:[#allocation30_spill] sm:$0xff] %v6523_v52  ;;  %2390 = vmax.xlane.f32.xlu1 %v2389_v37  ;;  %2393 = vmax.xlane.f32.xlu0 %v2392_v51  ;;  %v2365_v51 = vmax.f32 %v6457_v25, %v6459_v53 }
 0xa1a   : > { %v6525_v47 = vpop.f32.mrf.mxu1 }
 0xa1b   : > { %7765 = vst [vmem:[#allocation31_spill] sm:$0xff] %v6525_v47 }
 0xa1c   : > { %v6531_v18 = vpop.f32.mrf.mxu1 }
 0xa1d   : > { %7766 = vst [vmem:[#allocation32_spill] sm:$0xff] %v6531_v18  ;;  %2384 = vmax.xlane.f32.xlu1 %v2383_v16  ;;  %2387 = vmax.xlane.f32.xlu0 %v2386_v39  ;;  %v2368_v16 = vmax.f32 %v6461_v21, %v6463_v14 }
 0xa1e   : > { %v6533_v62 = vpop.f32.mrf.mxu1 }
 0xa1f   : > { %7767 = vst [vmem:[#allocation33_spill] sm:$0xff] %v6533_v62 }
 0xa20   : > { %v6539_v50 = vpop.f32.mrf.mxu1 }
 0xa21   : > { %7768 = vst [vmem:[#allocation34_spill] sm:$0xff] %v6539_v50  ;;  %2378 = vmax.xlane.f32.xlu1 %v2377_v60  ;;  %2381 = vmax.xlane.f32.xlu0 %v2380_v29  ;;  %v2359_v29 = vmax.f32 %v6449_v28, %v6451_v2 }
 0xa22   : > { %v6541_v22 = vpop.f32.mrf.mxu1 }
 0xa23   : > { %7769 = vst [vmem:[#allocation35_spill] sm:$0xff] %v6541_v22 }
 0xa24   : > { %v6547_v43 = vpop.f32.mrf.mxu1 }
 0xa25   : > { %7770 = vst [vmem:[#allocation36_spill] sm:$0xff] %v6547_v43  ;;  %2372 = vmax.xlane.f32.xlu1 %v2371_v44  ;;  %2375 = vmax.xlane.f32.xlu0 %v2374_v7  ;;  %v2362_v44 = vmax.f32 %v6453_v24, %v6455_v3 }
 0xa26   : > { %v6549_v37 = vpop.f32.mrf.mxu1 }
 0xa28   : > { %v6555_v39 = vpop.f32.mrf.mxu1 }
 0xa29   : > { %2366 = vmax.xlane.f32.xlu1 %v2365_v51  ;;  %2369 = vmax.xlane.f32.xlu0 %v2368_v16 }
 0xa2a   : > { %v6557_v60 = vpop.f32.mrf.mxu1 }
 0xa2c   : > { %v6563_v7 = vpop.f32.mrf.mxu1 }
 0xa2d   : > { %2360 = vmax.xlane.f32.xlu1 %v2359_v29  ;;  %2363 = vmax.xlane.f32.xlu0 %v2362_v44 }
 0xa2e   : > { %v6565_v41 = vpop.f32.mrf.mxu1 }
 0xa30   : > { %v6569_v27 = vpop.f32.mrf.mxu1 }
 0xa31   : > { %2357 = vmax.xlane.f32.xlu0 %v2356_v23 }
 0xa32   : > { %v6571_v51 = vpop.f32.mrf.mxu1 }
 0xa34   : > { %v6573_v16 = vpop.f32.mrf.mxu1 }
 0xa36   : > { %v6575_v32 = vpop.f32.mrf.mxu1 }
 0xa38   : > { %v6577_v5 = vpop.f32.mrf.mxu1 }
 0xa3a   : > { %v6579_v46 = vpop.f32.mrf.mxu1 }
 0xa3c   : > { %v6581_v29 = vpop.f32.mrf.mxu1 }
 0xa3e   : > { %v6583_v44 = vpop.f32.mrf.mxu1 }
 0xa3f   : > { %v2434_v2 = vmax.f32 %v6581_v29, %v6583_v44 }
 0xa40   : > { %v6585_v9 = vpop.f32.mrf.mxu1 }
 0xa42   : > { %v6587_v19 = vpop.f32.mrf.mxu1 }
 0xa44   : > { %v6589_v15 = vpop.f32.mrf.mxu1 }
 0xa46   : > { %v6591_v23 = vpop.f32.mrf.mxu1 }
 0xa47   : > { %v2440_v61 = vmax.f32 %v6589_v15, %v6591_v23 }
 0xa48   : > { %v6593_v38 = vpop.f32.mrf.mxu1 }
 0xa4a   : > { %v6595_v59 = vpop.f32.mrf.mxu1 }
 0xa4b   : > { %v2443_v24 = vmax.f32 %v6593_v38, %v6595_v59 }
 0xa4c   : > { %v6597_v40 = vpop.f32.mrf.mxu1 }
 0xa4d   : > { %7771 = vst [vmem:[#allocation37_spill] sm:$0xff] %v6597_v40 }
 0xa4e   : > { %v6599_v6 = vpop.f32.mrf.mxu1 }
 0xa4f   : > { %v2446_v8 = vmax.f32 %v6597_v40, %v6599_v6  ;;  %v2437_v40 = vmax.f32 %v6585_v9, %v6587_v19 }
 0xa50   : > { %v6603_v42 = vpop.f32.mrf.mxu1 }
 0xa51   : > { %2447 = vmax.xlane.f32.xlu0 %v2446_v8  ;;  %v2428_v8 = vmax.f32 %v6573_v16, %v6575_v32 }
 0xa52   : > { %v6605_v30 = vpop.f32.mrf.mxu1 }
 0xa53   : > { %v2449_v28 = vmax.f32 %v6603_v42, %v6605_v30 }
 0xa55   : > { %2441 = vmax.xlane.f32.xlu0 %v2440_v61  ;;  %2450 = vmax.xlane.f32.xlu1 %v2449_v28  ;;  %v2422_v61 = vmax.f32 %v6563_v7, %v6565_v41  ;;  %v2431_v28 = vmax.f32 %v6577_v5, %v6579_v46 }
 0xa59   : > { %2435 = vmax.xlane.f32.xlu0 %v2434_v2  ;;  %2444 = vmax.xlane.f32.xlu1 %v2443_v24  ;;  %v2416_v2 = vmax.f32 %v6547_v43, %v6549_v37  ;;  %v2425_v24 = vmax.f32 %v6569_v27, %v6571_v51 }
 0xa5d   : > { %2429 = vmax.xlane.f32.xlu0 %v2428_v8  ;;  %2438 = vmax.xlane.f32.xlu1 %v2437_v40  ;;  %v2410_v8 = vmax.f32 %v6531_v18, %v6533_v62  ;;  %v2419_v40 = vmax.f32 %v6555_v39, %v6557_v60 }
 0xa61   : > { %2423 = vmax.xlane.f32.xlu0 %v2422_v61  ;;  %2432 = vmax.xlane.f32.xlu1 %v2431_v28  ;;  %v2413_v61 = vmax.f32 %v6539_v50, %v6541_v22  ;;  %v2407_v28 = vmax.f32 %v6523_v52, %v6525_v47 }
 0xa65   : > { %2417 = vmax.xlane.f32.xlu0 %v2416_v2  ;;  %2426 = vmax.xlane.f32.xlu1 %v2425_v24  ;;  %v2404_v2 = vmax.f32 %v6515_v63, %v6517_v54  ;;  %v358_v24 = vld [vmem:[%s7626_s6 + $0x10] sm:$0xff] }
 0xa69   : > { %2411 = vmax.xlane.f32.xlu0 %v2410_v8  ;;  %2420 = vmax.xlane.f32.xlu1 %v2419_v40  ;;  %v362_v8 = vld [vmem:[%s7626_s6 + $0x30] sm:$0xff]  ;;  %v365_v40 = vld [vmem:[%s7626_s6 + $0x48] sm:$0xff] }
 0xa6d   : > { %2414 = vmax.xlane.f32.xlu1 %v2413_v61 }
 0xa71   : > { %2408 = vmax.xlane.f32.xlu1 %v2407_v28 }
 0xa75   : > { %2405 = vmax.xlane.f32.xlu1 %v2404_v2 }
 0xa7f   : > { %855 = vperm.xlu0 %5020, %v358_v24  }
 0xa83   : > { %875 = vperm.xlu0 %5020, %v362_v8  }
 0xa86   : > { %890 = vperm.xlu1 %5021, %v365_v40  }
 0xa9a   : > { %v2400_v61 = vpop.xlane.xlu1 %2399 }
 0xa9b   : > { %v2481_v28 = vsub.f32 %v6503_v58, %v2400_v61  ;;  %v2480_v24 = vsub.f32 %v6501_v56, %v2400_v61 }
 0xa9d   : > { %v2574_v62 = vmul.f32 1.442695, %v2481_v28  ;;  %v2572_v40 = vmul.f32 1.442695, %v2480_v24 }
 0xa9e   : > { %v2403_v63 = vpop.xlane.xlu0 %2402  ;;  %v2397_v52 = vpop.xlane.xlu1 %2396 }
 0xa9f   : > { %v2482_v2 = vsub.f32 %v6507_v55, %v2403_v63  ;;  %v2483_v54 = vsub.f32 %v6509_v48, %v2403_v63  ;;  %v2479_v8 = vsub.f32 %v6499_v49, %v2397_v52  ;;  %v2478_v22 = vsub.f32 %v6497_v36, %v2397_v52 }
 0xaa1   : > { %v2576_v47 = vmul.f32 1.442695, %v2482_v2  ;;  %v2578_v18 = vmul.f32 1.442695, %v2483_v54  ;;  %v2570_v58 = vmul.f32 1.442695, %v2479_v8 }
 0xaa2   : > { %v2394_v50 = vpop.xlane.xlu0 %2393  ;;  %v2391_v43 = vpop.xlane.xlu1 %2390  ;;  %v2568_v48 = vmul.f32 1.442695, %v2478_v22 }
 0xaa3   : > { %5160 = vpow2.f32 %v2576_v47  ;;  %v2477_v55 = vsub.f32 %v6495_v10, %v2394_v50  ;;  %v2476_v56 = vsub.f32 %v6493_v17, %v2394_v50  ;;  %v2475_v54 = vsub.f32 %v6491_v57, %v2391_v43 }
 0xaa4   : > { %5162 = vpow2.f32 %v2578_v18  ;;  %v2474_v18 = vsub.f32 %v6489_v45, %v2391_v43 }
 0xaa5   : > { %5164 = vpow2.f32 %v2574_v62  ;;  %v2566_v63 = vmul.f32 1.442695, %v2477_v55  ;;  %v2564_v47 = vmul.f32 1.442695, %v2476_v56  ;;  %v2562_v36 = vmul.f32 1.442695, %v2475_v54 }
 0xaa6   : > { %5166 = vpow2.f32 %v2572_v40  ;;  %v2388_v49 = vpop.xlane.xlu0 %2387  ;;  %v2385_v62 = vpop.xlane.xlu1 %2384  ;;  %v2560_v22 = vmul.f32 1.442695, %v2474_v18 }
 0xaa7   : > { %5168 = vpow2.f32 %v2570_v58  ;;  %v2473_v52 = vsub.f32 %v6487_v11, %v2388_v49  ;;  %v2472_v17 = vsub.f32 %v6485_v35, %v2388_v49  ;;  %v2471_v57 = vsub.f32 %v6483_v33, %v2385_v62 }
 0xaa8   : > { %5170 = vpow2.f32 %v2568_v48  ;;  %v2470_v45 = vsub.f32 %v6481_v20, %v2385_v62 }
 0xaa9   : > { %5172 = vpow2.f32 %v2566_v63  ;;  %v2558_v50 = vmul.f32 1.442695, %v2473_v52  ;;  %v2556_v11 = vmul.f32 1.442695, %v2472_v17  ;;  %v2554_v24 = vmul.f32 1.442695, %v2471_v57 }
 0xaaa   : > { %5174 = vpow2.f32 %v2564_v47  ;;  %v2382_v2 = vpop.xlane.xlu0 %2381  ;;  %v2379_v40 = vpop.xlane.xlu1 %2378  ;;  %v2552_v33 = vmul.f32 1.442695, %v2470_v45 }
 0xaab   : > { %5176 = vpow2.f32 %v2562_v36  ;;  %v2469_v35 = vsub.f32 %v6479_v31, %v2382_v2  ;;  %v2468_v58 = vsub.f32 %v6477_v12, %v2382_v2  ;;  %v2467_v20 = vsub.f32 %v6475_v34, %v2379_v40 }
 0xaac   : > { %5178 = vpow2.f32 %v2560_v22  ;;  %v2466_v54 = vsub.f32 %v6473_v1, %v2379_v40 }
 0xaad   : > { %5180 = vpow2.f32 %v2558_v50  ;;  %v2550_v48 = vmul.f32 1.442695, %v2469_v35  ;;  %v2548_v31 = vmul.f32 1.442695, %v2468_v58  ;;  %v2546_v47 = vmul.f32 1.442695, %v2467_v20 }
 0xaae   : > { %5182 = vpow2.f32 %v2556_v11  ;;  %v2376_v63 = vpop.xlane.xlu0 %2375  ;;  %v2373_v36 = vpop.xlane.xlu1 %2372  ;;  %v2544_v34 = vmul.f32 1.442695, %v2466_v54 }
 0xaaf   : > { %5184 = vpow2.f32 %v2554_v24  ;;  %v2465_v12 = vsub.f32 %v6471_v4, %v2376_v63  ;;  %v2464_v52 = vsub.f32 %v6469_v26, %v2376_v63  ;;  %v2463_v1 = vsub.f32 %v6467_v0, %v2373_v36 }
 0xab0   : > { %v5161_v10 = vpop.eup %5160  ;;  %5186 = vpow2.f32 %v2552_v33  ;;  %v2462_v17 = vsub.f32 %v6465_v13, %v2373_v36 }
 0xab1   : > { %v5163_v61 = vpop.eup %5162  ;;  %5188 = vpow2.f32 %v2550_v48  ;;  %v2540_v4 = vmul.f32 1.442695, %v2464_v52  ;;  %v2538_v57 = vmul.f32 1.442695, %v2463_v1  ;;  %v7772_v48 = vld [vmem:[#allocation27_spill] sm:$0xff]  ;;  %v7776_v1 = vld [vmem:[#allocation20_spill] sm:$0xff] }
 0xab2   : > { %2644 = vmatprep.subr.mxu0 %v5163_v61  ;;  %2715 = vmatprep.subr.mxu1 %v5163_v61  ;;  %v5165_v28 = vpop.eup %5164  ;;  %5190 = vpow2.f32 %v2548_v31  ;;  %v2370_v22 = vpop.xlane.xlu0 %2369  ;;  %v2536_v0 = vmul.f32 1.442695, %v2462_v17  ;;  %v7773_v31 = vld [vmem:[#allocation17_spill] sm:$0xff] }
 0xab3   : > { %2645 = vmatpush1.xpose.msra.mxu0 %v5161_v10  ;;  %2716 = vmatpush1.xpose.msra.mxu1 %v5161_v10  ;;  %v5167_v43 = vpop.eup %5166  ;;  %5192 = vpow2.f32 %v2546_v47  ;;  %v2542_v10 = vmul.f32 1.442695, %v2465_v12  ;;  %v2461_v26 = vsub.f32 %v6463_v14, %v2370_v22  ;;  %v2367_v2 = vpop.xlane.xlu1 %2366  ;;  %v2460_v11 = vsub.f32 %v6461_v21, %v2370_v22  ;;  %v7774_v47 = vld [vmem:[#allocation18_spill] sm:$0xff] }
 0xab4   : > { %2646 = vmatprep.subr.mxu0 %v5165_v28  ;;  %2717 = vmatprep.subr.mxu1 %v5165_v28  ;;  %v5169_v8 = vpop.eup %5168  ;;  %5194 = vpow2.f32 %v2544_v34  ;;  %v2459_v13 = vsub.f32 %v6459_v53, %v2367_v2  ;;  %v7775_v34 = vld [vmem:[#allocation19_spill] sm:$0xff] }
 0xab5   : > { %v5171_v55 = vpop.eup %5170  ;;  %5196 = vpow2.f32 %v2542_v10  ;;  %v2532_v14 = vmul.f32 1.442695, %v2460_v11 }
 0xab6   : > { %v5173_v56 = vpop.eup %5172  ;;  %5198 = vpow2.f32 %v2540_v4  ;;  %v2364_v35 = vpop.xlane.xlu0 %2363  ;;  %v2530_v33 = vmul.f32 1.442695, %v2459_v13 }
 0xab7   : > { %2647 = vmatpush1.xpose.msra.mxu0 %v5167_v43  ;;  %2718 = vmatpush1.xpose.msra.mxu1 %v5167_v43  ;;  %v5175_v49 = vpop.eup %5174  ;;  %5200 = vpow2.f32 %v2538_v57  ;;  %v2534_v43 = vmul.f32 1.442695, %v2461_v26  ;;  %v2457_v21 = vsub.f32 %v6455_v3, %v2364_v35  ;;  %v2456_v20 = vsub.f32 %v7772_v48, %v2364_v35 }
 0xab8   : > { %2648 = vmatprep.subr.mxu0 %v5169_v8  ;;  %2719 = vmatprep.subr.mxu1 %v5169_v8  ;;  %v5177_v18 = vpop.eup %5176  ;;  %5202 = vpow2.f32 %v2536_v0  ;;  %v2458_v8 = vsub.f32 %v6457_v25, %v2367_v2 }
 0xab9   : > { %v5179_v62 = vpop.eup %5178  ;;  %5204 = vpow2.f32 %v2534_v43  ;;  %v2526_v63 = vmul.f32 1.442695, %v2457_v21  ;;  %v2524_v3 = vmul.f32 1.442695, %v2456_v20 }
 0xaba   : > { %v5181_v61 = vpop.eup %5180  ;;  %5206 = vpow2.f32 %v2532_v14  ;;  %v2528_v53 = vmul.f32 1.442695, %v2458_v8 }
 0xabb   : > { %2649 = vmatpush1.xpose.msra.mxu0 %v5171_v55  ;;  %2720 = vmatpush1.xpose.msra.mxu1 %v5171_v55  ;;  %v5183_v50 = vpop.eup %5182  ;;  %v2361_v55 = vpop.xlane.xlu1 %2360  ;;  %5208 = vpow2.f32 %v2530_v33  ;;  %v7777_v33 = vld [vmem:[#allocation37_spill] sm:$0xff] }
 0xabc   : > { %2650 = vmatprep.subr.mxu0 %v5173_v56  ;;  %2721 = vmatprep.subr.mxu1 %v5173_v56  ;;  %v5185_v28 = vpop.eup %5184  ;;  %v2455_v25 = vsub.f32 %v7773_v31, %v2361_v55  ;;  %5210 = vpow2.f32 %v2528_v53  ;;  %v2454_v12 = vsub.f32 %v7774_v47, %v2361_v55 }
 0xabd   : > { %v5187_v45 = vpop.eup %5186  ;;  %5212 = vpow2.f32 %v2526_v63 }
 0xabe   : > { %v5189_v24 = vpop.eup %5188  ;;  %v2522_v36 = vmul.f32 1.442695, %v2455_v25  ;;  %5214 = vpow2.f32 %v2524_v3  ;;  %v2520_v10 = vmul.f32 1.442695, %v2454_v12 }
 0xabf   : > { %2651 = vmatpush1.xpose.msra.mxu0 %v5175_v49  ;;  %2722 = vmatpush1.xpose.msra.mxu1 %v5175_v49  ;;  %v5191_v40 = vpop.eup %5190  ;;  %v2358_v49 = vpop.xlane.xlu0 %2357 }
 0xac0   : > { %2652 = vmatprep.subr.mxu0 %v5177_v18  ;;  %2723 = vmatprep.subr.mxu1 %v5177_v18  ;;  %v5193_v58 = vpop.eup %5192  ;;  %v2453_v52 = vsub.f32 %v7775_v34, %v2358_v49  ;;  %5216 = vpow2.f32 %v2522_v36 }
 0xac1   : > { %v5195_v56 = vpop.eup %5194  ;;  %5218 = vpow2.f32 %v2520_v10 }
 0xac2   : > { %v5197_v54 = vpop.eup %5196  ;;  %v2518_v4 = vmul.f32 1.442695, %v2453_v52 }
 0xac3   : > { %2653 = vmatpush1.xpose.msra.mxu0 %v5179_v62  ;;  %2724 = vmatpush1.xpose.msra.mxu1 %v5179_v62  ;;  %v5199_v18 = vpop.eup %5198 }
 0xac4   : > { %2654 = vmatprep.subr.mxu0 %v5181_v61  ;;  %2725 = vmatprep.subr.mxu1 %v5181_v61  ;;  %v5201_v62 = vpop.eup %5200  ;;  %v2452_v61 = vsub.f32 %v7776_v1, %v2358_v49  ;;  %5220 = vpow2.f32 %v2518_v4 }
 0xac5   : > { %v5203_v22 = vpop.eup %5202 }
 0xac6   : > { %v2516_v57 = vmul.f32 1.442695, %v2452_v61 }
 0xac7   : > { %2655 = vmatpush1.xpose.msra.mxu0 %v5183_v50  ;;  %2726 = vmatpush1.xpose.msra.mxu1 %v5183_v50  ;;  %v5205_v50 = vpop.eup %5204 }
 0xac8   : > { %2656 = vmatprep.subr.mxu0 %v5185_v28  ;;  %2727 = vmatprep.subr.mxu1 %v5185_v28  ;;  %v5207_v26 = vpop.eup %5206  ;;  %5222 = vpow2.f32 %v2516_v57 }
 0xac9   : > { %v5209_v0 = vpop.eup %5208 }
 0xacb   : > { %2657 = vmatpush1.xpose.msra.mxu0 %v5187_v45  ;;  %2728 = vmatpush1.xpose.msra.mxu1 %v5187_v45 }
 0xacc   : > { %2658 = vmatprep.subr.mxu0 %v5189_v24  ;;  %2729 = vmatprep.subr.mxu1 %v5189_v24  ;;  %v5211_v24 = vpop.eup %5210 }
 0xacf   : > { %2659 = vmatpush1.xpose.msra.mxu0 %v5191_v40  ;;  %2730 = vmatpush1.xpose.msra.mxu1 %v5191_v40  ;;  %v5213_v40 = vpop.eup %5212 }
 0xad0   : > { %2660 = vmatprep.subr.mxu0 %v5193_v58  ;;  %2731 = vmatprep.subr.mxu1 %v5193_v58 }
 0xad3   : > { %2661 = vmatpush1.xpose.msra.mxu0 %v5195_v56  ;;  %2732 = vmatpush1.xpose.msra.mxu1 %v5195_v56 }
 0xad4   : > { %2662 = vmatprep.subr.mxu0 %v5197_v54  ;;  %2733 = vmatprep.subr.mxu1 %v5197_v54 }
 0xad7   : > { %2663 = vmatpush1.xpose.msra.mxu0 %v5199_v18  ;;  %2734 = vmatpush1.xpose.msra.mxu1 %v5199_v18 }
 0xad8   : > { %2664 = vmatprep.subr.mxu0 %v5201_v62  ;;  %2735 = vmatprep.subr.mxu1 %v5201_v62 }
 0xada   : > { %v2448_v17 = vpop.xlane.xlu0 %2447 }
 0xadb   : > { %2665 = vmatpush1.xpose.msra.mxu0 %v5203_v22  ;;  %2736 = vmatpush1.xpose.msra.mxu1 %v5203_v22  ;;  %v2513_v45 = vsub.f32 %v6599_v6, %v2448_v17  ;;  %v2512_v21 = vsub.f32 %v7777_v33, %v2448_v17  ;;  %v5215_v6 = vpop.eup %5214 }
 0xadc   : > { %2666 = vmatprep.subr.mxu0 %v5205_v50  ;;  %2737 = vmatprep.subr.mxu1 %v5205_v50  ;;  %v5217_v53 = vpop.eup %5216 }
 0xadd   : > { %v2638_v58 = vmul.f32 1.442695, %v2513_v45  ;;  %v2636_v48 = vmul.f32 1.442695, %v2512_v21 }
 0xade   : > { %v2442_v28 = vpop.xlane.xlu0 %2441  ;;  %v2451_v2 = vpop.xlane.xlu1 %2450 }
 0xadf   : > { %2667 = vmatpush1.xpose.msra.mxu0 %v5207_v26  ;;  %2738 = vmatpush1.xpose.msra.mxu1 %v5207_v26  ;;  %v2514_v11 = vsub.f32 %v6603_v42, %v2451_v2  ;;  %v2515_v43 = vsub.f32 %v6605_v30, %v2451_v2  ;;  %v2509_v56 = vsub.f32 %v6591_v23, %v2442_v28 }
 0xae0   : > { %2668 = vmatprep.subr.mxu0 %v5209_v0  ;;  %2739 = vmatprep.subr.mxu1 %v5209_v0  ;;  %v2508_v49 = vsub.f32 %v6589_v15, %v2442_v28 }
 0xae1   : > { %v2640_v13 = vmul.f32 1.442695, %v2514_v11  ;;  %v2642_v35 = vmul.f32 1.442695, %v2515_v43 }
 0xae2   : > { %v6681_v14 = vpop.xlane.xlu0 %2435  ;;  %v2445_v8 = vpop.xlane.xlu1 %2444  ;;  %v2628_v18 = vmul.f32 1.442695, %v2508_v49 }
 0xae3   : > { %2669 = vmatpush1.xpose.msra.mxu0 %v5211_v24  ;;  %2740 = vmatpush1.xpose.msra.mxu1 %v5211_v24  ;;  %v2511_v42 = vsub.f32 %v6595_v59, %v2445_v8  ;;  %5224 = vpow2.f32 %v2640_v13  ;;  %v2510_v20 = vsub.f32 %v6593_v38, %v2445_v8  ;;  %v5219_v59 = vpop.eup %5218  ;;  %v2630_v38 = vmul.f32 1.442695, %v2509_v56  ;;  %v7779_v13 = vld [vmem:[#allocation9_spill] sm:$0xff] }
 0xae4   : > { %2670 = vmatprep.subr.mxu0 %v5213_v40  ;;  %2741 = vmatprep.subr.mxu1 %v5213_v40  ;;  %5226 = vpow2.f32 %v2642_v35  ;;  %v5221_v54 = vpop.eup %5220  ;;  %v2505_v15 = vsub.f32 %v6583_v44, %v6681_v14 }
 0xae5   : > { %5228 = vpow2.f32 %v2638_v58  ;;  %v2634_v63 = vmul.f32 1.442695, %v2511_v42  ;;  %v2632_v3 = vmul.f32 1.442695, %v2510_v20  ;;  %v5223_v23 = vpop.eup %5222 }
 0xae6   : > { %v6685_v30 = vpop.xlane.xlu0 %2429  ;;  %v2439_v55 = vpop.xlane.xlu1 %2438  ;;  %5230 = vpow2.f32 %v2636_v48  ;;  %v2622_v22 = vmul.f32 1.442695, %v2505_v15 }
 0xae7   : > { %2671 = vmatpush1.xpose.msra.mxu0 %v5215_v6  ;;  %2742 = vmatpush1.xpose.msra.mxu1 %v5215_v6  ;;  %5232 = vpow2.f32 %v2634_v63  ;;  %v2507_v47 = vsub.f32 %v6587_v19, %v2439_v55  ;;  %v2506_v36 = vsub.f32 %v6585_v9, %v2439_v55  ;;  %v2504_v19 = vsub.f32 %v6581_v29, %v6681_v14  ;;  %v7780_v55 = vld [vmem:[#allocation26_spill] sm:$0xff] }
 0xae8   : > { %2672 = vmatprep.subr.mxu0 %v5217_v53  ;;  %2743 = vmatprep.subr.mxu1 %v5217_v53  ;;  %5234 = vpow2.f32 %v2632_v3  ;;  %v2500_v11 = vsub.f32 %v6573_v16, %v6685_v30 }
 0xae9   : > { %5236 = vpow2.f32 %v2630_v38  ;;  %v2626_v34 = vmul.f32 1.442695, %v2507_v47  ;;  %v2624_v61 = vmul.f32 1.442695, %v2506_v36  ;;  %v2620_v44 = vmul.f32 1.442695, %v2504_v19 }
 0xaea   : > { %v6689_v31 = vpop.xlane.xlu0 %2423  ;;  %v2433_v25 = vpop.xlane.xlu1 %2432  ;;  %5238 = vpow2.f32 %v2628_v18  ;;  %v2612_v33 = vmul.f32 1.442695, %v2500_v11  ;;  %v7783_v18 = vld [vmem:[#allocation34_spill] sm:$0xff] }
 0xaeb   : > { %2673 = vmatpush1.xpose.msra.mxu0 %v5219_v59  ;;  %2744 = vmatpush1.xpose.msra.mxu1 %v5219_v59  ;;  %5240 = vpow2.f32 %v2626_v34  ;;  %v2503_v9 = vsub.f32 %v6579_v46, %v2433_v25  ;;  %v2502_v50 = vsub.f32 %v6577_v5, %v2433_v25  ;;  %v2501_v46 = vsub.f32 %v6575_v32, %v6685_v30  ;;  %v7778_v5 = vld [vmem:[#allocation8_spill] sm:$0xff]  ;;  %v7784_v34 = vld [vmem:[#allocation33_spill] sm:$0xff] }
 0xaec   : > { %2674 = vmatprep.subr.mxu0 %v5221_v54  ;;  %2745 = vmatprep.subr.mxu1 %v5221_v54  ;;  %5242 = vpow2.f32 %v2624_v61  ;;  %v2497_v58 = vsub.f32 %v6565_v41, %v6689_v31  ;;  %v2496_v30 = vsub.f32 %v6563_v7, %v6689_v31 }
 0xaed   : > { %5244 = vpow2.f32 %v2622_v22  ;;  %v2618_v26 = vmul.f32 1.442695, %v2503_v9  ;;  %v2616_v45 = vmul.f32 1.442695, %v2502_v50  ;;  %v2614_v32 = vmul.f32 1.442695, %v2501_v46 }
 0xaee   : > { %v6693_v12 = vpop.xlane.xlu1 %2426  ;;  %v6698_v52 = vpop.xlane.xlu0 %2417  ;;  %5246 = vpow2.f32 %v2620_v44  ;;  %v2606_v20 = vmul.f32 1.442695, %v2497_v58  ;;  %v2604_v59 = vmul.f32 1.442695, %v2496_v30  ;;  %v7790_v30 = vld [vmem:[#allocation15_spill] sm:$0xff] }
 0xaef   : > { %2675 = vmatpush1.xpose.msra.mxu0 %v5223_v23  ;;  %2746 = vmatpush1.xpose.msra.mxu1 %v5223_v23  ;;  %5248 = vpow2.f32 %v2618_v26  ;;  %v2499_v14 = vsub.f32 %v6571_v51, %v6693_v12  ;;  %v2498_v16 = vsub.f32 %v6569_v27, %v6693_v12  ;;  %v2493_v31 = vsub.f32 %v6549_v37, %v6698_v52 }
 0xaf0   : > { %v5225_v62 = vpop.eup %5224  ;;  %5250 = vpow2.f32 %v2616_v45 }
 0xaf1   : > { %v5227_v1 = vpop.eup %5226  ;;  %5252 = vpow2.f32 %v2614_v32  ;;  %v2610_v51 = vmul.f32 1.442695, %v2499_v14  ;;  %v2608_v27 = vmul.f32 1.442695, %v2498_v16  ;;  %v2598_v47 = vmul.f32 1.442695, %v2493_v31 }
 0xaf2   : > { %v6702_v10 = vpop.xlane.xlu1 %2420  ;;  %2676 = vmatprep.subr.mxu0 %v5227_v1  ;;  %2747 = vmatprep.subr.mxu1 %v5227_v1  ;;  %v5229_v4 = vpop.eup %5228  ;;  %5254 = vpow2.f32 %v2612_v33 }
 0xaf3   : > { %2677 = vmatpush2.xpose.msra.mxu0 %v5225_v62  ;;  %2748 = vmatpush2.xpose.msra.mxu1 %v5225_v62  ;;  %v6705_v17 = vpop.xlane.xlu0 %2411  ;;  %v5231_v57 = vpop.eup %5230  ;;  %5256 = vpow2.f32 %v2610_v51  ;;  %v2495_v41 = vsub.f32 %v6557_v60, %v6702_v10  ;;  %v2494_v7 = vsub.f32 %v6555_v39, %v6702_v10  ;;  %v7781_v60 = vld [vmem:[#allocation36_spill] sm:$0xff]  ;;  %v7782_v39 = vld [vmem:[#allocation35_spill] sm:$0xff] }
 0xaf4   : > { %2678 = vmatprep.subr.mxu0 %v5229_v4  ;;  %2749 = vmatprep.subr.mxu1 %v5229_v4  ;;  %v5233_v28 = vpop.eup %5232  ;;  %5258 = vpow2.f32 %v2608_v27  ;;  %v2492_v49 = vsub.f32 %v7781_v60, %v6698_v52  ;;  %v2489_v52 = vsub.f32 %v7784_v34, %v6705_v17  ;;  %v7785_v10 = vld [vmem:[#allocation32_spill] sm:$0xff]  ;;  %v7786_v4 = vld [vmem:[#allocation31_spill] sm:$0xff] }
 0xaf5   : > { %v5235_v35 = vpop.eup %5234  ;;  %5260 = vpow2.f32 %v2606_v20  ;;  %v2602_v25 = vmul.f32 1.442695, %v2495_v41  ;;  %v2600_v3 = vmul.f32 1.442695, %v2494_v7  ;;  %v2488_v1 = vsub.f32 %v7785_v10, %v6705_v17 }
 0xaf6   : > { %v6707_v29 = vpop.xlane.xlu1 %2414  ;;  %v5237_v8 = vpop.eup %5236  ;;  %5262 = vpow2.f32 %v2604_v59  ;;  %v2596_v37 = vmul.f32 1.442695, %v2492_v49  ;;  %v2590_v9 = vmul.f32 1.442695, %v2489_v52  ;;  %v7793_v41 = vmov 1.0  }
 0xaf7   : > { %2679 = vmatpush2.xpose.msra.mxu0 %v5231_v57  ;;  %2750 = vmatpush2.xpose.msra.mxu1 %v5231_v57  ;;  %v5239_v21 = vpop.eup %5238  ;;  %5264 = vpow2.f32 %v2602_v25  ;;  %v2491_v23 = vsub.f32 %v7782_v39, %v6707_v29  ;;  %v2490_v36 = vsub.f32 %v7783_v18, %v6707_v29  ;;  %v2588_v50 = vmul.f32 1.442695, %v2488_v1  ;;  %v7787_v57 = vld [vmem:[#allocation30_spill] sm:$0xff] }
 0xaf8   : > { %2680 = vmatprep.subr.mxu0 %v5233_v28  ;;  %2751 = vmatprep.subr.mxu1 %v5233_v28  ;;  %v5241_v42 = vpop.eup %5240  ;;  %5266 = vpow2.f32 %v2600_v3  ;;  %v7788_v28 = vld [vmem:[#allocation29_spill] sm:$0xff] }
 0xaf9   : > { %v5243_v48 = vpop.eup %5242  ;;  %5268 = vpow2.f32 %v2598_v47  ;;  %v2594_v62 = vmul.f32 1.442695, %v2491_v23  ;;  %v2592_v61 = vmul.f32 1.442695, %v2490_v36 }
 0xafa   : > { %v856_v2 = vpop.permute.xlu0 %855  ;;  %v6712_v0 = vpop.xlane.xlu1 %2408  ;;  %5270 = vpow2.f32 %v2596_v37 }
 0xafb   : > { %v1018_v43 = vadd.f32 %v7778_v5, %v856_v2  ;;  %v1020_v24 = vadd.f32 %v7779_v13, %v856_v2  ;;  %2681 = vmatpush2.xpose.msra.mxu0 %v5235_v35  ;;  %2752 = vmatpush2.xpose.msra.mxu1 %v5235_v35  ;;  %v5245_v56 = vpop.eup %5244  ;;  %5272 = vpow2.f32 %v2594_v62  ;;  %v2487_v44 = vsub.f32 %v7786_v4, %v6712_v0  ;;  %v7789_v5 = vld [vmem:[#allocation28_spill] sm:$0xff] }
 0xafc   : > { %2682 = vmatprep.subr.mxu0 %v5237_v8  ;;  %2753 = vmatprep.subr.mxu1 %v5237_v8  ;;  %v5247_v63 = vpop.eup %5246  ;;  %5274 = vpow2.f32 %v2592_v61  ;;  %v2486_v46 = vsub.f32 %v7787_v57, %v6712_v0 }
 0xafd   : > { %2834 = vxpose.xlu0.b32.start.end [1/1] (short) %v1020_v24, 128  ;;  %2802 = vxpose.xlu1.b32.start.end [1/1] (short) %v1018_v43, 128  ;;  %v5249_v54 = vpop.eup %5248  ;;  %5276 = vpow2.f32 %v2590_v9  ;;  %v2586_v17 = vmul.f32 1.442695, %v2487_v44 }
 0xafe   : > { %v6720_v40 = vpop.xlane.xlu1 %2405  ;;  %v5251_v38 = vpop.eup %5250  ;;  %5278 = vpow2.f32 %v2588_v50  ;;  %v2584_v45 = vmul.f32 1.442695, %v2486_v46 }
 0xaff   : > { %2683 = vmatpush2.xpose.msra.mxu0 %v5239_v21  ;;  %2754 = vmatpush2.xpose.msra.mxu1 %v5239_v21  ;;  %v5253_v12 = vpop.eup %5252  ;;  %v2485_v2 = vsub.f32 %v7788_v28, %v6720_v40  ;;  %v2484_v43 = vsub.f32 %v7789_v5, %v6720_v40  ;;  %5280 = vpow2.f32 %v2586_v17  ;;  %v876_v51 = vpop.permute.xlu0 %875  ;;  %v7796_v17 = vld [vmem:[#allocation24_spill] sm:$0xff] }
 0xb00   : > { %2684 = vmatprep.subr.mxu0 %v5241_v42  ;;  %2755 = vmatprep.subr.mxu1 %v5241_v42  ;;  %v5255_v15 = vpop.eup %5254  ;;  %5282 = vpow2.f32 %v2584_v45  ;;  %v1044_v27 = vadd.f32 %v7790_v30, %v876_v51 }
 0xb01   : > { %v5257_v19 = vpop.eup %5256  ;;  %v2582_v24 = vmul.f32 1.442695, %v2485_v2  ;;  %v2580_v35 = vmul.f32 1.442695, %v2484_v43 }
 0xb02   : > { %v6726_v6 = vpop.permute.xlu1 %890  ;;  %v5259_v22 = vpop.eup %5258 }
 0xb03   : > { %v1062_v53 = vadd.f32 %v7780_v55, %v6726_v6  ;;  %2685 = vmatpush2.xpose.msra.mxu0 %v5243_v48  ;;  %2756 = vmatpush2.xpose.msra.mxu1 %v5243_v48  ;;  %v5261_v29 = vpop.eup %5260  ;;  %5284 = vpow2.f32 %v2582_v24  ;;  %v7791_v55 = vld [vmem:[#allocation12_spill] sm:$0xff] }
 0xb04   : > { %2686 = vmatprep.subr.mxu0 %v5245_v56  ;;  %2757 = vmatprep.subr.mxu1 %v5245_v56  ;;  %v5263_v26 = vpop.eup %5262  ;;  %5286 = vpow2.f32 %v2580_v35  ;;  %v7792_v48 = vld [vmem:[#allocation16_spill] sm:$0xff]  ;;  %v7794_v56 = vmov 0.0  }
 0xb05   : > { %2708 = vmatprep.mubr.f32.mxu0 %v1062_v53  ;;  %v5265_v11 = vpop.eup %5264  ;;  %v1060_v53 = vadd.f32 %v7791_v55, %v6726_v6  ;;  %v1042_v20 = vadd.f32 %v7792_v48, %v876_v51 }
 0xb06   : > { %v5267_v13 = vpop.eup %5266 }
 0xb07   : > { %2687 = vmatpush2.xpose.msra.mxu0 %v5247_v63  ;;  %2758 = vmatpush2.xpose.msra.mxu1 %v5247_v63  ;;  %v5269_v0 = vpop.eup %5268 }
 0xb08   : > { %2688 = vmatprep.subr.mxu0 %v5249_v54  ;;  %2759 = vmatprep.subr.mxu1 %v5249_v54  ;;  %v5271_v32 = vpop.eup %5270 }
 0xb09   : > { %v5273_v14 = vpop.eup %5272 }
 0xb0a   : > { %v5275_v8 = vpop.eup %5274 }
 0xb0b   : > { %2689 = vmatpush2.xpose.msra.mxu0 %v5251_v38  ;;  %2760 = vmatpush2.xpose.msra.mxu1 %v5251_v38  ;;  %v5277_v40 = vpop.eup %5276 }
 0xb0c   : > { %2690 = vmatprep.subr.mxu0 %v5253_v12  ;;  %2761 = vmatprep.subr.mxu1 %v5253_v12  ;;  %v5279_v33 = vpop.eup %5278 }
 0xb0d   : > { %v5281_v16 = vpop.eup %5280 }
 0xb0e   : > { %v5283_v21 = vpop.eup %5282 }
 0xb0f   : > { %2691 = vmatpush2.xpose.msra.mxu0 %v5255_v15  ;;  %2762 = vmatpush2.xpose.msra.mxu1 %v5255_v15 }
 0xb10   : > { %2692 = vmatprep.subr.mxu0 %v5257_v19  ;;  %2763 = vmatprep.subr.mxu1 %v5257_v19  ;;  %v5285_v58 = vpop.eup %5284 }
 0xb11   : > { %v5287_v42 = vpop.eup %5286 }
 0xb13   : > { %2693 = vmatpush2.xpose.msra.mxu0 %v5259_v22  ;;  %2764 = vmatpush2.xpose.msra.mxu1 %v5259_v22 }
 0xb14   : > { %2694 = vmatprep.subr.mxu0 %v5261_v29  ;;  %2765 = vmatprep.subr.mxu1 %v5261_v29 }
 0xb17   : > { %2695 = vmatpush2.xpose.msra.mxu0 %v5263_v26  ;;  %2766 = vmatpush2.xpose.msra.mxu1 %v5263_v26  ;;  %v6826_v26 = vpop.f32.mrf.mxu0 }
 0xb18   : > { %2696 = vmatprep.subr.mxu0 %v5265_v11  ;;  %2767 = vmatprep.subr.mxu1 %v5265_v11  ;;  %7795 = vst [vmem:[#allocation27_spill] sm:$0xff] %v6826_v26 }
 0xb1b   : > { %2697 = vmatpush2.xpose.msra.mxu0 %v5267_v13  ;;  %2768 = vmatpush2.xpose.msra.mxu1 %v5267_v13 }
 0xb1c   : > { %2698 = vmatprep.subr.mxu0 %v5269_v0  ;;  %2769 = vmatprep.subr.mxu1 %v5269_v0 }
 0xb1f   : > { %2699 = vmatpush2.xpose.msra.mxu0 %v5271_v32  ;;  %2770 = vmatpush2.xpose.msra.mxu1 %v5271_v32 }
 0xb20   : > { %2700 = vmatprep.subr.mxu0 %v5273_v14  ;;  %2771 = vmatprep.subr.mxu1 %v5273_v14 }
 0xb23   : > { %2701 = vmatpush2.xpose.msra.mxu0 %v5275_v8  ;;  %2772 = vmatpush2.xpose.msra.mxu1 %v5275_v8 }
 0xb24   : > { %2702 = vmatprep.subr.mxu0 %v5277_v40  ;;  %2773 = vmatprep.subr.mxu1 %v5277_v40 }
 0xb27   : > { %2703 = vmatpush2.xpose.msra.mxu0 %v5279_v33  ;;  %2774 = vmatpush2.xpose.msra.mxu1 %v5279_v33 }
 0xb28   : > { %2704 = vmatprep.subr.mxu0 %v5281_v16  ;;  %2775 = vmatprep.subr.mxu1 %v5281_v16 }
 0xb2b   : > { %2705 = vmatpush2.xpose.msra.mxu0 %v5283_v21  ;;  %2776 = vmatpush2.xpose.msra.mxu1 %v5283_v21 }
 0xb2c   : > { %2706 = vmatprep.subr.mxu0 %v5285_v58  ;;  %2777 = vmatprep.subr.mxu1 %v5285_v58 }
 0xb2f   : > { %2707 = vmatpush2.xpose.msra.mxu0 %v5287_v42  ;;  %2778 = vmatpush2.xpose.msra.mxu1 %v5287_v42 }
 0xb30   : > { %2992 = vmatprep.subr.mxu0 %v1044_v27 }
 0xb32   : > { %2709 = vmatmul.mubr.f32.vlgmr.msra.gmra.mxu0 %v1060_v53  ;;  %2780 = vmatmul.mubr.f32.vlgmr.msra.gmra.mxu1 %v7793_v41 }
 0xb33   : > { %2993 = vmatpush1.msra.mxu0 %v1042_v20  ;;  %3026 = vmatprep.mubr.f32.mxu0 %v7794_v56 }
 0xb79   : > { %v2818_v63 = vpop.trf.xlu1  ;;  %v2850_v3 = vpop.trf.xlu0 }
 0xb7a   : > { %4842 = vmatmul.mubr.msk.f32.vlgmr.msra.gmra.mxu0 %vm470_vm2, %v2818_v63 }
 0xb7b   : > { %3032 = vmatprep.mubr.f32.mxu0 %v7794_v56 }
 0xb7d   : > { %v2819_v59 = vpop.trf.xlu1  ;;  %v2851_v47 = vpop.trf.xlu0 }
 0xb7e   : > { %4843 = vmatmul.mubr.msk.f32.gmra.mxu0 %vm470_vm2, %v2819_v59 }
 0xb7f   : > { %3038 = vmatprep.mubr.f32.mxu0 %v7794_v56 }
 0xb81   : > { %v2820_v6 = vpop.trf.xlu1  ;;  %v2852_v12 = vpop.trf.xlu0 }
 0xb82   : > { %4844 = vmatmul.mubr.msk.f32.gmra.mxu0 %vm470_vm2, %v2820_v6 }
 0xb83   : > { %3044 = vmatprep.mubr.f32.mxu0 %v7794_v56 }
 0xb85   : > { %v2821_v7 = vpop.trf.xlu1  ;;  %v2853_v18 = vpop.trf.xlu0 }
 0xb86   : > { %4845 = vmatmul.mubr.msk.f32.gmra.mxu0 %vm470_vm2, %v2821_v7 }
 0xb87   : > { %3050 = vmatprep.mubr.f32.mxu0 %v7794_v56 }
 0xb89   : > { %v2822_v31 = vpop.trf.xlu1  ;;  %v2854_v34 = vpop.trf.xlu0 }
 0xb8a   : > { %4846 = vmatmul.mubr.msk.f32.gmra.mxu0 %vm470_vm2, %v2822_v31 }
 0xb8b   : > { %3056 = vmatprep.mubr.f32.mxu0 %v7794_v56 }
 0xb8d   : > { %v2823_v25 = vpop.trf.xlu1  ;;  %v2855_v62 = vpop.trf.xlu0 }
 0xb8e   : > { %4847 = vmatmul.mubr.msk.f32.gmra.mxu0 %vm470_vm2, %v2823_v25 }
 0xb8f   : > { %3062 = vmatprep.mubr.f32.mxu0 %v7794_v56 }
 0xb91   : > { %v2824_v54 = vpop.trf.xlu1  ;;  %v2856_v19 = vpop.trf.xlu0 }
 0xb92   : > { %4848 = vmatmul.mubr.msk.f32.gmra.mxu0 %vm470_vm2, %v2824_v54 }
 0xb93   : > { %3068 = vmatprep.mubr.f32.mxu0 %v7794_v56 }
 0xb95   : > { %v2825_v60 = vpop.trf.xlu1  ;;  %v2857_v10 = vpop.trf.xlu0 }
 0xb96   : > { %4849 = vmatmul.mubr.msk.f32.gmra.mxu0 %vm470_vm2, %v2825_v60 }
 0xb97   : > { %3074 = vmatprep.mubr.f32.mxu0 %v7794_v56 }
 0xb99   : > { %v2826_v49 = vpop.trf.xlu1  ;;  %v2858_v1 = vpop.trf.xlu0 }
 0xb9a   : > { %4850 = vmatmul.mubr.msk.f32.gmra.mxu0 %vm470_vm2, %v2826_v49 }
 0xb9b   : > { %3080 = vmatprep.mubr.f32.mxu0 %v7794_v56 }
 0xb9d   : > { %v2827_v38 = vpop.trf.xlu1  ;;  %v2859_v61 = vpop.trf.xlu0 }
 0xb9e   : > { %4851 = vmatmul.mubr.msk.f32.gmra.mxu0 %vm470_vm2, %v2827_v38 }
 0xb9f   : > { %3086 = vmatprep.mubr.f32.mxu0 %v7794_v56 }
 0xba1   : > { %v2828_v39 = vpop.trf.xlu1  ;;  %v2860_v22 = vpop.trf.xlu0 }
 0xba2   : > { %4852 = vmatmul.mubr.msk.f32.gmra.mxu0 %vm470_vm2, %v2828_v39 }
 0xba3   : > { %3092 = vmatprep.mubr.f32.mxu0 %v7794_v56 }
 0xba5   : > { %v2829_v23 = vpop.trf.xlu1  ;;  %v2861_v9 = vpop.trf.xlu0 }
 0xba6   : > { %4853 = vmatmul.mubr.msk.f32.gmra.mxu0 %vm470_vm2, %v2829_v23 }
 0xba7   : > { %3098 = vmatprep.mubr.f32.mxu0 %v7794_v56 }
 0xba9   : > { %v2830_v37 = vpop.trf.xlu1  ;;  %v2862_v4 = vpop.trf.xlu0 }
 0xbaa   : > { %4854 = vmatmul.mubr.msk.f32.gmra.mxu0 %vm470_vm2, %v2830_v37 }
 0xbab   : > { %3104 = vmatprep.mubr.f32.mxu0 %v7794_v56 }
 0xbad   : > { %v2831_v36 = vpop.trf.xlu1  ;;  %v2863_v44 = vpop.trf.xlu0 }
 0xbae   : > { %4855 = vmatmul.mubr.msk.f32.gmra.mxu0 %vm470_vm2, %v2831_v36 }
 0xbaf   : > { %3110 = vmatprep.mubr.f32.mxu0 %v7794_v56 }
 0xbb1   : > { %v2832_v15 = vpop.trf.xlu1  ;;  %v2864_v29 = vpop.trf.xlu0 }
 0xbb2   : > { %4856 = vmatmul.mubr.msk.f32.gmra.mxu0 %vm470_vm2, %v2832_v15 }
 0xbb3   : > { %3116 = vmatprep.mubr.f32.mxu0 %v7794_v56 }
 0xbb5   : > { %v2833_v52 = vpop.trf.xlu1  ;;  %v2865_v57 = vpop.trf.xlu0 }
 0xbb6   : > { %4857 = vmatmul.mubr.msk.f32.gmra.mxu0 %vm470_vm2, %v2833_v52 }
 0xbb7   : > { %3122 = vmatprep.mubr.f32.mxu0 %v7794_v56 }
 0xbba   : > { %4858 = vmatmul.mubr.msk.f32.gmra.mxu0 %vm470_vm2, %v2850_v3 }
 0xbbb   : > { %3128 = vmatprep.mubr.f32.mxu0 %v7794_v56 }
 0xbbe   : > { %4859 = vmatmul.mubr.msk.f32.gmra.mxu0 %vm470_vm2, %v2851_v47 }
 0xbbf   : > { %3134 = vmatprep.mubr.f32.mxu0 %v7794_v56 }
 0xbc2   : > { %4860 = vmatmul.mubr.msk.f32.gmra.mxu0 %vm470_vm2, %v2852_v12 }
 0xbc3   : > { %3140 = vmatprep.mubr.f32.mxu0 %v7794_v56 }
 0xbc6   : > { %4861 = vmatmul.mubr.msk.f32.gmra.mxu0 %vm470_vm2, %v2853_v18 }
 0xbc7   : > { %3146 = vmatprep.mubr.f32.mxu0 %v7794_v56 }
 0xbca   : > { %4862 = vmatmul.mubr.msk.f32.gmra.mxu0 %vm470_vm2, %v2854_v34 }
 0xbcb   : > { %3152 = vmatprep.mubr.f32.mxu0 %v7794_v56 }
 0xbce   : > { %4863 = vmatmul.mubr.msk.f32.gmra.mxu0 %vm470_vm2, %v2855_v62 }
 0xbcf   : > { %3158 = vmatprep.mubr.f32.mxu0 %v7794_v56 }
 0xbd2   : > { %4864 = vmatmul.mubr.msk.f32.gmra.mxu0 %vm470_vm2, %v2856_v19 }
 0xbd3   : > { %3164 = vmatprep.mubr.f32.mxu0 %v7794_v56 }
 0xbd6   : > { %4865 = vmatmul.mubr.msk.f32.gmra.mxu0 %vm470_vm2, %v2857_v10 }
 0xbd7   : > { %3170 = vmatprep.mubr.f32.mxu0 %v7794_v56 }
 0xbda   : > { %4866 = vmatmul.mubr.msk.f32.gmra.mxu0 %vm470_vm2, %v2858_v1 }
 0xbdb   : > { %3176 = vmatprep.mubr.f32.mxu0 %v7794_v56 }
 0xbde   : > { %4867 = vmatmul.mubr.msk.f32.gmra.mxu0 %vm470_vm2, %v2859_v61 }
 0xbdf   : > { %3182 = vmatprep.mubr.f32.mxu0 %v7794_v56 }
 0xbe2   : > { %4868 = vmatmul.mubr.msk.f32.gmra.mxu0 %vm470_vm2, %v2860_v22 }
 0xbe3   : > { %3188 = vmatprep.mubr.f32.mxu0 %v7794_v56 }
 0xbe6   : > { %4869 = vmatmul.mubr.msk.f32.gmra.mxu0 %vm470_vm2, %v2861_v9 }
 0xbe7   : > { %3194 = vmatprep.mubr.f32.mxu0 %v7794_v56 }
 0xbea   : > { %4870 = vmatmul.mubr.msk.f32.gmra.mxu0 %vm470_vm2, %v2862_v4 }
 0xbeb   : > { %3200 = vmatprep.mubr.f32.mxu0 %v7794_v56 }
 0xbee   : > { %4871 = vmatmul.mubr.msk.f32.gmra.mxu0 %vm470_vm2, %v2863_v44 }
 0xbef   : > { %3206 = vmatprep.mubr.f32.mxu0 %v7794_v56 }
 0xbf2   : > { %v2781_v50 = vpop.f32.mrf.mxu1  ;;  %4872 = vmatmul.mubr.msk.f32.gmra.mxu0 %vm470_vm2, %v2864_v29  ;;  %v2710_v2 = vpop.f32.mrf.mxu0 }
 0xbf3   : > { %5288 = vrcp.f32 %v2781_v50  ;;  %3212 = vmatprep.mubr.f32.mxu0 %v7794_v56 }
 0xbf4   : > { %v6831_v45 = vpop.f32.mrf.mxu0 }
 0xbf5   : > { %7798 = vst [vmem:[#allocation18_spill] sm:$0xff] %v6831_v45 }
 0xbf6   : > { %4873 = vmatmul.mubr.msk.f32.gmra.mxu0 %vm470_vm2, %v2865_v57 }
 0xbf7   : > { %3642 = vmatprep.mubr.f32.mxu0 %v7793_v41 }
 0xc00   : > { %v5289_v46 = vpop.eup %5288 }
 0xc01   : > { %v2793_v28 = vrot.slane %v5289_v46, %v7796_v17 }
 0xc03   : > { %v6829_v11 = vmul.f32 %v2793_v28, %v2710_v2 }
 0xc05   : > { %7797 = vst [vmem:[#allocation17_spill] sm:$0xff] %v6829_v11 }
 0xc3a   : > { %v6833_v5 = vpop.f32.mrf.mxu0 }
 0xc3b   : > { %7799 = vst [vmem:[#allocation19_spill] sm:$0xff] %v6833_v5 }
 0xc3c   : > { %v6835_v43 = vpop.f32.mrf.mxu0 }
 0xc3d   : > { %7800 = vst [vmem:[#allocation20_spill] sm:$0xff] %v6835_v43  ;;  %v3219_v2 = vmax.f32 %v6833_v5, %v6835_v43 }
 0xc3e   : > { %v6837_v13 = vpop.f32.mrf.mxu0 }
 0xc3f   : > { %7801 = vst [vmem:[#allocation37_spill] sm:$0xff] %v6837_v13 }
 0xc40   : > { %v6839_v24 = vpop.f32.mrf.mxu0 }
 0xc41   : > { %7802 = vst [vmem:[#allocation8_spill] sm:$0xff] %v6839_v24 }
 0xc42   : > { %v6841_v0 = vpop.f32.mrf.mxu0 }
 0xc43   : > { %7803 = vst [vmem:[#allocation9_spill] sm:$0xff] %v6841_v0 }
 0xc44   : > { %v6843_v35 = vpop.f32.mrf.mxu0 }
 0xc45   : > { %v3225_v50 = vmax.f32 %v6841_v0, %v6843_v35 }
 0xc46   : > { %v6845_v32 = vpop.f32.mrf.mxu0 }
 0xc48   : > { %v6847_v14 = vpop.f32.mrf.mxu0 }
 0xc4a   : > { %v6849_v8 = vpop.f32.mrf.mxu0 }
 0xc4c   : > { %v6851_v40 = vpop.f32.mrf.mxu0 }
 0xc4d   : > { %v3231_v9 = vmax.f32 %v6849_v8, %v6851_v40 }
 0xc4e   : > { %v6853_v33 = vpop.f32.mrf.mxu0 }
 0xc50   : > { %v6855_v16 = vpop.f32.mrf.mxu0 }
 0xc51   : > { %v3234_v57 = vmax.f32 %v6853_v33, %v6855_v16 }
 0xc52   : > { %v6857_v21 = vpop.f32.mrf.mxu0 }
 0xc54   : > { %v6859_v58 = vpop.f32.mrf.mxu0 }
 0xc55   : > { %v3237_v10 = vmax.f32 %v6857_v21, %v6859_v58 }
 0xc56   : > { %v6861_v51 = vpop.f32.mrf.mxu0 }
 0xc58   : > { %v6863_v42 = vpop.f32.mrf.mxu0 }
 0xc59   : > { %v3240_v4 = vmax.f32 %v6861_v51, %v6863_v42 }
 0xc5a   : > { %v6865_v30 = vpop.f32.mrf.mxu0 }
 0xc5c   : > { %v6867_v27 = vpop.f32.mrf.mxu0 }
 0xc5d   : > { %v3243_v34 = vmax.f32 %v6865_v30, %v6867_v27 }
 0xc5e   : > { %v6869_v55 = vpop.f32.mrf.mxu0 }
 0xc60   : > { %v6871_v53 = vpop.f32.mrf.mxu0 }
 0xc61   : > { %v3246_v1 = vmax.f32 %v6869_v55, %v6871_v53 }
 0xc62   : > { %v6873_v48 = vpop.f32.mrf.mxu0 }
 0xc64   : > { %v6875_v20 = vpop.f32.mrf.mxu0 }
 0xc65   : > { %v3249_v37 = vmax.f32 %v6873_v48, %v6875_v20 }
 0xc66   : > { %v6877_v63 = vpop.f32.mrf.mxu0 }
 0xc68   : > { %v6879_v59 = vpop.f32.mrf.mxu0 }
 0xc69   : > { %v3252_v52 = vmax.f32 %v6877_v63, %v6879_v59 }
 0xc6a   : > { %v6881_v6 = vpop.f32.mrf.mxu0 }
 0xc6c   : > { %v6883_v7 = vpop.f32.mrf.mxu0 }
 0xc6d   : > { %v3255_v47 = vmax.f32 %v6881_v6, %v6883_v7 }
 0xc6e   : > { %v6885_v31 = vpop.f32.mrf.mxu0 }
 0xc70   : > { %v6887_v25 = vpop.f32.mrf.mxu0 }
 0xc71   : > { %v3258_v18 = vmax.f32 %v6885_v31, %v6887_v25 }
 0xc72   : > { %v6889_v54 = vpop.f32.mrf.mxu0 }
 0xc74   : > { %v6891_v60 = vpop.f32.mrf.mxu0 }
 0xc75   : > { %v3261_v49 = vmax.f32 %v6889_v54, %v6891_v60 }
 0xc76   : > { %v6895_v3 = vpop.f32.mrf.mxu0 }
 0xc77   : > { %3262 = vmax.xlane.f32.xlu1 %v3261_v49  ;;  %v3228_v49 = vmax.f32 %v6845_v32, %v6847_v14 }
 0xc78   : > { %v6897_v38 = vpop.f32.mrf.mxu0 }
 0xc79   : > { %v3264_v39 = vmax.f32 %v6895_v3, %v6897_v38 }
 0xc7a   : > { %v6903_v23 = vpop.f32.mrf.mxu0 }
 0xc7b   : > { %7804 = vst [vmem:[#allocation26_spill] sm:$0xff] %v6903_v23  ;;  %3256 = vmax.xlane.f32.xlu1 %v3255_v47  ;;  %3265 = vmax.xlane.f32.xlu0 %v3264_v39 }
 0xc7c   : > { %v6905_v12 = vpop.f32.mrf.mxu0 }
 0xc7d   : > { %7805 = vst [vmem:[#allocation36_spill] sm:$0xff] %v6905_v12 }
 0xc7e   : > { %v6911_v36 = vpop.f32.mrf.mxu0 }
 0xc7f   : > { %7806 = vst [vmem:[#allocation35_spill] sm:$0xff] %v6911_v36  ;;  %3250 = vmax.xlane.f32.xlu1 %v3249_v37  ;;  %3259 = vmax.xlane.f32.xlu0 %v3258_v18  ;;  %v3222_v37 = vmax.f32 %v6837_v13, %v6839_v24 }
 0xc80   : > { %v6913_v15 = vpop.f32.mrf.mxu0 }
 0xc81   : > { %7807 = vst [vmem:[#allocation34_spill] sm:$0xff] %v6913_v15 }
 0xc82   : > { %v6919_v62 = vpop.f32.mrf.mxu0 }
 0xc83   : > { %7808 = vst [vmem:[#allocation33_spill] sm:$0xff] %v6919_v62  ;;  %3244 = vmax.xlane.f32.xlu1 %v3243_v34  ;;  %3253 = vmax.xlane.f32.xlu0 %v3252_v52 }
 0xc84   : > { %v6921_v19 = vpop.f32.mrf.mxu0 }
 0xc85   : > { %7809 = vst [vmem:[#allocation32_spill] sm:$0xff] %v6921_v19 }
 0xc86   : > { %v6927_v61 = vpop.f32.mrf.mxu0 }
 0xc87   : > { %7810 = vst [vmem:[#allocation31_spill] sm:$0xff] %v6927_v61  ;;  %3238 = vmax.xlane.f32.xlu1 %v3237_v10  ;;  %3247 = vmax.xlane.f32.xlu0 %v3246_v1 }
 0xc88   : > { %v6929_v22 = vpop.f32.mrf.mxu0 }
 0xc89   : > { %7811 = vst [vmem:[#allocation30_spill] sm:$0xff] %v6929_v22 }
 0xc8a   : > { %v6935_v44 = vpop.f32.mrf.mxu0 }
 0xc8b   : > { %7812 = vst [vmem:[#allocation29_spill] sm:$0xff] %v6935_v44  ;;  %3232 = vmax.xlane.f32.xlu1 %v3231_v9  ;;  %3241 = vmax.xlane.f32.xlu0 %v3240_v4 }
 0xc8c   : > { %v6937_v29 = vpop.f32.mrf.mxu0 }
 0xc8e   : > { %v6943_v46 = vpop.f32.mrf.mxu0 }
 0xc8f   : > { %3226 = vmax.xlane.f32.xlu1 %v3225_v50  ;;  %3235 = vmax.xlane.f32.xlu0 %v3234_v57 }
 0xc90   : > { %v6945_v28 = vpop.f32.mrf.mxu0 }
 0xc92   : > { %v6951_v47 = vpop.f32.mrf.mxu0 }
 0xc93   : > { %3220 = vmax.xlane.f32.xlu1 %v3219_v2  ;;  %3229 = vmax.xlane.f32.xlu0 %v3228_v49 }
 0xc94   : > { %v6953_v39 = vpop.f32.mrf.mxu0 }
 0xc96   : > { %v6957_v18 = vpop.f32.mrf.mxu0 }
 0xc97   : > { %3223 = vmax.xlane.f32.xlu0 %v3222_v37 }
 0xc98   : > { %v6959_v34 = vpop.f32.mrf.mxu0 }
 0xc9a   : > { %v6961_v52 = vpop.f32.mrf.mxu0 }
 0xc9c   : > { %v6963_v10 = vpop.f32.mrf.mxu0 }
 0xc9e   : > { %v6965_v1 = vpop.f32.mrf.mxu0 }
 0xca0   : > { %v6967_v9 = vpop.f32.mrf.mxu0 }
 0xca2   : > { %v6969_v4 = vpop.f32.mrf.mxu0 }
 0xca4   : > { %v6971_v50 = vpop.f32.mrf.mxu0 }
 0xca5   : > { %v3297_v24 = vmax.f32 %v6969_v4, %v6971_v50 }
 0xca6   : > { %v6973_v57 = vpop.f32.mrf.mxu0 }
 0xca8   : > { %v6975_v2 = vpop.f32.mrf.mxu0 }
 0xcaa   : > { %v6977_v49 = vpop.f32.mrf.mxu0 }
 0xcac   : > { %v6979_v37 = vpop.f32.mrf.mxu0 }
 0xcad   : > { %v3303_v43 = vmax.f32 %v6977_v49, %v6979_v37 }
 0xcae   : > { %v6981_v11 = vpop.f32.mrf.mxu0 }
 0xcb0   : > { %v6983_v45 = vpop.f32.mrf.mxu0 }
 0xcb1   : > { %v3306_v0 = vmax.f32 %v6981_v11, %v6983_v45 }
 0xcb2   : > { %v6985_v17 = vpop.f32.mrf.mxu0 }
 0xcb3   : > { %7813 = vst [vmem:[#allocation28_spill] sm:$0xff] %v6985_v17 }
 0xcb4   : > { %v6987_v26 = vpop.f32.mrf.mxu0 }
 0xcb5   : > { %v3309_v56 = vmax.f32 %v6985_v17, %v6987_v26  ;;  %v3300_v17 = vmax.f32 %v6973_v57, %v6975_v2 }
 0xcb6   : > { %v6991_v41 = vpop.f32.mrf.mxu0 }
 0xcb7   : > { %3310 = vmax.xlane.f32.xlu1 %v3309_v56  ;;  %v3291_v56 = vmax.f32 %v6961_v52, %v6963_v10 }
 0xcb8   : > { %v6993_v5 = vpop.f32.mrf.mxu0 }
 0xcb9   : > { %v3312_v13 = vmax.f32 %v6991_v41, %v6993_v5 }
 0xcbb   : > { %3304 = vmax.xlane.f32.xlu1 %v3303_v43  ;;  %3313 = vmax.xlane.f32.xlu0 %v3312_v13  ;;  %v3285_v43 = vmax.f32 %v6951_v47, %v6953_v39  ;;  %v3294_v13 = vmax.f32 %v6965_v1, %v6967_v9 }
 0xcbf   : > { %3298 = vmax.xlane.f32.xlu1 %v3297_v24  ;;  %3307 = vmax.xlane.f32.xlu0 %v3306_v0  ;;  %v3279_v24 = vmax.f32 %v6935_v44, %v6937_v29  ;;  %v3288_v0 = vmax.f32 %v6957_v18, %v6959_v34 }
 0xcc3   : > { %3292 = vmax.xlane.f32.xlu1 %v3291_v56  ;;  %3301 = vmax.xlane.f32.xlu0 %v3300_v17  ;;  %v3273_v56 = vmax.f32 %v6919_v62, %v6921_v19  ;;  %v3282_v17 = vmax.f32 %v6943_v46, %v6945_v28 }
 0xcc7   : > { %3286 = vmax.xlane.f32.xlu1 %v3285_v43  ;;  %3295 = vmax.xlane.f32.xlu0 %v3294_v13  ;;  %v3276_v43 = vmax.f32 %v6927_v61, %v6929_v22  ;;  %v3270_v13 = vmax.f32 %v6911_v36, %v6913_v15 }
 0xccb   : > { %3280 = vmax.xlane.f32.xlu1 %v3279_v24  ;;  %3289 = vmax.xlane.f32.xlu0 %v3288_v0  ;;  %v3267_v24 = vmax.f32 %v6903_v23, %v6905_v12  ;;  %v359_v0 = vld [vmem:[%s7626_s6 + $0x18] sm:$0xff] }
 0xccf   : > { %3274 = vmax.xlane.f32.xlu1 %v3273_v56  ;;  %3283 = vmax.xlane.f32.xlu0 %v3282_v17  ;;  %v363_v56 = vld [vmem:[%s7626_s6 + $0x38] sm:$0xff]  ;;  %v366_v17 = vld [vmem:[%s7626_s6 + $0x50] sm:$0xff] }
 0xcd3   : > { %3277 = vmax.xlane.f32.xlu0 %v3276_v43 }
 0xcd7   : > { %3271 = vmax.xlane.f32.xlu0 %v3270_v13 }
 0xcdb   : > { %3268 = vmax.xlane.f32.xlu0 %v3267_v24 }
 0xce0   : > { %860 = vperm.xlu1 %5021, %v359_v0  }
 0xce4   : > { %880 = vperm.xlu1 %5021, %v363_v56  }
 0xcf1   : > { %895 = vperm.xlu0 %5020, %v366_v17  }
 0xd00   : > { %v3263_v43 = vpop.xlane.xlu1 %3262 }
 0xd01   : > { %v3344_v13 = vsub.f32 %v6891_v60, %v3263_v43  ;;  %v3343_v0 = vsub.f32 %v6889_v54, %v3263_v43 }
 0xd03   : > { %v3437_v62 = vmul.f32 1.442695, %v3344_v13  ;;  %v3435_v17 = vmul.f32 1.442695, %v3343_v0 }
 0xd04   : > { %v3266_v23 = vpop.xlane.xlu0 %3265  ;;  %v3257_v56 = vpop.xlane.xlu1 %3256 }
 0xd05   : > { %v3345_v24 = vsub.f32 %v6895_v3, %v3266_v23  ;;  %v3346_v12 = vsub.f32 %v6897_v38, %v3266_v23  ;;  %v3340_v60 = vsub.f32 %v6883_v7, %v3257_v56  ;;  %v3339_v54 = vsub.f32 %v6881_v6, %v3257_v56 }
 0xd07   : > { %v3439_v36 = vmul.f32 1.442695, %v3345_v24  ;;  %v3441_v15 = vmul.f32 1.442695, %v3346_v12  ;;  %v3429_v23 = vmul.f32 1.442695, %v3340_v60 }
 0xd08   : > { %v3260_v19 = vpop.xlane.xlu0 %3259  ;;  %v3427_v43 = vmul.f32 1.442695, %v3339_v54 }
 0xd09   : > { %5290 = vpow2.f32 %v3439_v36  ;;  %v3342_v61 = vsub.f32 %v6887_v25, %v3260_v19  ;;  %v3341_v22 = vsub.f32 %v6885_v31, %v3260_v19  ;;  %v3251_v36 = vpop.xlane.xlu1 %3250 }
 0xd0a   : > { %5292 = vpow2.f32 %v3441_v15  ;;  %v3336_v31 = vsub.f32 %v6875_v20, %v3251_v36  ;;  %v3335_v6 = vsub.f32 %v6873_v48, %v3251_v36 }
 0xd0b   : > { %5294 = vpow2.f32 %v3437_v62  ;;  %v3433_v3 = vmul.f32 1.442695, %v3342_v61  ;;  %v3431_v38 = vmul.f32 1.442695, %v3341_v22 }
 0xd0c   : > { %v3254_v44 = vpop.xlane.xlu0 %3253  ;;  %5296 = vpow2.f32 %v3435_v17  ;;  %v3421_v22 = vmul.f32 1.442695, %v3336_v31  ;;  %v3419_v20 = vmul.f32 1.442695, %v3335_v6 }
 0xd0d   : > { %5298 = vpow2.f32 %v3433_v3  ;;  %v3338_v12 = vsub.f32 %v6879_v59, %v3254_v44  ;;  %v3337_v25 = vsub.f32 %v6877_v63, %v3254_v44  ;;  %v3245_v24 = vpop.xlane.xlu1 %3244 }
 0xd0e   : > { %5300 = vpow2.f32 %v3431_v38  ;;  %v3332_v48 = vsub.f32 %v6867_v27, %v3245_v24 }
 0xd0f   : > { %5302 = vpow2.f32 %v3429_v23  ;;  %v3425_v15 = vmul.f32 1.442695, %v3338_v12  ;;  %v3423_v61 = vmul.f32 1.442695, %v3337_v25 }
 0xd10   : > { %v3248_v7 = vpop.xlane.xlu0 %3247  ;;  %5304 = vpow2.f32 %v3427_v43  ;;  %v3413_v54 = vmul.f32 1.442695, %v3332_v48 }
 0xd11   : > { %5306 = vpow2.f32 %v3425_v15  ;;  %v3334_v59 = vsub.f32 %v6871_v53, %v3248_v7  ;;  %v3333_v63 = vsub.f32 %v6869_v55, %v3248_v7  ;;  %v3331_v53 = vsub.f32 %v6865_v30, %v3245_v24  ;;  %v3239_v23 = vpop.xlane.xlu1 %3238 }
 0xd12   : > { %5308 = vpow2.f32 %v3423_v61  ;;  %v3328_v30 = vsub.f32 %v6859_v58, %v3239_v23 }
 0xd13   : > { %5310 = vpow2.f32 %v3421_v22  ;;  %v3417_v0 = vmul.f32 1.442695, %v3334_v59  ;;  %v3415_v60 = vmul.f32 1.442695, %v3333_v63  ;;  %v3411_v27 = vmul.f32 1.442695, %v3331_v53 }
 0xd14   : > { %v3242_v17 = vpop.xlane.xlu0 %3241  ;;  %5312 = vpow2.f32 %v3419_v20 }
 0xd15   : > { %5314 = vpow2.f32 %v3417_v0  ;;  %v3330_v55 = vsub.f32 %v6863_v42, %v3242_v17  ;;  %v3329_v12 = vsub.f32 %v6861_v51, %v3242_v17  ;;  %v3327_v42 = vsub.f32 %v6857_v21, %v3239_v23  ;;  %v3233_v6 = vpop.xlane.xlu1 %3232 }
 0xd16   : > { %v5291_v62 = vpop.eup %5290  ;;  %5316 = vpow2.f32 %v3415_v60  ;;  %v3324_v21 = vsub.f32 %v6851_v40, %v3233_v6 }
 0xd17   : > { %v5293_v19 = vpop.eup %5292  ;;  %5318 = vpow2.f32 %v3413_v54  ;;  %v3409_v43 = vmul.f32 1.442695, %v3330_v55  ;;  %v3407_v15 = vmul.f32 1.442695, %v3329_v12  ;;  %v3403_v58 = vmul.f32 1.442695, %v3327_v42 }
 0xd18   : > { %3507 = vmatprep.subr.mxu1 %v5293_v19  ;;  %3578 = vmatprep.subr.mxu0 %v5293_v19  ;;  %v5295_v13 = vpop.eup %5294  ;;  %v3236_v31 = vpop.xlane.xlu0 %3235  ;;  %5320 = vpow2.f32 %v3411_v27  ;;  %v7815_v27 = vld [vmem:[#allocation8_spill] sm:$0xff] }
 0xd19   : > { %3508 = vmatpush1.xpose.msra.mxu1 %v5291_v62  ;;  %3579 = vmatpush1.xpose.msra.mxu0 %v5291_v62  ;;  %v5297_v44 = vpop.eup %5296  ;;  %v3405_v62 = vmul.f32 1.442695, %v3328_v30  ;;  %5322 = vpow2.f32 %v3409_v43  ;;  %v3326_v51 = vsub.f32 %v6855_v16, %v3236_v31  ;;  %v3325_v61 = vsub.f32 %v6853_v33, %v3236_v31  ;;  %v3227_v0 = vpop.xlane.xlu1 %3226  ;;  %v7816_v30 = vld [vmem:[#allocation37_spill] sm:$0xff]  ;;  %v7817_v31 = vld [vmem:[#allocation20_spill] sm:$0xff] }
 0xd1a   : > { %3509 = vmatprep.subr.mxu1 %v5295_v13  ;;  %3580 = vmatprep.subr.mxu0 %v5295_v13  ;;  %v5299_v56 = vpop.eup %5298  ;;  %5324 = vpow2.f32 %v3407_v15  ;;  %v3323_v16 = vsub.f32 %v6849_v8, %v3233_v6  ;;  %v3320_v8 = vsub.f32 %v6843_v35, %v3227_v0 }
 0xd1b   : > { %v5301_v3 = vpop.eup %5300  ;;  %5326 = vpow2.f32 %v3405_v62  ;;  %v3401_v59 = vmul.f32 1.442695, %v3326_v51  ;;  %v3399_v20 = vmul.f32 1.442695, %v3325_v61  ;;  %v7818_v62 = vld [vmem:[#allocation19_spill] sm:$0xff] }
 0xd1c   : > { %v5303_v38 = vpop.eup %5302  ;;  %v3230_v24 = vpop.xlane.xlu0 %3229  ;;  %5328 = vpow2.f32 %v3403_v58  ;;  %v3395_v40 = vmul.f32 1.442695, %v3323_v16  ;;  %v3389_v23 = vmul.f32 1.442695, %v3320_v8 }
 0xd1d   : > { %3510 = vmatpush1.xpose.msra.mxu1 %v5297_v44  ;;  %3581 = vmatpush1.xpose.msra.mxu0 %v5297_v44  ;;  %v5305_v36 = vpop.eup %5304  ;;  %v3397_v44 = vmul.f32 1.442695, %v3324_v21  ;;  %5330 = vpow2.f32 %v3401_v59  ;;  %v3322_v33 = vsub.f32 %v6847_v14, %v3230_v24  ;;  %v7814_v14 = vld [vmem:[#allocation9_spill] sm:$0xff] }
 0xd1e   : > { %3511 = vmatprep.subr.mxu1 %v5299_v56  ;;  %3582 = vmatprep.subr.mxu0 %v5299_v56  ;;  %v5307_v25 = vpop.eup %5306  ;;  %5332 = vpow2.f32 %v3399_v20  ;;  %v3321_v56 = vsub.f32 %v6845_v32, %v3230_v24  ;;  %v3319_v54 = vsub.f32 %v7814_v14, %v3227_v0 }
 0xd1f   : > { %v5309_v7 = vpop.eup %5308  ;;  %5334 = vpow2.f32 %v3397_v44  ;;  %v3393_v53 = vmul.f32 1.442695, %v3322_v33  ;;  %v7819_v33 = vld [vmem:[#allocation28_spill] sm:$0xff] }
 0xd20   : > { %v5311_v19 = vpop.eup %5310  ;;  %5336 = vpow2.f32 %v3395_v40  ;;  %v3391_v55 = vmul.f32 1.442695, %v3321_v56  ;;  %v3387_v35 = vmul.f32 1.442695, %v3319_v54 }
 0xd21   : > { %3512 = vmatpush1.xpose.msra.mxu1 %v5301_v3  ;;  %3583 = vmatpush1.xpose.msra.mxu0 %v5301_v3  ;;  %v5313_v22 = vpop.eup %5312  ;;  %v3224_v3 = vpop.xlane.xlu0 %3223  ;;  %5338 = vpow2.f32 %v3393_v53 }
 0xd22   : > { %3513 = vmatprep.subr.mxu1 %v5303_v38  ;;  %3584 = vmatprep.subr.mxu0 %v5303_v38  ;;  %v5315_v13 = vpop.eup %5314  ;;  %v3318_v32 = vsub.f32 %v7815_v27, %v3224_v3  ;;  %5340 = vpow2.f32 %v3391_v55  ;;  %v3317_v43 = vsub.f32 %v7816_v30, %v3224_v3 }
 0xd23   : > { %v5317_v63 = vpop.eup %5316  ;;  %5342 = vpow2.f32 %v3389_v23 }
 0xd24   : > { %v5319_v48 = vpop.eup %5318  ;;  %v3385_v15 = vmul.f32 1.442695, %v3318_v32  ;;  %5344 = vpow2.f32 %v3387_v35 }
 0xd25   : > { %3514 = vmatpush1.xpose.msra.mxu1 %v5305_v36  ;;  %3585 = vmatpush1.xpose.msra.mxu0 %v5305_v36  ;;  %v5321_v17 = vpop.eup %5320  ;;  %v3221_v36 = vpop.xlane.xlu1 %3220 }
 0xd26   : > { %3515 = vmatprep.subr.mxu1 %v5307_v25  ;;  %3586 = vmatprep.subr.mxu0 %v5307_v25  ;;  %v5323_v60 = vpop.eup %5322  ;;  %v3316_v42 = vsub.f32 %v7817_v31, %v3221_v36  ;;  %v3315_v51 = vsub.f32 %v7818_v62, %v3221_v36  ;;  %5346 = vpow2.f32 %v3385_v15 }
 0xd27   : > { %v5325_v38 = vpop.eup %5324 }
 0xd28   : > { %v5327_v12 = vpop.eup %5326  ;;  %v3381_v58 = vmul.f32 1.442695, %v3316_v42  ;;  %v3379_v21 = vmul.f32 1.442695, %v3315_v51 }
 0xd29   : > { %3516 = vmatpush1.xpose.msra.mxu1 %v5309_v7  ;;  %3587 = vmatpush1.xpose.msra.mxu0 %v5309_v7  ;;  %v5329_v25 = vpop.eup %5328 }
 0xd2a   : > { %3517 = vmatprep.subr.mxu1 %v5311_v19  ;;  %3588 = vmatprep.subr.mxu0 %v5311_v19  ;;  %v5331_v7 = vpop.eup %5330  ;;  %v3383_v19 = vmul.f32 1.442695, %v3317_v43 }
 0xd2b   : > { %v5333_v6 = vpop.eup %5332 }
 0xd2c   : > { %5348 = vpow2.f32 %v3383_v19 }
 0xd2d   : > { %3518 = vmatpush1.xpose.msra.mxu1 %v5313_v22  ;;  %3589 = vmatpush1.xpose.msra.mxu0 %v5313_v22  ;;  %v5335_v22 = vpop.eup %5334  ;;  %5350 = vpow2.f32 %v3381_v58 }
 0xd2e   : > { %3519 = vmatprep.subr.mxu1 %v5315_v13  ;;  %3590 = vmatprep.subr.mxu0 %v5315_v13  ;;  %v5337_v59 = vpop.eup %5336  ;;  %5352 = vpow2.f32 %v3379_v21 }
 0xd2f   : > { %v5339_v20 = vpop.eup %5338 }
 0xd30   : > { %v5341_v56 = vpop.eup %5340 }
 0xd31   : > { %3520 = vmatpush1.xpose.msra.mxu1 %v5317_v63  ;;  %3591 = vmatpush1.xpose.msra.mxu0 %v5317_v63  ;;  %v5343_v53 = vpop.eup %5342 }
 0xd32   : > { %3521 = vmatprep.subr.mxu1 %v5319_v48  ;;  %3592 = vmatprep.subr.mxu0 %v5319_v48  ;;  %v5345_v3 = vpop.eup %5344 }
 0xd33   : > { %v5347_v23 = vpop.eup %5346 }
 0xd35   : > { %3522 = vmatpush1.xpose.msra.mxu1 %v5321_v17  ;;  %3593 = vmatpush1.xpose.msra.mxu0 %v5321_v17 }
 0xd36   : > { %3523 = vmatprep.subr.mxu1 %v5323_v60  ;;  %3594 = vmatprep.subr.mxu0 %v5323_v60 }
 0xd39   : > { %3524 = vmatpush1.xpose.msra.mxu1 %v5325_v38  ;;  %3595 = vmatpush1.xpose.msra.mxu0 %v5325_v38  ;;  %v5349_v32 = vpop.eup %5348 }
 0xd3a   : > { %3525 = vmatprep.subr.mxu1 %v5327_v12  ;;  %3596 = vmatprep.subr.mxu0 %v5327_v12  ;;  %v5351_v35 = vpop.eup %5350 }
 0xd3d   : > { %3526 = vmatpush1.xpose.msra.mxu1 %v5329_v25  ;;  %3597 = vmatpush1.xpose.msra.mxu0 %v5329_v25  ;;  %v5353_v25 = vpop.eup %5352 }
 0xd3e   : > { %3527 = vmatprep.subr.mxu1 %v5331_v7  ;;  %3598 = vmatprep.subr.mxu0 %v5331_v7 }
 0xd40   : > { %v3311_v61 = vpop.xlane.xlu1 %3310 }
 0xd41   : > { %3528 = vmatpush1.xpose.msra.mxu1 %v5333_v6  ;;  %3599 = vmatpush1.xpose.msra.mxu0 %v5333_v6  ;;  %v3376_v13 = vsub.f32 %v6987_v26, %v3311_v61  ;;  %v3375_v48 = vsub.f32 %v7819_v33, %v3311_v61 }
 0xd42   : > { %3529 = vmatprep.subr.mxu1 %v5335_v22  ;;  %3600 = vmatprep.subr.mxu0 %v5335_v22 }
 0xd43   : > { %v3501_v17 = vmul.f32 1.442695, %v3376_v13 }
 0xd44   : > { %v3314_v24 = vpop.xlane.xlu0 %3313  ;;  %v3305_v16 = vpop.xlane.xlu1 %3304 }
 0xd45   : > { %v3377_v63 = vsub.f32 %v6991_v41, %v3314_v24  ;;  %v3378_v44 = vsub.f32 %v6993_v5, %v3314_v24  ;;  %3530 = vmatpush1.xpose.msra.mxu1 %v5337_v59  ;;  %3601 = vmatpush1.xpose.msra.mxu0 %v5337_v59  ;;  %v3499_v5 = vmul.f32 1.442695, %v3375_v48  ;;  %v3372_v14 = vsub.f32 %v6979_v37, %v3305_v16 }
 0xd46   : > { %3531 = vmatprep.subr.mxu1 %v5339_v20  ;;  %3602 = vmatprep.subr.mxu0 %v5339_v20 }
 0xd47   : > { %v3503_v0 = vmul.f32 1.442695, %v3377_v63  ;;  %v3505_v40 = vmul.f32 1.442695, %v3378_v44  ;;  %v3493_v12 = vmul.f32 1.442695, %v3372_v14 }
 0xd48   : > { %v3308_v8 = vpop.xlane.xlu0 %3307  ;;  %v7070_v26 = vpop.xlane.xlu1 %3298  ;;  %v7821_v63 = vld [vmem:[#allocation11_spill] sm:$0xff] }
 0xd49   : > { %5354 = vpow2.f32 %v3503_v0  ;;  %v3374_v41 = vsub.f32 %v6983_v45, %v3308_v8  ;;  %3532 = vmatpush1.xpose.msra.mxu1 %v5341_v56  ;;  %3603 = vmatpush1.xpose.msra.mxu0 %v5341_v56  ;;  %v3373_v60 = vsub.f32 %v6981_v11, %v3308_v8  ;;  %v3371_v45 = vsub.f32 %v6977_v49, %v3305_v16  ;;  %v7820_v16 = vld [vmem:[#allocation10_spill] sm:$0xff] }
 0xd4a   : > { %5356 = vpow2.f32 %v3505_v40  ;;  %3533 = vmatprep.subr.mxu1 %v5343_v53  ;;  %3604 = vmatprep.subr.mxu0 %v5343_v53  ;;  %v3368_v49 = vsub.f32 %v6971_v50, %v7070_v26  ;;  %v3367_v62 = vsub.f32 %v6969_v4, %v7070_v26 }
 0xd4b   : > { %5358 = vpow2.f32 %v3501_v17  ;;  %v3497_v54 = vmul.f32 1.442695, %v3374_v41  ;;  %v3495_v27 = vmul.f32 1.442695, %v3373_v60  ;;  %v3491_v30 = vmul.f32 1.442695, %v3371_v45 }
 0xd4c   : > { %v3302_v55 = vpop.xlane.xlu0 %3301  ;;  %v7075_v38 = vpop.xlane.xlu1 %3292  ;;  %5360 = vpow2.f32 %v3499_v5  ;;  %v3483_v61 = vmul.f32 1.442695, %v3367_v62  ;;  %v7827_v62 = vld [vmem:[#allocation33_spill] sm:$0xff] }
 0xd4d   : > { %3534 = vmatpush1.xpose.msra.mxu1 %v5345_v3  ;;  %3605 = vmatpush1.xpose.msra.mxu0 %v5345_v3  ;;  %5362 = vpow2.f32 %v3497_v54  ;;  %v3370_v11 = vsub.f32 %v6975_v2, %v3302_v55  ;;  %v3369_v43 = vsub.f32 %v6973_v57, %v3302_v55  ;;  %v3485_v57 = vmul.f32 1.442695, %v3368_v49 }
 0xd4e   : > { %3535 = vmatprep.subr.mxu1 %v5347_v23  ;;  %3606 = vmatprep.subr.mxu0 %v5347_v23  ;;  %5364 = vpow2.f32 %v3495_v27  ;;  %v7822_v27 = vld [vmem:[#allocation7_spill] sm:$0xff] }
 0xd4f   : > { %5366 = vpow2.f32 %v3493_v12  ;;  %v3489_v31 = vmul.f32 1.442695, %v3370_v11  ;;  %v3487_v51 = vmul.f32 1.442695, %v3369_v43  ;;  %v7823_v12 = vld [vmem:[#allocation29_spill] sm:$0xff] }
 0xd50   : > { %v3296_v36 = vpop.xlane.xlu0 %3295  ;;  %v7079_v37 = vpop.xlane.xlu1 %3286  ;;  %5368 = vpow2.f32 %v3491_v30 }
 0xd51   : > { %3536 = vmatpush1.xpose.msra.mxu1 %v5349_v32  ;;  %3607 = vmatpush1.xpose.msra.mxu0 %v5349_v32  ;;  %5370 = vpow2.f32 %v3489_v31  ;;  %v3366_v19 = vsub.f32 %v6967_v9, %v3296_v36  ;;  %v3365_v4 = vsub.f32 %v6965_v1, %v3296_v36  ;;  %v3364_v9 = vsub.f32 %v6963_v10, %v7075_v38 }
 0xd52   : > { %3537 = vmatprep.subr.mxu1 %v5351_v35  ;;  %3608 = vmatprep.subr.mxu0 %v5351_v35  ;;  %5372 = vpow2.f32 %v3487_v51  ;;  %v3363_v1 = vsub.f32 %v6961_v52, %v7075_v38  ;;  %v3360_v26 = vsub.f32 %v6953_v39, %v7079_v37  ;;  %v3359_v41 = vsub.f32 %v6951_v47, %v7079_v37 }
 0xd53   : > { %5374 = vpow2.f32 %v3485_v57  ;;  %v3481_v21 = vmul.f32 1.442695, %v3366_v19  ;;  %v3479_v33 = vmul.f32 1.442695, %v3365_v4  ;;  %v3477_v48 = vmul.f32 1.442695, %v3364_v9 }
 0xd54   : > { %v7084_v42 = vpop.xlane.xlu0 %3289  ;;  %v7086_v2 = vpop.xlane.xlu1 %3280  ;;  %5376 = vpow2.f32 %v3483_v61  ;;  %v3475_v17 = vmul.f32 1.442695, %v3363_v1  ;;  %v3469_v3 = vmul.f32 1.442695, %v3360_v26  ;;  %v3467_v54 = vmul.f32 1.442695, %v3359_v41 }
 0xd55   : > { %3538 = vmatpush1.xpose.msra.mxu1 %v5353_v25  ;;  %3609 = vmatpush1.xpose.msra.mxu0 %v5353_v25  ;;  %5378 = vpow2.f32 %v3481_v21  ;;  %v3362_v0 = vsub.f32 %v6959_v34, %v7084_v42  ;;  %v3361_v52 = vsub.f32 %v6957_v18, %v7084_v42  ;;  %v3356_v38 = vsub.f32 %v6937_v29, %v7086_v2  ;;  %v7824_v29 = vld [vmem:[#allocation30_spill] sm:$0xff]  ;;  %v7825_v25 = vld [vmem:[#allocation31_spill] sm:$0xff]  ;;  %v7826_v42 = vld [vmem:[#allocation32_spill] sm:$0xff] }
 0xd56   : > { %v5355_v15 = vpop.eup %5354  ;;  %5380 = vpow2.f32 %v3479_v33  ;;  %v7829_v9 = vld [vmem:[#allocation35_spill] sm:$0xff] }
 0xd57   : > { %v5357_v7 = vpop.eup %5356  ;;  %5382 = vpow2.f32 %v3477_v48  ;;  %v3473_v53 = vmul.f32 1.442695, %v3362_v0  ;;  %v3471_v5 = vmul.f32 1.442695, %v3361_v52  ;;  %v3461_v37 = vmul.f32 1.442695, %v3356_v38 }
 0xd58   : > { %3539 = vmatprep.subr.mxu1 %v5357_v7  ;;  %3610 = vmatprep.subr.mxu0 %v5357_v7  ;;  %v7091_v50 = vpop.xlane.xlu0 %3283  ;;  %v7093_v6 = vpop.xlane.xlu1 %3274  ;;  %5384 = vpow2.f32 %v3475_v17 }
 0xd59   : > { %v5359_v58 = vpop.eup %5358  ;;  %3540 = vmatpush2.xpose.msra.mxu1 %v5355_v15  ;;  %3611 = vmatpush2.xpose.msra.mxu0 %v5355_v15  ;;  %5386 = vpow2.f32 %v3473_v53  ;;  %v3358_v18 = vsub.f32 %v6945_v28, %v7091_v50  ;;  %v3357_v55 = vsub.f32 %v6943_v46, %v7091_v50  ;;  %v3355_v46 = vsub.f32 %v7823_v12, %v7086_v2 }
 0xd5a   : > { %3541 = vmatprep.subr.mxu1 %v5359_v58  ;;  %3612 = vmatprep.subr.mxu0 %v5359_v58  ;;  %v5361_v22 = vpop.eup %5360  ;;  %5388 = vpow2.f32 %v3471_v5  ;;  %v3352_v2 = vsub.f32 %v7826_v42, %v7093_v6  ;;  %v3351_v51 = vsub.f32 %v7827_v62, %v7093_v6  ;;  %v7828_v58 = vld [vmem:[#allocation34_spill] sm:$0xff]  ;;  %v7832_v5 = vld [vmem:[#allocation13_spill] sm:$0xff] }
 0xd5b   : > { %v5363_v24 = vpop.eup %5362  ;;  %5390 = vpow2.f32 %v3469_v3  ;;  %v3465_v23 = vmul.f32 1.442695, %v3358_v18  ;;  %v3463_v11 = vmul.f32 1.442695, %v3357_v55  ;;  %v3459_v43 = vmul.f32 1.442695, %v3355_v46 }
 0xd5c   : > { %v7098_v59 = vpop.xlane.xlu0 %3277  ;;  %v861_v13 = vpop.permute.xlu1 %860  ;;  %5392 = vpow2.f32 %v3467_v54  ;;  %v3453_v50 = vmul.f32 1.442695, %v3352_v2  ;;  %v7833_v3 = vld [vmem:[#allocation6_spill] sm:$0xff]  ;;  %v7835_v54 = vmov 1.0   ;;  %v7836_v55 = vmov 0.0  }
 0xd5d   : > { %3542 = vmatpush2.xpose.msra.mxu1 %v5361_v22  ;;  %3613 = vmatpush2.xpose.msra.mxu0 %v5361_v22  ;;  %v1024_v20 = vadd.f32 %v7820_v16, %v861_v13  ;;  %v1026_v44 = vadd.f32 %v7821_v63, %v861_v13  ;;  %v5365_v10 = vpop.eup %5364  ;;  %5394 = vpow2.f32 %v3465_v23  ;;  %v3354_v35 = vsub.f32 %v7824_v29, %v7098_v59  ;;  %v7830_v13 = vld [vmem:[#allocation36_spill] sm:$0xff]  ;;  %v7831_v63 = vld [vmem:[#allocation26_spill] sm:$0xff] }
 0xd5e   : > { %3543 = vmatprep.subr.mxu1 %v5363_v24  ;;  %3614 = vmatprep.subr.mxu0 %v5363_v24  ;;  %v5367_v40 = vpop.eup %5366  ;;  %5396 = vpow2.f32 %v3463_v11  ;;  %v3353_v49 = vsub.f32 %v7825_v25, %v7098_v59  ;;  %v3451_v22 = vmul.f32 1.442695, %v3351_v51 }
 0xd5f   : > { %3665 = vxpose.xlu1.b32.start.end [1/1] (short) %v1024_v20, 128  ;;  %3697 = vxpose.xlu0.b32.start.end [1/1] (short) %v1026_v44, 128  ;;  %v5369_v8 = vpop.eup %5368  ;;  %5398 = vpow2.f32 %v3461_v37  ;;  %v3457_v15 = vmul.f32 1.442695, %v3354_v35 }
 0xd60   : > { %v7106_v56 = vpop.xlane.xlu0 %3271  ;;  %v5371_v34 = vpop.eup %5370  ;;  %5400 = vpow2.f32 %v3459_v43  ;;  %v3455_v57 = vmul.f32 1.442695, %v3353_v49 }
 0xd61   : > { %3544 = vmatpush2.xpose.msra.mxu1 %v5365_v10  ;;  %3615 = vmatpush2.xpose.msra.mxu0 %v5365_v10  ;;  %v5373_v60 = vpop.eup %5372  ;;  %5402 = vpow2.f32 %v3457_v15  ;;  %v3350_v61 = vsub.f32 %v7828_v58, %v7106_v56  ;;  %v3349_v21 = vsub.f32 %v7829_v9, %v7106_v56  ;;  %v7214_v9 = vpop.f32.mrf.mxu1 }
 0xd62   : > { %3545 = vmatprep.subr.mxu1 %v5367_v40  ;;  %3616 = vmatprep.subr.mxu0 %v5367_v40  ;;  %v5375_v39 = vpop.eup %5374  ;;  %5404 = vpow2.f32 %v3455_v57  ;;  %7837 = vst [vmem:[#allocation15_spill] sm:$0xff] %v7214_v9 }
 0xd63   : > { %v5377_v47 = vpop.eup %5376  ;;  %5406 = vpow2.f32 %v3453_v50  ;;  %v3449_v6 = vmul.f32 1.442695, %v3350_v61  ;;  %v3447_v20 = vmul.f32 1.442695, %v3349_v21 }
 0xd64   : > { %v7116_v14 = vpop.xlane.xlu0 %3268  ;;  %v5379_v28 = vpop.eup %5378  ;;  %5408 = vpow2.f32 %v3451_v22 }
 0xd65   : > { %3546 = vmatpush2.xpose.msra.mxu1 %v5369_v8  ;;  %3617 = vmatpush2.xpose.msra.mxu0 %v5369_v8  ;;  %v5381_v36 = vpop.eup %5380  ;;  %v3348_v24 = vsub.f32 %v7830_v13, %v7116_v14  ;;  %v3347_v44 = vsub.f32 %v7831_v63, %v7116_v14  ;;  %5410 = vpow2.f32 %v3449_v6  ;;  %v7834_v14 = vld [vmem:[#allocation14_spill] sm:$0xff] }
 0xd66   : > { %3547 = vmatprep.subr.mxu1 %v5371_v34  ;;  %3618 = vmatprep.subr.mxu0 %v5371_v34  ;;  %v5383_v30 = vpop.eup %5382  ;;  %5412 = vpow2.f32 %v3447_v20  ;;  %v881_v34 = vpop.permute.xlu1 %880 }
 0xd67   : > { %v5385_v31 = vpop.eup %5384  ;;  %v3445_v33 = vmul.f32 1.442695, %v3348_v24  ;;  %v3443_v48 = vmul.f32 1.442695, %v3347_v44 }
 0xd68   : > { %v5387_v7 = vpop.eup %5386 }
 0xd69   : > { %3548 = vmatpush2.xpose.msra.mxu1 %v5373_v60  ;;  %3619 = vmatpush2.xpose.msra.mxu0 %v5373_v60  ;;  %v5389_v19 = vpop.eup %5388  ;;  %5414 = vpow2.f32 %v3445_v33  ;;  %v1050_v60 = vadd.f32 %v7832_v5, %v881_v34 }
 0xd6a   : > { %3549 = vmatprep.subr.mxu1 %v5375_v39  ;;  %3620 = vmatprep.subr.mxu0 %v5375_v39  ;;  %v5391_v4 = vpop.eup %5390  ;;  %5416 = vpow2.f32 %v3443_v48  ;;  %v1048_v39 = vadd.f32 %v7834_v14, %v881_v34 }
 0xd6b   : > { %v5393_v59 = vpop.eup %5392 }
 0xd6c   : > { %v7122_v45 = vpop.permute.xlu0 %895  ;;  %v5395_v16 = vpop.eup %5394 }
 0xd6d   : > { %v1068_v32 = vadd.f32 %v7822_v27, %v7122_v45  ;;  %3550 = vmatpush2.xpose.msra.mxu1 %v5377_v47  ;;  %3621 = vmatpush2.xpose.msra.mxu0 %v5377_v47  ;;  %v5397_v1 = vpop.eup %5396  ;;  %v1066_v18 = vadd.f32 %v7833_v3, %v7122_v45 }
 0xd6e   : > { %3551 = vmatprep.subr.mxu1 %v5379_v28  ;;  %3622 = vmatprep.subr.mxu0 %v5379_v28  ;;  %v5399_v10 = vpop.eup %5398 }
 0xd6f   : > { %3571 = vmatprep.mubr.f32.mxu1 %v1068_v32  ;;  %v5401_v0 = vpop.eup %5400 }
 0xd70   : > { %v5403_v40 = vpop.eup %5402 }
 0xd71   : > { %3552 = vmatpush2.xpose.msra.mxu1 %v5381_v36  ;;  %3623 = vmatpush2.xpose.msra.mxu0 %v5381_v36  ;;  %v5405_v56 = vpop.eup %5404 }
 0xd72   : > { %3553 = vmatprep.subr.mxu1 %v5383_v30  ;;  %3624 = vmatprep.subr.mxu0 %v5383_v30  ;;  %v5407_v17 = vpop.eup %5406 }
 0xd73   : > { %v5409_v52 = vpop.eup %5408 }
 0xd74   : > { %v5411_v8 = vpop.eup %5410 }
 0xd75   : > { %3554 = vmatpush2.xpose.msra.mxu1 %v5385_v31  ;;  %3625 = vmatpush2.xpose.msra.mxu0 %v5385_v31  ;;  %v5413_v26 = vpop.eup %5412 }
 0xd76   : > { %3555 = vmatprep.subr.mxu1 %v5387_v7  ;;  %3626 = vmatprep.subr.mxu0 %v5387_v7  ;;  %v5415_v53 = vpop.eup %5414 }
 0xd77   : > { %v5417_v41 = vpop.eup %5416 }
 0xd79   : > { %3556 = vmatpush2.xpose.msra.mxu1 %v5389_v19  ;;  %3627 = vmatpush2.xpose.msra.mxu0 %v5389_v19 }
 0xd7a   : > { %3557 = vmatprep.subr.mxu1 %v5391_v4  ;;  %3628 = vmatprep.subr.mxu0 %v5391_v4 }
 0xd7d   : > { %3558 = vmatpush2.xpose.msra.mxu1 %v5393_v59  ;;  %3629 = vmatpush2.xpose.msra.mxu0 %v5393_v59 }
 0xd7e   : > { %3559 = vmatprep.subr.mxu1 %v5395_v16  ;;  %3630 = vmatprep.subr.mxu0 %v5395_v16 }
 0xd81   : > { %3560 = vmatpush2.xpose.msra.mxu1 %v5397_v1  ;;  %3631 = vmatpush2.xpose.msra.mxu0 %v5397_v1 }
 0xd82   : > { %3561 = vmatprep.subr.mxu1 %v5399_v10  ;;  %3632 = vmatprep.subr.mxu0 %v5399_v10 }
 0xd85   : > { %3562 = vmatpush2.xpose.msra.mxu1 %v5401_v0  ;;  %3633 = vmatpush2.xpose.msra.mxu0 %v5401_v0 }
 0xd86   : > { %3563 = vmatprep.subr.mxu1 %v5403_v40  ;;  %3634 = vmatprep.subr.mxu0 %v5403_v40 }
 0xd89   : > { %3564 = vmatpush2.xpose.msra.mxu1 %v5405_v56  ;;  %3635 = vmatpush2.xpose.msra.mxu0 %v5405_v56 }
 0xd8a   : > { %3565 = vmatprep.subr.mxu1 %v5407_v17  ;;  %3636 = vmatprep.subr.mxu0 %v5407_v17 }
 0xd8d   : > { %3566 = vmatpush2.xpose.msra.mxu1 %v5409_v52  ;;  %3637 = vmatpush2.xpose.msra.mxu0 %v5409_v52 }
 0xd8e   : > { %3567 = vmatprep.subr.mxu1 %v5411_v8  ;;  %3638 = vmatprep.subr.mxu0 %v5411_v8 }
 0xd91   : > { %3568 = vmatpush2.xpose.msra.mxu1 %v5413_v26  ;;  %3639 = vmatpush2.xpose.msra.mxu0 %v5413_v26 }
 0xd92   : > { %3569 = vmatprep.subr.mxu1 %v5415_v53  ;;  %3640 = vmatprep.subr.mxu0 %v5415_v53 }
 0xd95   : > { %3570 = vmatpush2.xpose.msra.mxu1 %v5417_v41  ;;  %3641 = vmatpush2.xpose.msra.mxu0 %v5417_v41 }
 0xd96   : > { %3855 = vmatprep.subr.mxu1 %v1050_v60 }
 0xd98   : > { %3572 = vmatmul.mubr.f32.vlgmr.msra.gmra.mxu1 %v1066_v18  ;;  %3643 = vmatmul.mubr.f32.vlgmr.msra.gmra.mxu0 %v7835_v54 }
 0xd99   : > { %3856 = vmatpush1.msra.mxu1 %v1048_v39  ;;  %3889 = vmatprep.mubr.f32.mxu1 %v7836_v55 }
 0xddb   : > { %v3681_v47 = vpop.trf.xlu1  ;;  %v3713_v11 = vpop.trf.xlu0 }
 0xddc   : > { %4874 = vmatmul.mubr.msk.f32.vlgmr.msra.gmra.mxu1 %vm470_vm2, %v3681_v47 }
 0xddd   : > { %3895 = vmatprep.mubr.f32.mxu1 %v7836_v55 }
 0xddf   : > { %v3682_v38 = vpop.trf.xlu1  ;;  %v3714_v37 = vpop.trf.xlu0 }
 0xde0   : > { %4875 = vmatmul.mubr.msk.f32.gmra.mxu1 %vm470_vm2, %v3682_v38 }
 0xde1   : > { %3901 = vmatprep.mubr.f32.mxu1 %v7836_v55 }
 0xde3   : > { %v3683_v23 = vpop.trf.xlu1  ;;  %v3715_v30 = vpop.trf.xlu0 }
 0xde4   : > { %4876 = vmatmul.mubr.msk.f32.gmra.mxu1 %vm470_vm2, %v3683_v23 }
 0xde5   : > { %3907 = vmatprep.mubr.f32.mxu1 %v7836_v55 }
 0xde7   : > { %v3684_v45 = vpop.trf.xlu1  ;;  %v3716_v25 = vpop.trf.xlu0 }
 0xde8   : > { %4877 = vmatmul.mubr.msk.f32.gmra.mxu1 %vm470_vm2, %v3684_v45 }
 0xde9   : > { %3913 = vmatprep.mubr.f32.mxu1 %v7836_v55 }
 0xdeb   : > { %v3685_v28 = vpop.trf.xlu1  ;;  %v3717_v42 = vpop.trf.xlu0 }
 0xdec   : > { %4878 = vmatmul.mubr.msk.f32.gmra.mxu1 %vm470_vm2, %v3685_v28 }
 0xded   : > { %3919 = vmatprep.mubr.f32.mxu1 %v7836_v55 }
 0xdef   : > { %v3686_v27 = vpop.trf.xlu1  ;;  %v3718_v15 = vpop.trf.xlu0 }
 0xdf0   : > { %4879 = vmatmul.mubr.msk.f32.gmra.mxu1 %vm470_vm2, %v3686_v27 }
 0xdf1   : > { %3925 = vmatprep.mubr.f32.mxu1 %v7836_v55 }
 0xdf3   : > { %v3687_v32 = vpop.trf.xlu1  ;;  %v3719_v7 = vpop.trf.xlu0 }
 0xdf4   : > { %4880 = vmatmul.mubr.msk.f32.gmra.mxu1 %vm470_vm2, %v3687_v32 }
 0xdf5   : > { %3931 = vmatprep.mubr.f32.mxu1 %v7836_v55 }
 0xdf7   : > { %v3688_v12 = vpop.trf.xlu1  ;;  %v3720_v62 = vpop.trf.xlu0 }
 0xdf8   : > { %4881 = vmatmul.mubr.msk.f32.gmra.mxu1 %vm470_vm2, %v3688_v12 }
 0xdf9   : > { %3937 = vmatprep.mubr.f32.mxu1 %v7836_v55 }
 0xdfb   : > { %v3689_v46 = vpop.trf.xlu1  ;;  %v3721_v51 = vpop.trf.xlu0 }
 0xdfc   : > { %4882 = vmatmul.mubr.msk.f32.gmra.mxu1 %vm470_vm2, %v3689_v46 }
 0xdfd   : > { %3943 = vmatprep.mubr.f32.mxu1 %v7836_v55 }
 0xdff   : > { %v3690_v36 = vpop.trf.xlu1  ;;  %v3722_v57 = vpop.trf.xlu0 }
 0xe00   : > { %4883 = vmatmul.mubr.msk.f32.gmra.mxu1 %vm470_vm2, %v3690_v36 }
 0xe01   : > { %3949 = vmatprep.mubr.f32.mxu1 %v7836_v55 }
 0xe03   : > { %v3691_v29 = vpop.trf.xlu1  ;;  %v3723_v19 = vpop.trf.xlu0 }
 0xe04   : > { %4884 = vmatmul.mubr.msk.f32.gmra.mxu1 %vm470_vm2, %v3691_v29 }
 0xe05   : > { %3955 = vmatprep.mubr.f32.mxu1 %v7836_v55 }
 0xe07   : > { %v3692_v35 = vpop.trf.xlu1  ;;  %v3724_v50 = vpop.trf.xlu0 }
 0xe08   : > { %4885 = vmatmul.mubr.msk.f32.gmra.mxu1 %vm470_vm2, %v3692_v35 }
 0xe09   : > { %3961 = vmatprep.mubr.f32.mxu1 %v7836_v55 }
 0xe0b   : > { %v3693_v43 = vpop.trf.xlu1  ;;  %v3725_v58 = vpop.trf.xlu0 }
 0xe0c   : > { %4886 = vmatmul.mubr.msk.f32.gmra.mxu1 %vm470_vm2, %v3693_v43 }
 0xe0d   : > { %3967 = vmatprep.mubr.f32.mxu1 %v7836_v55 }
 0xe0f   : > { %v3694_v49 = vpop.trf.xlu1  ;;  %v3726_v61 = vpop.trf.xlu0 }
 0xe10   : > { %4887 = vmatmul.mubr.msk.f32.gmra.mxu1 %vm470_vm2, %v3694_v49 }
 0xe11   : > { %3973 = vmatprep.mubr.f32.mxu1 %v7836_v55 }
 0xe13   : > { %v3695_v31 = vpop.trf.xlu1  ;;  %v3727_v4 = vpop.trf.xlu0 }
 0xe14   : > { %4888 = vmatmul.mubr.msk.f32.gmra.mxu1 %vm470_vm2, %v3695_v31 }
 0xe15   : > { %3979 = vmatprep.mubr.f32.mxu1 %v7836_v55 }
 0xe17   : > { %v3696_v2 = vpop.trf.xlu1  ;;  %v3728_v22 = vpop.trf.xlu0 }
 0xe18   : > { %4889 = vmatmul.mubr.msk.f32.gmra.mxu1 %vm470_vm2, %v3696_v2 }
 0xe19   : > { %3985 = vmatprep.mubr.f32.mxu1 %v7836_v55 }
 0xe1c   : > { %4890 = vmatmul.mubr.msk.f32.gmra.mxu1 %vm470_vm2, %v3713_v11 }
 0xe1d   : > { %3991 = vmatprep.mubr.f32.mxu1 %v7836_v55 }
 0xe20   : > { %4891 = vmatmul.mubr.msk.f32.gmra.mxu1 %vm470_vm2, %v3714_v37 }
 0xe21   : > { %3997 = vmatprep.mubr.f32.mxu1 %v7836_v55 }
 0xe24   : > { %4892 = vmatmul.mubr.msk.f32.gmra.mxu1 %vm470_vm2, %v3715_v30 }
 0xe25   : > { %4003 = vmatprep.mubr.f32.mxu1 %v7836_v55 }
 0xe28   : > { %4893 = vmatmul.mubr.msk.f32.gmra.mxu1 %vm470_vm2, %v3716_v25 }
 0xe29   : > { %4009 = vmatprep.mubr.f32.mxu1 %v7836_v55 }
 0xe2c   : > { %4894 = vmatmul.mubr.msk.f32.gmra.mxu1 %vm470_vm2, %v3717_v42 }
 0xe2d   : > { %4015 = vmatprep.mubr.f32.mxu1 %v7836_v55 }
 0xe30   : > { %4895 = vmatmul.mubr.msk.f32.gmra.mxu1 %vm470_vm2, %v3718_v15 }
 0xe31   : > { %4021 = vmatprep.mubr.f32.mxu1 %v7836_v55 }
 0xe34   : > { %4896 = vmatmul.mubr.msk.f32.gmra.mxu1 %vm470_vm2, %v3719_v7 }
 0xe35   : > { %4027 = vmatprep.mubr.f32.mxu1 %v7836_v55 }
 0xe38   : > { %4897 = vmatmul.mubr.msk.f32.gmra.mxu1 %vm470_vm2, %v3720_v62 }
 0xe39   : > { %4033 = vmatprep.mubr.f32.mxu1 %v7836_v55 }
 0xe3c   : > { %4898 = vmatmul.mubr.msk.f32.gmra.mxu1 %vm470_vm2, %v3721_v51 }
 0xe3d   : > { %4039 = vmatprep.mubr.f32.mxu1 %v7836_v55 }
 0xe40   : > { %4899 = vmatmul.mubr.msk.f32.gmra.mxu1 %vm470_vm2, %v3722_v57 }
 0xe41   : > { %4045 = vmatprep.mubr.f32.mxu1 %v7836_v55 }
 0xe44   : > { %4900 = vmatmul.mubr.msk.f32.gmra.mxu1 %vm470_vm2, %v3723_v19 }
 0xe45   : > { %4051 = vmatprep.mubr.f32.mxu1 %v7836_v55 }
 0xe48   : > { %4901 = vmatmul.mubr.msk.f32.gmra.mxu1 %vm470_vm2, %v3724_v50 }
 0xe49   : > { %4057 = vmatprep.mubr.f32.mxu1 %v7836_v55 }
 0xe4c   : > { %4902 = vmatmul.mubr.msk.f32.gmra.mxu1 %vm470_vm2, %v3725_v58 }
 0xe4d   : > { %4063 = vmatprep.mubr.f32.mxu1 %v7836_v55 }
 0xe50   : > { %4903 = vmatmul.mubr.msk.f32.gmra.mxu1 %vm470_vm2, %v3726_v61 }
 0xe51   : > { %4069 = vmatprep.mubr.f32.mxu1 %v7836_v55 }
 0xe54   : > { %4904 = vmatmul.mubr.msk.f32.gmra.mxu1 %vm470_vm2, %v3727_v4 }
 0xe55   : > { %4075 = vmatprep.mubr.f32.mxu1 %v7836_v55 }
 0xe58   : > { %4905 = vmatmul.mubr.msk.f32.gmra.mxu1 %vm470_vm2, %v3728_v22  ;;  %v7216_v21 = vpop.f32.mrf.mxu1 }
 0xe59   : > { %4505 = vmatprep.mubr.f32.mxu1 %v7835_v54  ;;  %7838 = vst [vmem:[#allocation12_spill] sm:$0xff] %v7216_v21 }
 0xe5a   : > { %v7218_v59 = vpop.f32.mrf.mxu1 }
 0xe5b   : > { %7839 = vst [vmem:[#allocation16_spill] sm:$0xff] %v7218_v59 }
 0xe9c   : > { %v7220_v6 = vpop.f32.mrf.mxu1 }
 0xe9d   : > { %7840 = vst [vmem:[#allocation9_spill] sm:$0xff] %v7220_v6 }
 0xe9e   : > { %v7222_v13 = vpop.f32.mrf.mxu1 }
 0xe9f   : > { %7841 = vst [vmem:[#allocation8_spill] sm:$0xff] %v7222_v13 }
 0xea0   : > { %v7224_v24 = vpop.f32.mrf.mxu1 }
 0xea1   : > { %7842 = vst [vmem:[#allocation37_spill] sm:$0xff] %v7224_v24 }
 0xea2   : > { %v7226_v16 = vpop.f32.mrf.mxu1 }
 0xea3   : > { %7843 = vst [vmem:[#allocation20_spill] sm:$0xff] %v7226_v16  ;;  %v4085_v4 = vmax.f32 %v7224_v24, %v7226_v16 }
 0xea4   : > { %v7228_v20 = vpop.f32.mrf.mxu1 }
 0xea5   : > { %7844 = vst [vmem:[#allocation19_spill] sm:$0xff] %v7228_v20 }
 0xea6   : > { %v7230_v63 = vpop.f32.mrf.mxu1 }
 0xea7   : > { %v4088_v22 = vmax.f32 %v7228_v20, %v7230_v63 }
 0xea8   : > { %v7232_v44 = vpop.f32.mrf.mxu1 }
 0xeaa   : > { %v7234_v1 = vpop.f32.mrf.mxu1 }
 0xeab   : > { %v4091_v19 = vmax.f32 %v7232_v44, %v7234_v1 }
 0xeac   : > { %v7236_v33 = vpop.f32.mrf.mxu1 }
 0xeae   : > { %v7238_v10 = vpop.f32.mrf.mxu1 }
 0xeaf   : > { %v4094_v50 = vmax.f32 %v7236_v33, %v7238_v10 }
 0xeb0   : > { %v7240_v48 = vpop.f32.mrf.mxu1 }
 0xeb2   : > { %v7242_v0 = vpop.f32.mrf.mxu1 }
 0xeb3   : > { %v4097_v7 = vmax.f32 %v7240_v48, %v7242_v0 }
 0xeb4   : > { %v7244_v40 = vpop.f32.mrf.mxu1 }
 0xeb6   : > { %v7246_v56 = vpop.f32.mrf.mxu1 }
 0xeb7   : > { %v4100_v62 = vmax.f32 %v7244_v40, %v7246_v56 }
 0xeb8   : > { %v7248_v17 = vpop.f32.mrf.mxu1 }
 0xeba   : > { %v7250_v52 = vpop.f32.mrf.mxu1 }
 0xebb   : > { %v4103_v31 = vmax.f32 %v7248_v17, %v7250_v52 }
 0xebc   : > { %v7252_v8 = vpop.f32.mrf.mxu1 }
 0xebe   : > { %v7254_v26 = vpop.f32.mrf.mxu1 }
 0xebf   : > { %v4106_v42 = vmax.f32 %v7252_v8, %v7254_v26 }
 0xec0   : > { %v7256_v53 = vpop.f32.mrf.mxu1 }
 0xec2   : > { %v7258_v34 = vpop.f32.mrf.mxu1 }
 0xec3   : > { %v4109_v30 = vmax.f32 %v7256_v53, %v7258_v34 }
 0xec4   : > { %v7260_v41 = vpop.f32.mrf.mxu1 }
 0xec6   : > { %v7262_v5 = vpop.f32.mrf.mxu1 }
 0xec7   : > { %v4112_v43 = vmax.f32 %v7260_v41, %v7262_v5 }
 0xec8   : > { %v7264_v60 = vpop.f32.mrf.mxu1 }
 0xeca   : > { %v7266_v3 = vpop.f32.mrf.mxu1 }
 0xecb   : > { %v4115_v36 = vmax.f32 %v7264_v60, %v7266_v3 }
 0xecc   : > { %v7268_v18 = vpop.f32.mrf.mxu1 }
 0xece   : > { %v7270_v14 = vpop.f32.mrf.mxu1 }
 0xecf   : > { %v4118_v37 = vmax.f32 %v7268_v18, %v7270_v14 }
 0xed0   : > { %v7272_v39 = vpop.f32.mrf.mxu1 }
 0xed2   : > { %v7274_v47 = vpop.f32.mrf.mxu1 }
 0xed3   : > { %v4121_v32 = vmax.f32 %v7272_v39, %v7274_v47 }
 0xed4   : > { %v7276_v38 = vpop.f32.mrf.mxu1 }
 0xed6   : > { %v7278_v23 = vpop.f32.mrf.mxu1 }
 0xed7   : > { %v4124_v45 = vmax.f32 %v7276_v38, %v7278_v23 }
 0xed8   : > { %v7282_v28 = vpop.f32.mrf.mxu1 }
 0xed9   : > { %4125 = vmax.xlane.f32.xlu1 %v4124_v45 }
 0xeda   : > { %v7284_v27 = vpop.f32.mrf.mxu1 }
 0xedb   : > { %v4127_v12 = vmax.f32 %v7282_v28, %v7284_v27 }
 0xedc   : > { %v7290_v46 = vpop.f32.mrf.mxu1 }
 0xedd   : > { %7845 = vst [vmem:[#allocation28_spill] sm:$0xff] %v7290_v46  ;;  %4122 = vmax.xlane.f32.xlu1 %v4121_v32  ;;  %4128 = vmax.xlane.f32.xlu0 %v4127_v12  ;;  %v4082_v12 = vmax.f32 %v7220_v6, %v7222_v13 }
 0xede   : > { %v7292_v11 = vpop.f32.mrf.mxu1 }
 0xedf   : > { %7846 = vst [vmem:[#allocation10_spill] sm:$0xff] %v7292_v11 }
 0xee0   : > { %v7298_v29 = vpop.f32.mrf.mxu1 }
 0xee1   : > { %7847 = vst [vmem:[#allocation11_spill] sm:$0xff] %v7298_v29  ;;  %4116 = vmax.xlane.f32.xlu1 %v4115_v36  ;;  %4119 = vmax.xlane.f32.xlu0 %v4118_v37 }
 0xee2   : > { %v7300_v35 = vpop.f32.mrf.mxu1 }
 0xee3   : > { %7848 = vst [vmem:[#allocation7_spill] sm:$0xff] %v7300_v35 }
 0xee4   : > { %v7306_v25 = vpop.f32.mrf.mxu1 }
 0xee5   : > { %7849 = vst [vmem:[#allocation29_spill] sm:$0xff] %v7306_v25  ;;  %4110 = vmax.xlane.f32.xlu1 %v4109_v30  ;;  %4113 = vmax.xlane.f32.xlu0 %v4112_v43 }
 0xee6   : > { %v7308_v49 = vpop.f32.mrf.mxu1 }
 0xee7   : > { %7850 = vst [vmem:[#allocation30_spill] sm:$0xff] %v7308_v49 }
 0xee8   : > { %v7314_v2 = vpop.f32.mrf.mxu1 }
 0xee9   : > { %7851 = vst [vmem:[#allocation31_spill] sm:$0xff] %v7314_v2  ;;  %4104 = vmax.xlane.f32.xlu1 %v4103_v31  ;;  %4107 = vmax.xlane.f32.xlu0 %v4106_v42 }
 0xeea   : > { %v7316_v15 = vpop.f32.mrf.mxu1 }
 0xeeb   : > { %7852 = vst [vmem:[#allocation32_spill] sm:$0xff] %v7316_v15 }
 0xeec   : > { %v7322_v51 = vpop.f32.mrf.mxu1 }
 0xeed   : > { %7853 = vst [vmem:[#allocation33_spill] sm:$0xff] %v7322_v51  ;;  %4098 = vmax.xlane.f32.xlu1 %v4097_v7  ;;  %4101 = vmax.xlane.f32.xlu0 %v4100_v62 }
 0xeee   : > { %v7324_v57 = vpop.f32.mrf.mxu1 }
 0xef0   : > { %v7330_v58 = vpop.f32.mrf.mxu1 }
 0xef1   : > { %4092 = vmax.xlane.f32.xlu1 %v4091_v19  ;;  %4095 = vmax.xlane.f32.xlu0 %v4094_v50 }
 0xef2   : > { %v7332_v61 = vpop.f32.mrf.mxu1 }
 0xef4   : > { %v7338_v45 = vpop.f32.mrf.mxu1 }
 0xef5   : > { %4086 = vmax.xlane.f32.xlu1 %v4085_v4  ;;  %4089 = vmax.xlane.f32.xlu0 %v4088_v22 }
 0xef6   : > { %v7340_v32 = vpop.f32.mrf.mxu1 }
 0xef8   : > { %v7344_v36 = vpop.f32.mrf.mxu1 }
 0xef9   : > { %4083 = vmax.xlane.f32.xlu0 %v4082_v12 }
 0xefa   : > { %v7346_v37 = vpop.f32.mrf.mxu1 }
 0xefc   : > { %v7348_v30 = vpop.f32.mrf.mxu1 }
 0xefe   : > { %v7350_v43 = vpop.f32.mrf.mxu1 }
 0xf00   : > { %v7352_v31 = vpop.f32.mrf.mxu1 }
 0xf02   : > { %v7354_v42 = vpop.f32.mrf.mxu1 }
 0xf04   : > { %v7356_v7 = vpop.f32.mrf.mxu1 }
 0xf06   : > { %v7358_v62 = vpop.f32.mrf.mxu1 }
 0xf07   : > { %v4160_v16 = vmax.f32 %v7356_v7, %v7358_v62 }
 0xf08   : > { %v7360_v19 = vpop.f32.mrf.mxu1 }
 0xf0a   : > { %v7362_v50 = vpop.f32.mrf.mxu1 }
 0xf0c   : > { %v7364_v4 = vpop.f32.mrf.mxu1 }
 0xf0e   : > { %v7366_v22 = vpop.f32.mrf.mxu1 }
 0xf0f   : > { %v4166_v13 = vmax.f32 %v7364_v4, %v7366_v22 }
 0xf10   : > { %v7368_v12 = vpop.f32.mrf.mxu1 }
 0xf12   : > { %v7370_v21 = vpop.f32.mrf.mxu1 }
 0xf13   : > { %v4169_v20 = vmax.f32 %v7368_v12, %v7370_v21 }
 0xf14   : > { %v7372_v59 = vpop.f32.mrf.mxu1 }
 0xf15   : > { %7854 = vst [vmem:[#allocation34_spill] sm:$0xff] %v7372_v59 }
 0xf16   : > { %v7374_v9 = vpop.f32.mrf.mxu1 }
 0xf17   : > { %v4172_v55 = vmax.f32 %v7372_v59, %v7374_v9  ;;  %v4163_v59 = vmax.f32 %v7360_v19, %v7362_v50 }
 0xf18   : > { %v7378_v54 = vpop.f32.mrf.mxu1 }
 0xf19   : > { %4173 = vmax.xlane.f32.xlu0 %v4172_v55  ;;  %v4154_v55 = vmax.f32 %v7348_v30, %v7350_v43 }
 0xf1a   : > { %v7380_v6 = vpop.f32.mrf.mxu1 }
 0xf1b   : > { %v4175_v24 = vmax.f32 %v7378_v54, %v7380_v6 }
 0xf1d   : > { %4167 = vmax.xlane.f32.xlu0 %v4166_v13  ;;  %4176 = vmax.xlane.f32.xlu1 %v4175_v24  ;;  %v4148_v13 = vmax.f32 %v7338_v45, %v7340_v32  ;;  %v4157_v24 = vmax.f32 %v7352_v31, %v7354_v42 }
 0xf21   : > { %4161 = vmax.xlane.f32.xlu0 %v4160_v16  ;;  %4170 = vmax.xlane.f32.xlu1 %v4169_v20  ;;  %v4142_v16 = vmax.f32 %v7322_v51, %v7324_v57  ;;  %v4151_v20 = vmax.f32 %v7344_v36, %v7346_v37 }
 0xf25   : > { %4155 = vmax.xlane.f32.xlu0 %v4154_v55  ;;  %4164 = vmax.xlane.f32.xlu1 %v4163_v59  ;;  %v4136_v55 = vmax.f32 %v7306_v25, %v7308_v49  ;;  %v4145_v59 = vmax.f32 %v7330_v58, %v7332_v61 }
 0xf29   : > { %4149 = vmax.xlane.f32.xlu0 %v4148_v13  ;;  %4158 = vmax.xlane.f32.xlu1 %v4157_v24  ;;  %v4130_v13 = vmax.f32 %v7290_v46, %v7292_v11  ;;  %v4139_v24 = vmax.f32 %v7314_v2, %v7316_v15 }
 0xf2d   : > { %4143 = vmax.xlane.f32.xlu0 %v4142_v16  ;;  %4152 = vmax.xlane.f32.xlu1 %v4151_v20  ;;  %v4133_v16 = vmax.f32 %v7298_v29, %v7300_v35  ;;  %v367_v20 = vld [vmem:[%s7626_s6 + $0x58] sm:$0xff] }
 0xf31   : > { %4137 = vmax.xlane.f32.xlu0 %v4136_v55  ;;  %4146 = vmax.xlane.f32.xlu1 %v4145_v59  ;;  %v372_v55 = vld [vmem:[%s7628_s8] sm:$0xff]  ;;  %v373_v59 = vld [vmem:[%s7628_s8 + $0x8] sm:$0xff] }
 0xf35   : > { %4131 = vmax.xlane.f32.xlu0 %v4130_v13  ;;  %4140 = vmax.xlane.f32.xlu1 %v4139_v24  ;;  %v375_v13 = vld [vmem:[%s7628_s8 + $0x18] sm:$0xff]  ;;  %v374_v24 = vld [vmem:[%s7628_s8 + $0x10] sm:$0xff] }
 0xf39   : > { %4134 = vmax.xlane.f32.xlu1 %v4133_v16 }
 0xf4a   : > { %900 = vperm.xlu1 %5021, %v367_v20  }
 0xf4b   : > { %4538 = vperm.xlu0 %5020, %v372_v55  }
 0xf4e   : > { %4543 = vperm.xlu1 %5021, %v373_v59  }
 0xf4f   : > { %4553 = vperm.xlu0 %5020, %v375_v13  }
 0xf52   : > { %4548 = vperm.xlu1 %5021, %v374_v24  }
 0xf62   : > { %v4126_v16 = vpop.xlane.xlu1 %4125 }
 0xf63   : > { %v4207_v46 = vsub.f32 %v7278_v23, %v4126_v16  ;;  %v4206_v35 = vsub.f32 %v7276_v38, %v4126_v16 }
 0xf65   : > { %v4300_v59 = vmul.f32 1.442695, %v4207_v46  ;;  %v4298_v24 = vmul.f32 1.442695, %v4206_v35 }
 0xf66   : > { %v4129_v20 = vpop.xlane.xlu0 %4128  ;;  %v4123_v29 = vpop.xlane.xlu1 %4122 }
 0xf67   : > { %v4208_v55 = vsub.f32 %v7282_v28, %v4129_v20  ;;  %v4209_v11 = vsub.f32 %v7284_v27, %v4129_v20  ;;  %v4205_v13 = vsub.f32 %v7274_v47, %v4123_v29  ;;  %v4204_v15 = vsub.f32 %v7272_v39, %v4123_v29 }
 0xf69   : > { %v4302_v25 = vmul.f32 1.442695, %v4208_v55  ;;  %v4304_v49 = vmul.f32 1.442695, %v4209_v11  ;;  %v4296_v23 = vmul.f32 1.442695, %v4205_v13 }
 0xf6a   : > { %v4120_v2 = vpop.xlane.xlu0 %4119  ;;  %v4117_v51 = vpop.xlane.xlu1 %4116  ;;  %v4294_v27 = vmul.f32 1.442695, %v4204_v15 }
 0xf6b   : > { %5418 = vpow2.f32 %v4302_v25  ;;  %v4203_v28 = vsub.f32 %v7270_v14, %v4120_v2  ;;  %v4202_v38 = vsub.f32 %v7268_v18, %v4120_v2  ;;  %v4201_v46 = vsub.f32 %v7266_v3, %v4117_v51 }
 0xf6c   : > { %5420 = vpow2.f32 %v4304_v49  ;;  %v4200_v35 = vsub.f32 %v7264_v60, %v4117_v51 }
 0xf6d   : > { %5422 = vpow2.f32 %v4300_v59  ;;  %v4292_v11 = vmul.f32 1.442695, %v4203_v28  ;;  %v4290_v25 = vmul.f32 1.442695, %v4202_v38  ;;  %v4288_v39 = vmul.f32 1.442695, %v4201_v46 }
 0xf6e   : > { %5424 = vpow2.f32 %v4298_v24  ;;  %v4114_v47 = vpop.xlane.xlu0 %4113  ;;  %v4111_v49 = vpop.xlane.xlu1 %4110  ;;  %v4286_v15 = vmul.f32 1.442695, %v4200_v35 }
 0xf6f   : > { %5426 = vpow2.f32 %v4296_v23  ;;  %v4199_v29 = vsub.f32 %v7262_v5, %v4114_v47  ;;  %v4198_v18 = vsub.f32 %v7260_v41, %v4114_v47  ;;  %v4197_v3 = vsub.f32 %v7258_v34, %v4111_v49 }
 0xf70   : > { %5428 = vpow2.f32 %v4294_v27  ;;  %v4196_v60 = vsub.f32 %v7256_v53, %v4111_v49 }
 0xf71   : > { %5430 = vpow2.f32 %v4292_v11  ;;  %v4284_v2 = vmul.f32 1.442695, %v4199_v29  ;;  %v4282_v5 = vmul.f32 1.442695, %v4198_v18  ;;  %v4280_v59 = vmul.f32 1.442695, %v4197_v3 }
 0xf72   : > { %5432 = vpow2.f32 %v4290_v25  ;;  %v4108_v55 = vpop.xlane.xlu0 %4107  ;;  %v4105_v24 = vpop.xlane.xlu1 %4104  ;;  %v4278_v34 = vmul.f32 1.442695, %v4196_v60 }
 0xf73   : > { %5434 = vpow2.f32 %v4288_v39  ;;  %v4195_v41 = vsub.f32 %v7254_v26, %v4108_v55  ;;  %v4194_v23 = vsub.f32 %v7252_v8, %v4108_v55  ;;  %v4193_v53 = vsub.f32 %v7250_v52, %v4105_v24 }
 0xf74   : > { %5436 = vpow2.f32 %v4286_v15  ;;  %v4192_v46 = vsub.f32 %v7248_v17, %v4105_v24 }
 0xf75   : > { %5438 = vpow2.f32 %v4284_v2  ;;  %v4276_v27 = vmul.f32 1.442695, %v4195_v41  ;;  %v4274_v26 = vmul.f32 1.442695, %v4194_v23  ;;  %v4272_v25 = vmul.f32 1.442695, %v4193_v53 }
 0xf76   : > { %5440 = vpow2.f32 %v4282_v5  ;;  %v4102_v11 = vpop.xlane.xlu0 %4101  ;;  %v4099_v39 = vpop.xlane.xlu1 %4098  ;;  %v4270_v52 = vmul.f32 1.442695, %v4192_v46 }
 0xf77   : > { %5442 = vpow2.f32 %v4280_v59  ;;  %v4191_v8 = vsub.f32 %v7246_v56, %v4102_v11  ;;  %v4190_v29 = vsub.f32 %v7244_v40, %v4102_v11  ;;  %v4189_v17 = vsub.f32 %v7242_v0, %v4099_v39 }
 0xf78   : > { %v5419_v14 = vpop.eup %5418  ;;  %5444 = vpow2.f32 %v4278_v34  ;;  %v4188_v18 = vsub.f32 %v7240_v48, %v4099_v39 }
 0xf79   : > { %v5421_v16 = vpop.eup %5420  ;;  %5446 = vpow2.f32 %v4276_v27  ;;  %v4266_v56 = vmul.f32 1.442695, %v4190_v29  ;;  %v4264_v3 = vmul.f32 1.442695, %v4189_v17  ;;  %v7855_v27 = vld [vmem:[#allocation19_spill] sm:$0xff]  ;;  %v7859_v17 = vld [vmem:[#allocation9_spill] sm:$0xff] }
 0xf7a   : > { %4370 = vmatprep.subr.mxu0 %v5421_v16  ;;  %4441 = vmatprep.subr.mxu1 %v5421_v16  ;;  %v5423_v20 = vpop.eup %5422  ;;  %5448 = vpow2.f32 %v4274_v26  ;;  %v4096_v15 = vpop.xlane.xlu0 %4095  ;;  %v4262_v0 = vmul.f32 1.442695, %v4188_v18  ;;  %v7856_v26 = vld [vmem:[#allocation20_spill] sm:$0xff] }
 0xf7b   : > { %4371 = vmatpush1.xpose.msra.mxu0 %v5419_v14  ;;  %4442 = vmatpush1.xpose.msra.mxu1 %v5419_v14  ;;  %v5425_v51 = vpop.eup %5424  ;;  %5450 = vpow2.f32 %v4272_v25  ;;  %v4268_v14 = vmul.f32 1.442695, %v4191_v8  ;;  %v4187_v40 = vsub.f32 %v7238_v10, %v4096_v15  ;;  %v4093_v55 = vpop.xlane.xlu1 %4092  ;;  %v4186_v5 = vsub.f32 %v7236_v33, %v4096_v15  ;;  %v7857_v25 = vld [vmem:[#allocation37_spill] sm:$0xff] }
 0xf7c   : > { %4372 = vmatprep.subr.mxu0 %v5423_v20  ;;  %4443 = vmatprep.subr.mxu1 %v5423_v20  ;;  %v5427_v13 = vpop.eup %5426  ;;  %5452 = vpow2.f32 %v4270_v52  ;;  %v4185_v48 = vsub.f32 %v7234_v1, %v4093_v55  ;;  %v7858_v52 = vld [vmem:[#allocation8_spill] sm:$0xff] }
 0xf7d   : > { %v5429_v28 = vpop.eup %5428  ;;  %5454 = vpow2.f32 %v4268_v14  ;;  %v4258_v10 = vmul.f32 1.442695, %v4186_v5 }
 0xf7e   : > { %v5431_v38 = vpop.eup %5430  ;;  %5456 = vpow2.f32 %v4266_v56  ;;  %v4090_v41 = vpop.xlane.xlu0 %4089  ;;  %v4256_v34 = vmul.f32 1.442695, %v4185_v48 }
 0xf7f   : > { %4373 = vmatpush1.xpose.msra.mxu0 %v5425_v51  ;;  %4444 = vmatpush1.xpose.msra.mxu1 %v5425_v51  ;;  %v5433_v47 = vpop.eup %5432  ;;  %5458 = vpow2.f32 %v4264_v3  ;;  %v4260_v51 = vmul.f32 1.442695, %v4187_v40  ;;  %v4183_v33 = vsub.f32 %v7230_v63, %v4090_v41  ;;  %v4182_v53 = vsub.f32 %v7855_v27, %v4090_v41 }
 0xf80   : > { %4374 = vmatprep.subr.mxu0 %v5427_v13  ;;  %4445 = vmatprep.subr.mxu1 %v5427_v13  ;;  %v5435_v35 = vpop.eup %5434  ;;  %5460 = vpow2.f32 %v4262_v0  ;;  %v4184_v13 = vsub.f32 %v7232_v44, %v4093_v55 }
 0xf81   : > { %v5437_v49 = vpop.eup %5436  ;;  %5462 = vpow2.f32 %v4260_v51  ;;  %v4252_v11 = vmul.f32 1.442695, %v4183_v33  ;;  %v4250_v63 = vmul.f32 1.442695, %v4182_v53 }
 0xf82   : > { %v5439_v16 = vpop.eup %5438  ;;  %5464 = vpow2.f32 %v4258_v10  ;;  %v4254_v1 = vmul.f32 1.442695, %v4184_v13  ;;  %v7860_v13 = vld [vmem:[#allocation34_spill] sm:$0xff] }
 0xf83   : > { %4375 = vmatpush1.xpose.msra.mxu0 %v5429_v28  ;;  %4446 = vmatpush1.xpose.msra.mxu1 %v5429_v28  ;;  %v5441_v2 = vpop.eup %5440  ;;  %v4087_v28 = vpop.xlane.xlu1 %4086  ;;  %5466 = vpow2.f32 %v4256_v34 }
 0xf84   : > { %4376 = vmatprep.subr.mxu0 %v5431_v38  ;;  %4447 = vmatprep.subr.mxu1 %v5431_v38  ;;  %v5443_v20 = vpop.eup %5442  ;;  %v4181_v44 = vsub.f32 %v7856_v26, %v4087_v28  ;;  %5468 = vpow2.f32 %v4254_v1  ;;  %v4180_v8 = vsub.f32 %v7857_v25, %v4087_v28 }
 0xf85   : > { %v5445_v60 = vpop.eup %5444  ;;  %5470 = vpow2.f32 %v4252_v11 }
 0xf86   : > { %v5447_v59 = vpop.eup %5446  ;;  %v4248_v39 = vmul.f32 1.442695, %v4181_v44  ;;  %5472 = vpow2.f32 %v4250_v63  ;;  %v4246_v14 = vmul.f32 1.442695, %v4180_v8 }
 0xf87   : > { %4377 = vmatpush1.xpose.msra.mxu0 %v5433_v47  ;;  %4448 = vmatpush1.xpose.msra.mxu1 %v5433_v47  ;;  %v5449_v24 = vpop.eup %5448  ;;  %v4084_v47 = vpop.xlane.xlu0 %4083 }
 0xf88   : > { %4378 = vmatprep.subr.mxu0 %v5435_v35  ;;  %4449 = vmatprep.subr.mxu1 %v5435_v35  ;;  %v5451_v23 = vpop.eup %5450  ;;  %v4179_v29 = vsub.f32 %v7858_v52, %v4084_v47  ;;  %5474 = vpow2.f32 %v4248_v39 }
 0xf89   : > { %v5453_v38 = vpop.eup %5452  ;;  %5476 = vpow2.f32 %v4246_v14 }
 0xf8a   : > { %v5455_v46 = vpop.eup %5454  ;;  %v4244_v56 = vmul.f32 1.442695, %v4179_v29 }
 0xf8b   : > { %4379 = vmatpush1.xpose.msra.mxu0 %v5437_v49  ;;  %4450 = vmatpush1.xpose.msra.mxu1 %v5437_v49  ;;  %v5457_v35 = vpop.eup %5456 }
 0xf8c   : > { %4380 = vmatprep.subr.mxu0 %v5439_v16  ;;  %4451 = vmatprep.subr.mxu1 %v5439_v16  ;;  %v5459_v49 = vpop.eup %5458  ;;  %v4178_v16 = vsub.f32 %v7859_v17, %v4084_v47  ;;  %5478 = vpow2.f32 %v4244_v56 }
 0xf8d   : > { %v5461_v15 = vpop.eup %5460 }
 0xf8e   : > { %v5463_v18 = vpop.eup %5462 }
 0xf8f   : > { %4381 = vmatpush1.xpose.msra.mxu0 %v5441_v2  ;;  %4452 = vmatpush1.xpose.msra.mxu1 %v5441_v2  ;;  %v4242_v2 = vmul.f32 1.442695, %v4178_v16  ;;  %v5465_v40 = vpop.eup %5464 }
 0xf90   : > { %4382 = vmatprep.subr.mxu0 %v5443_v20  ;;  %4453 = vmatprep.subr.mxu1 %v5443_v20  ;;  %v5467_v55 = vpop.eup %5466 }
 0xf91   : > { %5480 = vpow2.f32 %v4242_v2  ;;  %v5469_v48 = vpop.eup %5468 }
 0xf92   : > { %v5471_v10 = vpop.eup %5470 }
 0xf93   : > { %4383 = vmatpush1.xpose.msra.mxu0 %v5445_v60  ;;  %4454 = vmatpush1.xpose.msra.mxu1 %v5445_v60 }
 0xf94   : > { %4384 = vmatprep.subr.mxu0 %v5447_v59  ;;  %4455 = vmatprep.subr.mxu1 %v5447_v59 }
 0xf97   : > { %4385 = vmatpush1.xpose.msra.mxu0 %v5449_v24  ;;  %4456 = vmatpush1.xpose.msra.mxu1 %v5449_v24 }
 0xf98   : > { %4386 = vmatprep.subr.mxu0 %v5451_v23  ;;  %4457 = vmatprep.subr.mxu1 %v5451_v23 }
 0xf9b   : > { %4387 = vmatpush1.xpose.msra.mxu0 %v5453_v38  ;;  %4458 = vmatpush1.xpose.msra.mxu1 %v5453_v38 }
 0xf9c   : > { %4388 = vmatprep.subr.mxu0 %v5455_v46  ;;  %4459 = vmatprep.subr.mxu1 %v5455_v46 }
 0xf9f   : > { %4389 = vmatpush1.xpose.msra.mxu0 %v5457_v35  ;;  %4460 = vmatpush1.xpose.msra.mxu1 %v5457_v35 }
 0xfa0   : > { %4390 = vmatprep.subr.mxu0 %v5459_v49  ;;  %4461 = vmatprep.subr.mxu1 %v5459_v49 }
 0xfa2   : > { %v4174_v3 = vpop.xlane.xlu0 %4173 }
 0xfa3   : > { %4391 = vmatpush1.xpose.msra.mxu0 %v5461_v15  ;;  %4462 = vmatpush1.xpose.msra.mxu1 %v5461_v15  ;;  %v4239_v5 = vsub.f32 %v7374_v9, %v4174_v3  ;;  %v4238_v24 = vsub.f32 %v7860_v13, %v4174_v3  ;;  %v5473_v9 = vpop.eup %5472 }
 0xfa4   : > { %4392 = vmatprep.subr.mxu0 %v5463_v18  ;;  %4463 = vmatprep.subr.mxu1 %v5463_v18  ;;  %v5475_v23 = vpop.eup %5474 }
 0xfa5   : > { %v4364_v34 = vmul.f32 1.442695, %v4239_v5  ;;  %v4362_v28 = vmul.f32 1.442695, %v4238_v24 }
 0xfa6   : > { %v4177_v20 = vpop.xlane.xlu1 %4176 }
 0xfa7   : > { %4393 = vmatpush1.xpose.msra.mxu0 %v5465_v40  ;;  %4464 = vmatpush1.xpose.msra.mxu1 %v5465_v40  ;;  %v4240_v0 = vsub.f32 %v7378_v54, %v4177_v20  ;;  %v4241_v60 = vsub.f32 %v7380_v6, %v4177_v20  ;;  %v4168_v54 = vpop.xlane.xlu0 %4167 }
 0xfa8   : > { %4394 = vmatprep.subr.mxu0 %v5467_v55  ;;  %4465 = vmatprep.subr.mxu1 %v5467_v55  ;;  %v4235_v27 = vsub.f32 %v7366_v22, %v4168_v54  ;;  %v4234_v26 = vsub.f32 %v7364_v4, %v4168_v54 }
 0xfa9   : > { %v4366_v51 = vmul.f32 1.442695, %v4240_v0  ;;  %v4368_v59 = vmul.f32 1.442695, %v4241_v60 }
 0xfaa   : > { %v4171_v41 = vpop.xlane.xlu1 %4170  ;;  %v4356_v46 = vmul.f32 1.442695, %v4235_v27  ;;  %v4354_v25 = vmul.f32 1.442695, %v4234_v26  ;;  %v7863_v26 = vld [vmem:[#allocation32_spill] sm:$0xff] }
 0xfab   : > { %4395 = vmatpush1.xpose.msra.mxu0 %v5469_v48  ;;  %4466 = vmatpush1.xpose.msra.mxu1 %v5469_v48  ;;  %v4237_v33 = vsub.f32 %v7370_v21, %v4171_v41  ;;  %5482 = vpow2.f32 %v4366_v51  ;;  %v4236_v1 = vsub.f32 %v7368_v12, %v4171_v41  ;;  %v5477_v21 = vpop.eup %5476  ;;  %v4162_v47 = vpop.xlane.xlu0 %4161  ;;  %v7861_v48 = vld [vmem:[#allocation23_spill] sm:$0xff] }
 0xfac   : > { %4396 = vmatprep.subr.mxu0 %v5471_v10  ;;  %4467 = vmatprep.subr.mxu1 %v5471_v10  ;;  %5484 = vpow2.f32 %v4368_v59  ;;  %v5479_v11 = vpop.eup %5478  ;;  %v4231_v4 = vsub.f32 %v7358_v62, %v4162_v47  ;;  %v4230_v29 = vsub.f32 %v7356_v7, %v4162_v47 }
 0xfad   : > { %5486 = vpow2.f32 %v4364_v34  ;;  %v4360_v53 = vmul.f32 1.442695, %v4237_v33  ;;  %v4358_v44 = vmul.f32 1.442695, %v4236_v1  ;;  %v5481_v22 = vpop.eup %5480 }
 0xfae   : > { %v4165_v6 = vpop.xlane.xlu1 %4164  ;;  %5488 = vpow2.f32 %v4362_v28  ;;  %v4348_v14 = vmul.f32 1.442695, %v4231_v4  ;;  %v4346_v15 = vmul.f32 1.442695, %v4230_v29 }
 0xfaf   : > { %4397 = vmatpush1.xpose.msra.mxu0 %v5473_v9  ;;  %4468 = vmatpush1.xpose.msra.mxu1 %v5473_v9  ;;  %5490 = vpow2.f32 %v4360_v53  ;;  %v4233_v12 = vsub.f32 %v7362_v50, %v4165_v6  ;;  %v4232_v8 = vsub.f32 %v7360_v19, %v4165_v6  ;;  %v4156_v16 = vpop.xlane.xlu0 %4155 }
 0xfb0   : > { %4398 = vmatprep.subr.mxu0 %v5475_v23  ;;  %4469 = vmatprep.subr.mxu1 %v5475_v23  ;;  %5492 = vpow2.f32 %v4358_v44  ;;  %v4227_v18 = vsub.f32 %v7350_v43, %v4156_v16  ;;  %v4226_v40 = vsub.f32 %v7348_v30, %v4156_v16 }
 0xfb1   : > { %5494 = vpow2.f32 %v4356_v46  ;;  %v4352_v35 = vmul.f32 1.442695, %v4233_v12  ;;  %v4350_v49 = vmul.f32 1.442695, %v4232_v8  ;;  %v7864_v12 = vld [vmem:[#allocation31_spill] sm:$0xff] }
 0xfb2   : > { %v4159_v38 = vpop.xlane.xlu1 %4158  ;;  %5496 = vpow2.f32 %v4354_v25  ;;  %v4340_v0 = vmul.f32 1.442695, %v4227_v18  ;;  %v4338_v51 = vmul.f32 1.442695, %v4226_v40  ;;  %v7870_v40 = vld [vmem:[#allocation28_spill] sm:$0xff] }
 0xfb3   : > { %4399 = vmatpush1.xpose.msra.mxu0 %v5477_v21  ;;  %4470 = vmatpush1.xpose.msra.mxu1 %v5477_v21  ;;  %5498 = vpow2.f32 %v4352_v35  ;;  %v4229_v17 = vsub.f32 %v7354_v42, %v4159_v38  ;;  %v4228_v56 = vsub.f32 %v7352_v31, %v4159_v38  ;;  %v4150_v43 = vpop.xlane.xlu0 %4149  ;;  %v7866_v35 = vld [vmem:[#allocation29_spill] sm:$0xff] }
 0xfb4   : > { %4400 = vmatprep.subr.mxu0 %v5479_v11  ;;  %4471 = vmatprep.subr.mxu1 %v5479_v11  ;;  %5500 = vpow2.f32 %v4350_v49  ;;  %v4222_v24 = vsub.f32 %v7338_v45, %v4150_v43  ;;  %v7867_v49 = vld [vmem:[#allocation7_spill] sm:$0xff] }
 0xfb5   : > { %5502 = vpow2.f32 %v4348_v14  ;;  %v4344_v2 = vmul.f32 1.442695, %v4229_v17  ;;  %v4342_v20 = vmul.f32 1.442695, %v4228_v56 }
 0xfb6   : > { %v7468_v63 = vpop.xlane.xlu1 %4152  ;;  %5504 = vpow2.f32 %v4346_v15 }
 0xfb7   : > { %4401 = vmatpush1.xpose.msra.mxu0 %v5481_v22  ;;  %4472 = vmatpush1.xpose.msra.mxu1 %v5481_v22  ;;  %5506 = vpow2.f32 %v4344_v2  ;;  %v4225_v31 = vsub.f32 %v7346_v37, %v7468_v63  ;;  %v4224_v30 = vsub.f32 %v7344_v36, %v7468_v63  ;;  %v4223_v37 = vsub.f32 %v7340_v32, %v4150_v43  ;;  %v4144_v6 = vpop.xlane.xlu0 %4143  ;;  %v7865_v63 = vld [vmem:[#allocation30_spill] sm:$0xff] }
 0xfb8   : > { %v5483_v39 = vpop.eup %5482  ;;  %5508 = vpow2.f32 %v4342_v20  ;;  %v4330_v32 = vmul.f32 1.442695, %v4222_v24  ;;  %v4219_v28 = vsub.f32 %v7324_v57, %v4144_v6  ;;  %v7871_v24 = vld [vmem:[#allocation25_spill] sm:$0xff] }
 0xfb9   : > { %v5485_v50 = vpop.eup %5484  ;;  %5510 = vpow2.f32 %v4340_v0  ;;  %v4336_v10 = vmul.f32 1.442695, %v4225_v31  ;;  %v4334_v34 = vmul.f32 1.442695, %v4224_v30  ;;  %v4332_v36 = vmul.f32 1.442695, %v4223_v37 }
 0xfba   : > { %v7472_v52 = vpop.xlane.xlu1 %4146  ;;  %4402 = vmatprep.subr.mxu0 %v5485_v50  ;;  %4473 = vmatprep.subr.mxu1 %v5485_v50  ;;  %v5487_v19 = vpop.eup %5486  ;;  %5512 = vpow2.f32 %v4338_v51  ;;  %v4324_v11 = vmul.f32 1.442695, %v4219_v28 }
 0xfbb   : > { %4403 = vmatpush2.xpose.msra.mxu0 %v5483_v39  ;;  %4474 = vmatpush2.xpose.msra.mxu1 %v5483_v39  ;;  %v5489_v7 = vpop.eup %5488  ;;  %5514 = vpow2.f32 %v4336_v10  ;;  %v4221_v54 = vsub.f32 %v7332_v61, %v7472_v52  ;;  %v4220_v23 = vsub.f32 %v7330_v58, %v7472_v52  ;;  %v7862_v61 = vld [vmem:[#allocation33_spill] sm:$0xff]  ;;  %v4138_v46 = vpop.xlane.xlu0 %4137 }
 0xfbc   : > { %4404 = vmatprep.subr.mxu0 %v5487_v19  ;;  %4475 = vmatprep.subr.mxu1 %v5487_v19  ;;  %v5491_v42 = vpop.eup %5490  ;;  %5516 = vpow2.f32 %v4334_v34  ;;  %v4218_v53 = vsub.f32 %v7862_v61, %v4144_v6  ;;  %v4215_v25 = vsub.f32 %v7865_v63, %v4138_v46  ;;  %v4214_v39 = vsub.f32 %v7866_v35, %v4138_v46  ;;  %v7874_v6 = vld [vmem:[#allocation15_spill] sm:$0xff]  ;;  %v7879_v35 = vld [vmem:[#allocation18_spill] sm:$0xff] }
 0xfbd   : > { %v5493_v55 = vpop.eup %5492  ;;  %5518 = vpow2.f32 %v4332_v36  ;;  %v4328_v1 = vmul.f32 1.442695, %v4221_v54  ;;  %v4326_v21 = vmul.f32 1.442695, %v4220_v23  ;;  %v7873_v36 = vmov 0.0   ;;  %v3644_v54 = vpop.f32.mrf.mxu0 }
 0xfbe   : > { %v7476_v62 = vpop.xlane.xlu1 %4140  ;;  %v5495_v5 = vpop.eup %5494  ;;  %5520 = vpow2.f32 %v4330_v32  ;;  %v4322_v57 = vmul.f32 1.442695, %v4218_v53  ;;  %v4316_v29 = vmul.f32 1.442695, %v4215_v25  ;;  %v4314_v16 = vmul.f32 1.442695, %v4214_v39 }
 0xfbf   : > { %4405 = vmatpush2.xpose.msra.mxu0 %v5489_v7  ;;  %4476 = vmatpush2.xpose.msra.mxu1 %v5489_v7  ;;  %v5497_v41 = vpop.eup %5496  ;;  %5522 = vpow2.f32 %v4328_v1  ;;  %v4217_v58 = vsub.f32 %v7863_v26, %v7476_v62  ;;  %v4216_v47 = vsub.f32 %v7864_v12, %v7476_v62  ;;  %v4132_v19 = vpop.xlane.xlu0 %4131  ;;  %v7868_v62 = vld [vmem:[#allocation11_spill] sm:$0xff]  ;;  %v7869_v7 = vld [vmem:[#allocation10_spill] sm:$0xff] }
 0xfc0   : > { %4406 = vmatprep.subr.mxu0 %v5491_v42  ;;  %4477 = vmatprep.subr.mxu1 %v5491_v42  ;;  %v5499_v13 = vpop.eup %5498  ;;  %5524 = vpow2.f32 %v4326_v21  ;;  %v4211_v18 = vsub.f32 %v7869_v7, %v4132_v19  ;;  %v4210_v20 = vsub.f32 %v7870_v40, %v4132_v19  ;;  %v7876_v21 = vld [vmem:[#allocation24_spill] sm:$0xff] }
 0xfc1   : > { %v5501_v33 = vpop.eup %5500  ;;  %5526 = vpow2.f32 %v4324_v11  ;;  %v4320_v8 = vmul.f32 1.442695, %v4217_v58  ;;  %v4318_v52 = vmul.f32 1.442695, %v4216_v47  ;;  %v370_v19 = vld [vmem:[%s7627_s7 + $0x10] sm:$0xff] }
 0xfc2   : > { %v7480_v3 = vpop.xlane.xlu1 %4134  ;;  %v5503_v9 = vpop.eup %5502  ;;  %5528 = vpow2.f32 %v4322_v57  ;;  %v4308_v31 = vmul.f32 1.442695, %v4211_v18 }
 0xfc3   : > { %4407 = vmatpush2.xpose.msra.mxu0 %v5493_v55  ;;  %4478 = vmatpush2.xpose.msra.mxu1 %v5493_v55  ;;  %v5505_v45 = vpop.eup %5504  ;;  %5530 = vpow2.f32 %v4320_v8  ;;  %v4213_v14 = vsub.f32 %v7867_v49, %v7480_v3  ;;  %v4212_v15 = vsub.f32 %v7868_v62, %v7480_v3  ;;  %v4306_v3 = vmul.f32 1.442695, %v4210_v20  ;;  %v7878_v8 = vld [vmem:[#allocation12_spill] sm:$0xff]  ;;  %v368_v49 = vld [vmem:[%s7627_s7] sm:$0xff] }
 0xfc4   : > { %4408 = vmatprep.subr.mxu0 %v5495_v5  ;;  %4479 = vmatprep.subr.mxu1 %v5495_v5  ;;  %v5507_v27 = vpop.eup %5506  ;;  %5532 = vpow2.f32 %v4318_v52  ;;  %v7880_v52 = vld [vmem:[#allocation21_spill] sm:$0xff] }
 0xfc5   : > { %v5509_v38 = vpop.eup %5508  ;;  %5534 = vpow2.f32 %v4316_v29  ;;  %v4312_v2 = vmul.f32 1.442695, %v4213_v14  ;;  %v4310_v55 = vmul.f32 1.442695, %v4212_v15  ;;  %v7881_v29 = vld [vmem:[#allocation17_spill] sm:$0xff]  ;;  %v7882_v14 = vld [vmem:[#allocation22_spill] sm:$0xff] }
 0xfc6   : > { %v7485_v60 = vpop.permute.xlu1 %900  ;;  %v5511_v44 = vpop.eup %5510  ;;  %5536 = vpow2.f32 %v4314_v16  ;;  %v371_v16 = vld [vmem:[%s7627_s7 + $0x18] sm:$0xff] }
 0xfc7   : > { %v1074_v59 = vadd.f32 %v7861_v48, %v7485_v60  ;;  %4409 = vmatpush2.xpose.msra.mxu0 %v5497_v41  ;;  %4480 = vmatpush2.xpose.msra.mxu1 %v5497_v41  ;;  %v5513_v22 = vpop.eup %5512  ;;  %5538 = vpow2.f32 %v4312_v2  ;;  %v1072_v34 = vadd.f32 %v7871_v24, %v7485_v60  ;;  %v4539_v62 = vpop.permute.xlu0 %4538  ;;  %v5558_v2 = vld [vmem:[%s5739_s25] sm:$0xff] }
 0xfc8   : > { %4410 = vmatprep.subr.mxu0 %v5499_v13  ;;  %4481 = vmatprep.subr.mxu1 %v5499_v13  ;;  %v5515_v4 = vpop.eup %5514  ;;  %5540 = vpow2.f32 %v4310_v55  ;;  %v5559_v55 = vld [vmem:[%s5739_s25 + $0x8] sm:$0xff] }
 0xfc9   : > { %4434 = vmatprep.mubr.f32.mxu0 %v1074_v59  ;;  %v5517_v50 = vpop.eup %5516  ;;  %5542 = vpow2.f32 %v4308_v31 }
 0xfca   : > { %v5519_v17 = vpop.eup %5518  ;;  %5544 = vpow2.f32 %v4306_v3  ;;  %v4544_v7 = vpop.permute.xlu1 %4543  ;;  %v5560_v3 = vld [vmem:[%s5739_s25 + $0x10] sm:$0xff] }
 0xfcb   : > { %4411 = vmatpush2.xpose.msra.mxu0 %v5501_v33  ;;  %4482 = vmatpush2.xpose.msra.mxu1 %v5501_v33  ;;  %v5521_v56 = vpop.eup %5520  ;;  %v7872_v33 = vmov 1.0   ;;  %5546 = vrcp.f32 %v7874_v6 }
 0xfcc   : > { %4412 = vmatprep.subr.mxu0 %v5503_v9  ;;  %4483 = vmatprep.subr.mxu1 %v5503_v9  ;;  %v5523_v42 = vpop.eup %5522  ;;  %v3646_v9 = vpop.f32.mrf.mxu0 }
 0xfcd   : > { %v5525_v0 = vpop.eup %5524  ;;  %5548 = vrcp.f32 %v3646_v9 }
 0xfce   : > { %v5527_v5 = vpop.eup %5526 }
 0xfcf   : > { %4413 = vmatpush2.xpose.msra.mxu0 %v5505_v45  ;;  %4484 = vmatpush2.xpose.msra.mxu1 %v5505_v45  ;;  %v5529_v43 = vpop.eup %5528  ;;  %v7875_v45 = vld [vmem:[#allocation27_spill] sm:$0xff] }
 0xfd0   : > { %4414 = vmatprep.subr.mxu0 %v5507_v27  ;;  %4485 = vmatprep.subr.mxu1 %v5507_v27  ;;  %v5531_v51 = vpop.eup %5530 }
 0xfd1   : > { %v5533_v30 = vpop.eup %5532 }
 0xfd2   : > { %v5535_v48 = vpop.eup %5534 }
 0xfd3   : > { %4415 = vmatpush2.xpose.msra.mxu0 %v5509_v38  ;;  %4486 = vmatpush2.xpose.msra.mxu1 %v5509_v38  ;;  %v5537_v59 = vpop.eup %5536 }
 0xfd4   : > { %4416 = vmatprep.subr.mxu0 %v5511_v44  ;;  %4487 = vmatprep.subr.mxu1 %v5511_v44  ;;  %v5539_v41 = vpop.eup %5538 }
 0xfd5   : > { %v5541_v37 = vpop.eup %5540 }
 0xfd6   : > { %v5543_v10 = vpop.eup %5542 }
 0xfd7   : > { %4417 = vmatpush2.xpose.msra.mxu0 %v5513_v22  ;;  %4488 = vmatpush2.xpose.msra.mxu1 %v5513_v22  ;;  %v5545_v13 = vpop.eup %5544  ;;  %v7877_v22 = vld [vmem:[#allocation16_spill] sm:$0xff] }
 0xfd8   : > { %4418 = vmatprep.subr.mxu0 %v5515_v4  ;;  %4489 = vmatprep.subr.mxu1 %v5515_v4  ;;  %v5547_v28 = vpop.eup %5546 }
 0xfd9   : > { %v2797_v12 = vrot.slane %v5547_v28, %v7876_v21 }
 0xfda   : > { %v5549_v1 = vpop.eup %5548 }
 0xfdb   : > { %4419 = vmatpush2.xpose.msra.mxu0 %v5517_v50  ;;  %4490 = vmatpush2.xpose.msra.mxu1 %v5517_v50  ;;  %v3660_v26 = vrot.slane %v5549_v1, %v7876_v21  ;;  %v2799_v39 = vmul.f32 %v2797_v12, %v7879_v35  ;;  %v5565_v1 = vld [vmem:[%s5739_s25 + $0x38] sm:$0xff] }
 0xfdc   : > { %4420 = vmatprep.subr.mxu0 %v5519_v17  ;;  %4491 = vmatprep.subr.mxu1 %v5519_v17  ;;  %v369_v17 = vld [vmem:[%s7627_s7 + $0x8] sm:$0xff] }
 0xfdd   : > { %v3662_v63 = vmul.f32 %v3660_v26, %v7877_v22 }
 0xfdf   : > { %4421 = vmatpush2.xpose.msra.mxu0 %v5521_v56  ;;  %4492 = vmatpush2.xpose.msra.mxu1 %v5521_v56 }
 0xfe0   : > { %4422 = vmatprep.subr.mxu0 %v5523_v42  ;;  %4493 = vmatprep.subr.mxu1 %v5523_v42 }
 0xfe3   : > { %4423 = vmatpush2.xpose.msra.mxu0 %v5525_v0  ;;  %4494 = vmatpush2.xpose.msra.mxu1 %v5525_v0 }
 0xfe4   : > { %4424 = vmatprep.subr.mxu0 %v5527_v5  ;;  %4495 = vmatprep.subr.mxu1 %v5527_v5 }
 0xfe7   : > { %4425 = vmatpush2.xpose.msra.mxu0 %v5529_v43  ;;  %4496 = vmatpush2.xpose.msra.mxu1 %v5529_v43 }
 0xfe8   : > { %4426 = vmatprep.subr.mxu0 %v5531_v51  ;;  %4497 = vmatprep.subr.mxu1 %v5531_v51 }
 0xfeb   : > { %4427 = vmatpush2.xpose.msra.mxu0 %v5533_v30  ;;  %4498 = vmatpush2.xpose.msra.mxu1 %v5533_v30  ;;  %v4549_v30 = vpop.permute.xlu1 %4548 }
 0xfec   : > { %4428 = vmatprep.subr.mxu0 %v5535_v48  ;;  %4499 = vmatprep.subr.mxu1 %v5535_v48 }
 0xfef   : > { %4429 = vmatpush2.xpose.msra.mxu0 %v5537_v59  ;;  %4500 = vmatpush2.xpose.msra.mxu1 %v5537_v59  ;;  %v5561_v59 = vld [vmem:[%s5739_s25 + $0x18] sm:$0xff] }
 0xff0   : > { %4430 = vmatprep.subr.mxu0 %v5539_v41  ;;  %4501 = vmatprep.subr.mxu1 %v5539_v41 }
 0xff3   : > { %4431 = vmatpush2.xpose.msra.mxu0 %v5541_v37  ;;  %4502 = vmatpush2.xpose.msra.mxu1 %v5541_v37 }
 0xff4   : > { %4432 = vmatprep.subr.mxu0 %v5543_v10  ;;  %4503 = vmatprep.subr.mxu1 %v5543_v10 }
 0xff7   : > { %4433 = vmatpush2.xpose.msra.mxu0 %v5545_v13  ;;  %4504 = vmatpush2.xpose.msra.mxu1 %v5545_v13  ;;  %v5562_v13 = vld [vmem:[%s5739_s25 + $0x20] sm:$0xff] }
 0xffa   : > { %4435 = vmatmul.mubr.f32.vlgmr.msra.gmra.mxu0 %v1072_v34  ;;  %4506 = vmatmul.mubr.f32.vlgmr.msra.gmra.mxu1 %v7872_v33  ;;  %v4554_v33 = vpop.permute.xlu0 %4553 }
 0xffb   : > { %4632 = vmatprep.mubr.f32.mxu0 %v7873_v36 }
0x10ba   : > { %v4507_v32 = vpop.f32.mrf.mxu1  ;;  %v4436_v27 = vpop.f32.mrf.mxu0 }
0x10bb   : > { %5550 = vrcp.f32 %v4507_v32 }
0x10bc   : > { %5552 = vrcp.f32 %v3644_v54  ;;  %v4509_v23 = vpop.f32.mrf.mxu1  ;;  %v4438_v44 = vpop.f32.mrf.mxu0  ;;  %v5563_v54 = vld [vmem:[%s5739_s25 + $0x28] sm:$0xff] }
0x10bd   : > { %5554 = vrcp.f32 %v4509_v23  ;;  %v5564_v23 = vld [vmem:[%s5739_s25 + $0x30] sm:$0xff] }
0x10be   : > { %5556 = vrcp.f32 %v7875_v45 }
0x10c8   : > { %v5551_v60 = vpop.eup %5550 }
0x10c9   : > { %v5553_v61 = vpop.eup %5552  ;;  %v4519_v38 = vrot.slane %v5551_v60, %v7876_v21 }
0x10ca   : > { %v5555_v53 = vpop.eup %5554  ;;  %v3656_v46 = vrot.slane %v5553_v61, %v7876_v21 }
0x10cb   : > { %v4523_v11 = vrot.slane %v5555_v53, %v7876_v21  ;;  %v5557_v58 = vpop.eup %5556  ;;  %v4524_v47 = vmul.f32 %v4519_v38, %v4436_v27 }
0x10cc   : > { %v1934_v25 = vrot.slane %v5557_v58, %v7876_v21  ;;  %v3661_v4 = vmul.f32 %v3656_v46, %v7878_v8 }
0x10cd   : > { %v4525_v57 = vmul.f32 %v4523_v11, %v4438_v44 }
0x10ce   : > { %v1936_v50 = vmul.f32 %v1934_v25, %v7880_v52 }
0x10cf   : > { %4592 = vmatprep.subr.mxu0 %v4525_v57 }
0x10d0   : > { %4593 = vmatpush1.msra.mxu0 %v4524_v47 }
0x10d1   : > { %4594 = vmatprep.subr.mxu0 %v3662_v63 }
0x10d2   : > { %4595 = vmatpush1.msra.mxu0 %v3661_v4 }
0x10d3   : > { %4596 = vmatprep.subr.mxu0 %v2799_v39 }
0x10d4   : > { %4597 = vmatpush1.msra.mxu0 %v7881_v29 }
0x10d5   : > { %4598 = vmatprep.subr.mxu0 %v1936_v50 }
0x10d6   : > { %4599 = vmatpush1.msra.mxu0 %v7882_v14 }
0x10d7   : > { %4906 = vmatmul.mubr.msk.f32.vlgmr.msra.gmra.mxu0 %vm396_vm1, %v368_v49 }
0x10d8   : > { %4638 = vmatprep.mubr.f32.mxu0 %v7873_v36 }
0x10db   : > { %4907 = vmatmul.mubr.msk.f32.gmra.mxu0 %vm396_vm1, %v369_v17 }
0x10dc   : > { %4644 = vmatprep.mubr.f32.mxu0 %v7873_v36 }
0x10df   : > { %4908 = vmatmul.mubr.msk.f32.gmra.mxu0 %vm396_vm1, %v370_v19 }
0x10e0   : > { %4650 = vmatprep.mubr.f32.mxu0 %v7873_v36 }
0x10e3   : > { %4909 = vmatmul.mubr.msk.f32.gmra.mxu0 %vm396_vm1, %v371_v16 }
0x1197   : > { %v4634_v15 = vpop.f32.mrf.mxu0 }
0x1198   : > { %v4635_v56 = vadd.f32 %v4634_v15, %v4539_v62 }
0x1199   : > { %v4636_v18 = vpop.f32.mrf.mxu0 }
0x119a   : > { %v4657_v42 = vadd.f32 %v5558_v2, %v4635_v56  ;;  %v4637_v40 = vadd.f32 %v4636_v18, %v4539_v62 }
0x119b   : > { %v4640_v20 = vpop.f32.mrf.mxu0 }
0x119c   : > { %4665 = vst [vmem:[%s7552_s14] sm:$0xff] %v4657_v42  ;;  %v4658_v0 = vadd.f32 %v5559_v55, %v4637_v40  ;;  %v4641_v31 = vadd.f32 %v4640_v20, %v4544_v7 }
0x119d   : > { %v4642_v5 = vpop.f32.mrf.mxu0 }
0x119e   : > { %4666 = vst [vmem:[%s7552_s14 + $0x8] sm:$0xff] %v4658_v0  ;;  %v4659_v43 = vadd.f32 %v5560_v3, %v4641_v31  ;;  %v4643_v51 = vadd.f32 %v4642_v5, %v4544_v7 }
0x119f   : > { %v4646_v48 = vpop.f32.mrf.mxu0 }
0x11a0   : > { %4667 = vst [vmem:[%s7552_s14 + $0x10] sm:$0xff] %v4659_v43  ;;  %v4660_v41 = vadd.f32 %v5561_v59, %v4643_v51  ;;  %v4647_v37 = vadd.f32 %v4646_v48, %v4549_v30 }
0x11a1   : > { %v4648_v10 = vpop.f32.mrf.mxu0 }
0x11a2   : > { %4668 = vst [vmem:[%s7552_s14 + $0x18] sm:$0xff] %v4660_v41  ;;  %v4661_v24 = vadd.f32 %v5562_v13, %v4647_v37  ;;  %v4649_v34 = vadd.f32 %v4648_v10, %v4549_v30 }
0x11a3   : > { %v4652_v36 = vpop.f32.mrf.mxu0 }
0x11a4   : > { %4669 = vst [vmem:[%s7552_s14 + $0x20] sm:$0xff] %v4661_v24  ;;  %v4662_v9 = vadd.f32 %v5563_v54, %v4649_v34  ;;  %v4653_v6 = vadd.f32 %v4652_v36, %v4554_v33 }
0x11a5   : > { %v4654_v32 = vpop.f32.mrf.mxu0 }
0x11a6   : > { %4670 = vst [vmem:[%s7552_s14 + $0x28] sm:$0xff] %v4662_v9  ;;  %v4663_v45 = vadd.f32 %v5564_v23, %v4653_v6  ;;  %v4655_v28 = vadd.f32 %v4654_v32, %v4554_v33 }
0x11a8   : > { %4671 = vst [vmem:[%s7552_s14 + $0x30] sm:$0xff] %v4663_v45  ;;  %v4664_v60 = vadd.f32 %v5565_v1, %v4655_v28 }
0x11aa   : > { %4672 = vst [vmem:[%s7552_s14 + $0x38] sm:$0xff] %v4664_v60 }
0x11ab   : > { %5579 = shalt.err (!%p5576_p3)
}
0x11ac   : > { %s5580_s25 = scalar_lea.hbm %s7571_s23, 1024  ;;  %s5584_s16 = scalar_lea.hbm %s7629_s9, 2048 }
0x11ad   : > { %p5581_p4 = scmp.ne.s32.totalorder %s7571_s23, %s5580_s25  ;;  %p5585_p9 = scmp.lt.s32.totalorder %s7571_s23, %s7629_s9 }
0x11ae   : > { %p5586_p10 = scmp.lt.s32.totalorder %s5584_s16, %s5580_s25 }
0x11af   : > { %p5582_p7 = pnand %p5581_p4, %p5723_p5 }
0x11b0   : > { %p5587_p11 = por %p5586_p10, %p5585_p9 }
0x11b1   : > { %p5583_p8 = pneg %p5582_p7 }
0x11b3   : > { %p5588_p12 = pnand %p5587_p11, %p5583_p8 }
0x11b5   : > { %5591 = shalt.err (!%p5588_p12)
}
0x11b6   : > { %s5633_s24 = smov 256   ;;  %s5634_s26 = smov 16  }
0x11b7   : > { %4975 = dma.vmem_to_hbm [thread:$0]  (%p5723_p5), %s7573_s17, 1024, %s7571_s23, %s7580_s13, %s5633_s24, %s5633_s24, %s5634_s26  }
0x11b8 PF: > { %p4981_p13 = scmp.ge.s32.totalorder %s5626_s12, 2  ;;  %s4702_s27 = sand.u32 1, %s5614_s30  }
0x11b9   : > { %s4703_s29 = scalar_lea.sflag [#allocation4], %s4702_s27 }
0x11ba   : > { %p4978_p0 = pnand %p4981_p13, %p5727_p6 }
0x11bc   : > { %p4979_p1 = pneg %p4978_p0 }
0x11be   : > { %5609 = dma.done.wait (%p4979_p1), %s4703_s29, 1024  }
0x11bf   : > { %5611 = vsyncadd (%p4979_p1), %s4703_s29, 4294966272  ;;  %p19_p2 = scmp.ge.s32.totalorder %s5710_s15, 4   ;;  %s7883_s30 = smov %s5618_s10 }
0x11c0   : > { %s7884_s10 = smov %s5622_s11  ;;  %s7885_s11 = smov %s5721_s18 }
0x11c1   : > { %s7886_s12 = smov %s5710_s15  ;;  %21 = sbr.rel (!%p19_p2) target bundleno = 3 (0x3), region = 91 }
0x11c6   :  { %4708 = vsyncpa [#allocation4], 1 }
0x11c7   :  { %4710 = vsyncpa [#allocation4 + $0x1], 1 }

</bundles_post_ra>
